<compile_context>
chip_gen: v7x
topology: tpu7x:2x2x1
jax: 0.10.0
libtpu: 0.0.40
codegen_flags: <defaults>
</compile_context>

<pallas_src>
import functools

import jax
import jax.numpy as jnp
import numpy as np
from jax import lax
from jax.experimental import pallas as pl
from jax.experimental.pallas import tpu as pltpu

_LOSS_LANES = 128  # lane-dense per-tile loss slot (avoids masked partial stores)


def rqvae_kernel(x_ref, we1_ref, be1_ref, we2_ref, be2_ref,
                 cb_ref, cbt_ref, c2_ref,
                 wd1_ref, bd1_ref, wd2_ref, bd2_ref,
                 xr_ref, ind_ref, loss_ref,
                 *, n_codebook, k, inv_total_elems):
    def linear(a, w_ref, b_ref):
        w = w_ref[...]
        # Weights may be bf16 (wrapper flag); always accumulate in f32 on MXU.
        return jnp.dot(a.astype(w.dtype), w,
                       preferred_element_type=jnp.float32) + b_ref[...]

    # ---------------- encoder: Linear -> ReLU -> Linear ----------------
    x = x_ref[...]                                              # (TB, F)
    h = jnp.maximum(linear(x, we1_ref, be1_ref), 0.0)
    z = linear(h, we2_ref, be2_ref)                             # (TB, D) f32

    # ---------------- residual vector quantization ----------------
    residual = z
    q_sum = jnp.zeros_like(z)
    loss_acc = jnp.zeros((1, 1), jnp.float32)
    for c in range(n_codebook):                                 # static unroll
        cb = cb_ref[c]                                          # (K, D) f32
        cbt = cbt_ref[c]                                        # (D, K) f32
        c2 = c2_ref[c]                                          # (1, K) ||c_k||^2
        # cross = residual @ cb^T, but as a plain NN matmul on the MXU
        cross = jnp.dot(residual, cbt,
                        preferred_element_type=jnp.float32)     # (TB, K)
        # argmin_k ||r - c_k||^2 == argmin_k (||c_k||^2 - 2<r, c_k>)
        # (the ||r||^2 term is constant per row, so it is dropped)
        score = c2 - 2.0 * cross                                # (TB, K)
        k_iota = lax.broadcasted_iota(jnp.int32, score.shape, 1)
        min_s = jnp.min(score, axis=-1, keepdims=True)
        idx = jnp.min(jnp.where(score == min_s, k_iota, k), axis=-1)  # first-min, (TB,)

        # gather codebook rows via one-hot matmul (MXU-friendly)
        onehot = (k_iota == idx[:, None]).astype(jnp.float32)   # (TB, K)
        z_q = jnp.dot(onehot, cb, preferred_element_type=jnp.float32)  # (TB, D)

        # vq_loss + commitment_loss = 2 * mean((z_q - residual)^2)
        diff = z_q - residual
        loss_acc = loss_acc + 2.0 * jnp.sum(diff * diff)

        residual = residual - z_q             # straight-through value == z_q
        q_sum = q_sum + z_q
        ind_ref[c, :] = idx.astype(jnp.int32)  # lane-dense row store

    # ---------------- decoder: Linear -> ReLU -> Linear ----------------
    h2 = jnp.maximum(linear(q_sum, wd1_ref, bd1_ref), 0.0)
    xr_ref[...] = linear(h2, wd2_ref, bd2_ref).astype(xr_ref.dtype)

    # Per-tile partial of the mean-normalized loss (multiply by precomputed
    # 1/(B*D) instead of dividing); the wrapper sums the tiles.
    loss_tile = (loss_acc * inv_total_elems).reshape(1, 1, 1)
    loss_ref[...] = jnp.broadcast_to(loss_tile, loss_ref.shape)


def rqvae_forward(x, params, *, hidden_dim, k, n_codebook, tb=256,
                  use_bf16_mlp=False):
    """RQVAE forward in a single Pallas kernel.

    tb is the batch tile (tuning parameter: ~128 on v5e, 256 on v6e/v7x); it is
    capped at B and must divide B.  use_bf16_mlp casts only the MLP weights to
    bf16 (f32 accumulation); the VQ distance/loss path stays f32.
    """
    B, F = x.shape
    D = hidden_dim
    tb = min(tb, B)
    assert B % tb == 0, "batch must be divisible by the batch tile"
    num_tiles = B // tb
    we1, be1, we2, be2, cb, wd1, bd1, wd2, bd2 = params

    # Batch-tile invariant codebook preprocessing hoisted to the wrapper:
    # transposed codebooks for the distance matmul and squared norms.
    cbt = jnp.swapaxes(cb, 1, 2)                                # (C, D, K)
    c2 = jnp.sum(cb * cb, axis=-1)[:, None, :]                  # (C, 1, K)

    if use_bf16_mlp:
        we1, we2, wd1, wd2 = (w.astype(jnp.bfloat16)
                              for w in (we1, we2, wd1, wd2))

    kernel = functools.partial(
        rqvae_kernel, n_codebook=n_codebook, k=k,
        inv_total_elems=1.0 / float(B * D))

    full = lambda shape: pl.BlockSpec(shape, lambda i: (0,) * len(shape))

    flops = (4 * B * D * (F + D)                    # encoder + decoder MLPs
             + 4 * B * D * k * n_codebook)          # distance + gather matmuls
    bytes_accessed = 4 * (2 * B * F                       # x in, x_recon out
                          + 2 * F * D + 2 * D * D         # MLP weights
                          + n_codebook * k * (2 * D + 1)  # cb + cbT + norms
                          + 3 * D + F                     # biases
                          + B * n_codebook                # indices
                          + num_tiles * _LOSS_LANES)      # loss partials

    x_recon, ind_t, loss_tiles = pl.pallas_call(
        kernel,
        out_shape=(
            jax.ShapeDtypeStruct((B, F), jnp.float32),
            jax.ShapeDtypeStruct((n_codebook, B), jnp.int32),   # lane-dense ind
            jax.ShapeDtypeStruct((num_tiles, 1, _LOSS_LANES), jnp.float32),
        ),
        grid=(num_tiles,),
        in_specs=[
            pl.BlockSpec((tb, F), lambda i: (i, 0)),            # x batch tile
            full(we1.shape), full(be1.shape),                   # enc linear 1
            full(we2.shape), full(be2.shape),                   # enc linear 2
            full(cb.shape),                                     # codebooks (K, D)
            full(cbt.shape),                                    # codebooks (D, K)
            full(c2.shape),                                     # ||codebook||^2
            full(wd1.shape), full(bd1.shape),                   # dec linear 1
            full(wd2.shape), full(bd2.shape),                   # dec linear 2
        ],
        out_specs=(
            pl.BlockSpec((tb, F), lambda i: (i, 0)),
            pl.BlockSpec((n_codebook, tb), lambda i: (0, i)),
            pl.BlockSpec((1, 1, _LOSS_LANES), lambda i: (i, 0, 0)),
        ),
        compiler_params=pltpu.CompilerParams(
            dimension_semantics=("parallel",)),                 # tiles independent
        cost_estimate=pl.CostEstimate(
            flops=flops, transcendentals=0, bytes_accessed=bytes_accessed),
    )(x, we1, be1, we2, be2, cb, cbt, c2, wd1, bd1, wd2, bd2)

    loss = jnp.sum(loss_tiles[:, 0, 0])
    return x_recon, ind_t.T, loss


def rqvae_reference(x, params, *, k, n_codebook):
    """Pure-JAX reference mirroring the PyTorch forward.

    The codebook argmin uses the expanded form ||c||^2 - 2<r,c> (identical to
    argmin ||r - c||^2 in exact arithmetic) with HIGHEST matmul precision so
    near-tie rounding cannot produce spurious index mismatches vs the kernel.
    """
    we1, be1, we2, be2, cb, wd1, bd1, wd2, bd2 = params
    hi = lax.Precision.HIGHEST
    h = jnp.maximum(jnp.dot(x, we1, precision=hi) + be1, 0.0)
    z = jnp.dot(h, we2, precision=hi) + be2
    residual = z
    q_sum = jnp.zeros_like(z)
    c2 = jnp.sum(cb * cb, axis=-1)
    inds = []
    loss = 0.0
    for c in range(n_codebook):
        cbk = cb[c]
        score = c2[c][None, :] - 2.0 * jnp.dot(residual, cbk.T, precision=hi)
        idx = jnp.argmin(score, axis=-1)
        z_q = cbk[idx]
        loss = loss + 2.0 * jnp.mean((z_q - residual) ** 2)
        residual = residual - z_q
        q_sum = q_sum + z_q
        inds.append(idx.astype(jnp.int32))
    h2 = jnp.maximum(jnp.dot(q_sum, wd1, precision=hi) + bd1, 0.0)
    xr = jnp.dot(h2, wd2, precision=hi) + bd2
    return xr, jnp.stack(inds, axis=1), loss


def init_params(key, in_features, hidden_dim, k, n_codebook):
    ks = jax.random.split(key, 9)

    def lin(kk, fan_in, fan_out):
        bound = 1.0 / np.sqrt(fan_in)
        w = jax.random.uniform(kk, (fan_in, fan_out), jnp.float32, -bound, bound)
        b = jax.random.uniform(jax.random.fold_in(kk, 1), (1, fan_out),
                               jnp.float32, -bound, bound)
        return w, b

    we1, be1 = lin(ks[0], in_features, hidden_dim)   # encoder Linear(in, hidden)
    we2, be2 = lin(ks[1], hidden_dim, hidden_dim)    # encoder Linear(hidden, hidden)
    cb = jax.random.uniform(ks[2], (n_codebook, k, hidden_dim),
                            jnp.float32, -1.0 / k, 1.0 / k)
    wd1, bd1 = lin(ks[3], hidden_dim, hidden_dim)    # decoder Linear(hidden, hidden)
    wd2, bd2 = lin(ks[4], hidden_dim, in_features)   # decoder Linear(hidden, in)
    return (we1, be1, we2, be2, cb, wd1, bd1, wd2, bd2)


if __name__ == "__main__":
    IN_FEATURES = 128
    HIDDEN = 128
    K = 256
    N_CODEBOOK = 3
    B = 256          # small, but gives a 2-step grid at the tuned tile size
    TB = 128

    key = jax.random.PRNGKey(0)
    kx, kp = jax.random.split(key)
    x = jax.random.normal(kx, (B, IN_FEATURES), jnp.float32)
    params = init_params(kp, IN_FEATURES, HIDDEN, K, N_CODEBOOK)

    fwd = jax.jit(functools.partial(
        rqvae_forward, hidden_dim=HIDDEN, k=K, n_codebook=N_CODEBOOK, tb=TB))
    x_recon, ind, vq_loss = fwd(x, params)
    jax.block_until_ready((x_recon, ind, vq_loss))

    xr_exp, ind_exp, loss_exp = rqvae_reference(
        x, params, k=K, n_codebook=N_CODEBOOK)
    np.testing.assert_allclose(np.asarray(x_recon), np.asarray(xr_exp),
                               rtol=1e-4, atol=1e-5)
    np.testing.assert_array_equal(np.asarray(ind), np.asarray(ind_exp))
    np.testing.assert_allclose(float(vq_loss), float(loss_exp),
                               rtol=1e-4, atol=1e-5)

    print("KERNEL_OK")
</pallas_src>

<mosaic_0001>
module attributes {stable_mosaic.version = 11 : i64} {
  func.func @rqvae_kernel(%arg0: i32, %arg1: memref<128x128xf32, #tpu.memory_space<vmem>>, %arg2: memref<128x128xf32, #tpu.memory_space<vmem>>, %arg3: memref<1x128xf32, #tpu.memory_space<vmem>>, %arg4: memref<128x128xf32, #tpu.memory_space<vmem>>, %arg5: memref<1x128xf32, #tpu.memory_space<vmem>>, %arg6: memref<3x256x128xf32, #tpu.memory_space<vmem>>, %arg7: memref<3x128x256xf32, #tpu.memory_space<vmem>>, %arg8: memref<3x1x256xf32, #tpu.memory_space<vmem>>, %arg9: memref<128x128xf32, #tpu.memory_space<vmem>>, %arg10: memref<1x128xf32, #tpu.memory_space<vmem>>, %arg11: memref<128x128xf32, #tpu.memory_space<vmem>>, %arg12: memref<1x128xf32, #tpu.memory_space<vmem>>, %arg13: memref<128x128xf32, #tpu.memory_space<vmem>>, %arg14: memref<3x128xi32, #tpu.memory_space<vmem>>, %arg15: memref<1x1x128xf32, #tpu.memory_space<vmem>>) attributes {dimension_semantics = [#tpu.dimension_semantics<parallel>], iteration_bounds = array<i64: 2>, scalar_prefetch = 0 : i64, scratch_operands = 0 : i64, tpu.core_type = #tpu.core_type<tc>, window_params = [{transform_indices = @transform_0, window_bounds = array<i64: 128, 128>}, {pipeline_mode = #tpu.pipeline_mode<synchronous>, transform_indices = @transform_1, window_bounds = array<i64: 128, 128>}, {pipeline_mode = #tpu.pipeline_mode<synchronous>, transform_indices = @transform_2, window_bounds = array<i64: 1, 128>}, {pipeline_mode = #tpu.pipeline_mode<synchronous>, transform_indices = @transform_3, window_bounds = array<i64: 128, 128>}, {pipeline_mode = #tpu.pipeline_mode<synchronous>, transform_indices = @transform_4, window_bounds = array<i64: 1, 128>}, {pipeline_mode = #tpu.pipeline_mode<synchronous>, transform_indices = @transform_5, window_bounds = array<i64: 3, 256, 128>}, {pipeline_mode = #tpu.pipeline_mode<synchronous>, transform_indices = @transform_6, window_bounds = array<i64: 3, 128, 256>}, {pipeline_mode = #tpu.pipeline_mode<synchronous>, transform_indices = @transform_7, window_bounds = array<i64: 3, 1, 256>}, {pipeline_mode = #tpu.pipeline_mode<synchronous>, transform_indices = @transform_8, window_bounds = array<i64: 128, 128>}, {pipeline_mode = #tpu.pipeline_mode<synchronous>, transform_indices = @transform_9, window_bounds = array<i64: 1, 128>}, {pipeline_mode = #tpu.pipeline_mode<synchronous>, transform_indices = @transform_10, window_bounds = array<i64: 128, 128>}, {pipeline_mode = #tpu.pipeline_mode<synchronous>, transform_indices = @transform_11, window_bounds = array<i64: 1, 128>}, {transform_indices = @transform_12, window_bounds = array<i64: 128, 128>}, {transform_indices = @transform_13, window_bounds = array<i64: 3, 128>}, {transform_indices = @transform_14, window_bounds = array<i64: 1, 1, 128>}]} {
    %c0 = arith.constant 0 : index
    %c0_0 = arith.constant 0 : index
    %0 = vector.load %arg1[%c0, %c0_0] : memref<128x128xf32, #tpu.memory_space<vmem>>, vector<128x128xf32>
    %c0_1 = arith.constant 0 : index
    %c0_2 = arith.constant 0 : index
    %1 = vector.load %arg2[%c0_1, %c0_2] : memref<128x128xf32, #tpu.memory_space<vmem>>, vector<128x128xf32>
    %cst = arith.constant dense<0.000000e+00> : vector<128x128xf32>
    %2 = tpu.matmul %0, %1, %cst {dimension_numbers = #tpu.dot_dimension_numbers<[1], [0], [0], [1], [0, 0, 1, 1], [], []>} : vector<128x128xf32>, vector<128x128xf32>, vector<128x128xf32> -> vector<128x128xf32>
    %c0_3 = arith.constant 0 : index
    %c0_4 = arith.constant 0 : index
    %3 = vector.load %arg3[%c0_3, %c0_4] : memref<1x128xf32, #tpu.memory_space<vmem>>, vector<1x128xf32>
    %4 = vector.broadcast %3 : vector<1x128xf32> to vector<128x128xf32>
    %5 = arith.addf %2, %4 : vector<128x128xf32>
    %cst_5 = arith.constant 0.000000e+00 : f32
    %6 = vector.broadcast %cst_5 : f32 to vector<128x128xf32>
    %7 = arith.maximumf %5, %6 : vector<128x128xf32>
    %c0_6 = arith.constant 0 : index
    %c0_7 = arith.constant 0 : index
    %8 = vector.load %arg4[%c0_6, %c0_7] : memref<128x128xf32, #tpu.memory_space<vmem>>, vector<128x128xf32>
    %cst_8 = arith.constant dense<0.000000e+00> : vector<128x128xf32>
    %9 = tpu.matmul %7, %8, %cst_8 {dimension_numbers = #tpu.dot_dimension_numbers<[1], [0], [0], [1], [0, 0, 1, 1], [], []>} : vector<128x128xf32>, vector<128x128xf32>, vector<128x128xf32> -> vector<128x128xf32>
    %c0_9 = arith.constant 0 : index
    %c0_10 = arith.constant 0 : index
    %10 = vector.load %arg5[%c0_9, %c0_10] : memref<1x128xf32, #tpu.memory_space<vmem>>, vector<1x128xf32>
    %11 = vector.broadcast %10 : vector<1x128xf32> to vector<128x128xf32>
    %12 = arith.addf %9, %11 : vector<128x128xf32>
    %cst_11 = arith.constant 0.000000e+00 : f32
    %13 = vector.broadcast %cst_11 : f32 to vector<128x128xf32>
    %cst_12 = arith.constant 0.000000e+00 : f32
    %14 = vector.broadcast %cst_12 : f32 to vector<1x1xf32>
    %c0_13 = arith.constant 0 : index
    %c0_14 = arith.constant 0 : index
    %c0_15 = arith.constant 0 : index
    %15 = vector.load %arg6[%c0_13, %c0_14, %c0_15] : memref<3x256x128xf32, #tpu.memory_space<vmem>>, vector<1x256x128xf32>
    %16 = vector.shape_cast %15 : vector<1x256x128xf32> to vector<256x128xf32>
    %c0_16 = arith.constant 0 : index
    %c0_17 = arith.constant 0 : index
    %c0_18 = arith.constant 0 : index
    %17 = vector.load %arg7[%c0_16, %c0_17, %c0_18] : memref<3x128x256xf32, #tpu.memory_space<vmem>>, vector<1x128x256xf32>
    %18 = vector.shape_cast %17 : vector<1x128x256xf32> to vector<128x256xf32>
    %c0_19 = arith.constant 0 : index
    %c0_20 = arith.constant 0 : index
    %c0_21 = arith.constant 0 : index
    %19 = vector.load %arg8[%c0_19, %c0_20, %c0_21] : memref<3x1x256xf32, #tpu.memory_space<vmem>>, vector<1x1x256xf32>
    %20 = vector.shape_cast %19 : vector<1x1x256xf32> to vector<1x256xf32>
    %cst_22 = arith.constant dense<0.000000e+00> : vector<128x256xf32>
    %21 = tpu.matmul %12, %18, %cst_22 {dimension_numbers = #tpu.dot_dimension_numbers<[1], [0], [0], [1], [0, 0, 1, 1], [], []>} : vector<128x128xf32>, vector<128x256xf32>, vector<128x256xf32> -> vector<128x256xf32>
    %cst_23 = arith.constant 2.000000e+00 : f32
    %22 = vector.broadcast %cst_23 : f32 to vector<128x256xf32>
    %23 = arith.mulf %22, %21 : vector<128x256xf32>
    %24 = vector.broadcast %20 : vector<1x256xf32> to vector<128x256xf32>
    %25 = arith.subf %24, %23 : vector<128x256xf32>
    %26 = tpu.iota {dimensions = array<i32: 1>} : vector<128x256xi32>
    %cst_24 = arith.constant dense<0x7F800000> : vector<128xf32>
    %27 = vector.multi_reduction <minimumf>, %25, %cst_24 [1] : vector<128x256xf32> to vector<128xf32>
    %28 = vector.shape_cast %27 : vector<128xf32> to vector<128x1xf32>
    %29 = vector.broadcast %28 : vector<128x1xf32> to vector<128x256xf32>
    %30 = arith.cmpf oeq, %25, %29 : vector<128x256xf32>
    %c256_i32 = arith.constant 256 : i32
    %31 = vector.broadcast %c256_i32 : i32 to vector<128x256xi32>
    %32 = arith.select %30, %26, %31 : vector<128x256xi1>, vector<128x256xi32>
    %cst_25 = arith.constant dense<2147483647> : vector<128xi32>
    %33 = vector.multi_reduction <minsi>, %32, %cst_25 [1] : vector<128x256xi32> to vector<128xi32>
    %34 = vector.shape_cast %33 : vector<128xi32> to vector<128x1xi32>
    %35 = vector.broadcast %34 : vector<128x1xi32> to vector<128x256xi32>
    %36 = arith.cmpi eq, %26, %35 : vector<128x256xi32>
    %37 = arith.extui %36 : vector<128x256xi1> to vector<128x256xi32>
    %38 = arith.sitofp %37 : vector<128x256xi32> to vector<128x256xf32>
    %cst_26 = arith.constant dense<0.000000e+00> : vector<128x128xf32>
    %39 = tpu.matmul %38, %16, %cst_26 {dimension_numbers = #tpu.dot_dimension_numbers<[1], [0], [0], [1], [0, 0, 1, 1], [], []>} : vector<128x256xf32>, vector<256x128xf32>, vector<128x128xf32> -> vector<128x128xf32>
    %40 = arith.subf %39, %12 : vector<128x128xf32>
    %41 = arith.mulf %40, %40 : vector<128x128xf32>
    %42 = vector.shape_cast %41 : vector<128x128xf32> to vector<1x128x128xf32>
    %cst_27 = arith.constant dense<0.000000e+00> : vector<1xf32>
    %43 = vector.multi_reduction <add>, %42, %cst_27 [1, 2] : vector<1x128x128xf32> to vector<1xf32>
    %44 = vector.shape_cast %43 : vector<1xf32> to vector<1x1x1xf32>
    %45 = vector.extract %44[0, 0, 0] : f32 from vector<1x1x1xf32>
    %cst_28 = arith.constant 2.000000e+00 : f32
    %46 = arith.mulf %cst_28, %45 : f32
    %47 = vector.broadcast %46 : f32 to vector<1x1xf32>
    %48 = arith.addf %14, %47 : vector<1x1xf32>
    %49 = arith.subf %12, %39 : vector<128x128xf32>
    %50 = arith.addf %13, %39 : vector<128x128xf32>
    %c0_29 = arith.constant 0 : index
    %c0_30 = arith.constant 0 : index
    %51 = vector.load %arg14[%c0_29, %c0_30] : memref<3x128xi32, #tpu.memory_space<vmem>>, vector<1x128xi32>
    %52 = vector.shape_cast %51 : vector<1x128xi32> to vector<128xi32>
    %53 = vector.shape_cast %33 : vector<128xi32> to vector<1x128xi32>
    tpu.vector_store %arg14[%c0_29, %c0_30], %53 {strides = array<i32>} : memref<3x128xi32, #tpu.memory_space<vmem>>, vector<1x128xi32>,
    %c1 = arith.constant 1 : index
    %c0_31 = arith.constant 0 : index
    %c0_32 = arith.constant 0 : index
    %54 = vector.load %arg6[%c1, %c0_31, %c0_32] : memref<3x256x128xf32, #tpu.memory_space<vmem>>, vector<1x256x128xf32>
    %55 = vector.shape_cast %54 : vector<1x256x128xf32> to vector<256x128xf32>
    %c1_33 = arith.constant 1 : index
    %c0_34 = arith.constant 0 : index
    %c0_35 = arith.constant 0 : index
    %56 = vector.load %arg7[%c1_33, %c0_34, %c0_35] : memref<3x128x256xf32, #tpu.memory_space<vmem>>, vector<1x128x256xf32>
    %57 = vector.shape_cast %56 : vector<1x128x256xf32> to vector<128x256xf32>
    %c1_36 = arith.constant 1 : index
    %c0_37 = arith.constant 0 : index
    %c0_38 = arith.constant 0 : index
    %58 = vector.load %arg8[%c1_36, %c0_37, %c0_38] : memref<3x1x256xf32, #tpu.memory_space<vmem>>, vector<1x1x256xf32>
    %59 = vector.shape_cast %58 : vector<1x1x256xf32> to vector<1x256xf32>
    %cst_39 = arith.constant dense<0.000000e+00> : vector<128x256xf32>
    %60 = tpu.matmul %49, %57, %cst_39 {dimension_numbers = #tpu.dot_dimension_numbers<[1], [0], [0], [1], [0, 0, 1, 1], [], []>} : vector<128x128xf32>, vector<128x256xf32>, vector<128x256xf32> -> vector<128x256xf32>
    %cst_40 = arith.constant 2.000000e+00 : f32
    %61 = vector.broadcast %cst_40 : f32 to vector<128x256xf32>
    %62 = arith.mulf %61, %60 : vector<128x256xf32>
    %63 = vector.broadcast %59 : vector<1x256xf32> to vector<128x256xf32>
    %64 = arith.subf %63, %62 : vector<128x256xf32>
    %65 = tpu.iota {dimensions = array<i32: 1>} : vector<128x256xi32>
    %cst_41 = arith.constant dense<0x7F800000> : vector<128xf32>
    %66 = vector.multi_reduction <minimumf>, %64, %cst_41 [1] : vector<128x256xf32> to vector<128xf32>
    %67 = vector.shape_cast %66 : vector<128xf32> to vector<128x1xf32>
    %68 = vector.broadcast %67 : vector<128x1xf32> to vector<128x256xf32>
    %69 = arith.cmpf oeq, %64, %68 : vector<128x256xf32>
    %c256_i32_42 = arith.constant 256 : i32
    %70 = vector.broadcast %c256_i32_42 : i32 to vector<128x256xi32>
    %71 = arith.select %69, %65, %70 : vector<128x256xi1>, vector<128x256xi32>
    %cst_43 = arith.constant dense<2147483647> : vector<128xi32>
    %72 = vector.multi_reduction <minsi>, %71, %cst_43 [1] : vector<128x256xi32> to vector<128xi32>
    %73 = vector.shape_cast %72 : vector<128xi32> to vector<128x1xi32>
    %74 = vector.broadcast %73 : vector<128x1xi32> to vector<128x256xi32>
    %75 = arith.cmpi eq, %65, %74 : vector<128x256xi32>
    %76 = arith.extui %75 : vector<128x256xi1> to vector<128x256xi32>
    %77 = arith.sitofp %76 : vector<128x256xi32> to vector<128x256xf32>
    %cst_44 = arith.constant dense<0.000000e+00> : vector<128x128xf32>
    %78 = tpu.matmul %77, %55, %cst_44 {dimension_numbers = #tpu.dot_dimension_numbers<[1], [0], [0], [1], [0, 0, 1, 1], [], []>} : vector<128x256xf32>, vector<256x128xf32>, vector<128x128xf32> -> vector<128x128xf32>
    %79 = arith.subf %78, %49 : vector<128x128xf32>
    %80 = arith.mulf %79, %79 : vector<128x128xf32>
    %81 = vector.shape_cast %80 : vector<128x128xf32> to vector<1x128x128xf32>
    %cst_45 = arith.constant dense<0.000000e+00> : vector<1xf32>
    %82 = vector.multi_reduction <add>, %81, %cst_45 [1, 2] : vector<1x128x128xf32> to vector<1xf32>
    %83 = vector.shape_cast %82 : vector<1xf32> to vector<1x1x1xf32>
    %84 = vector.extract %83[0, 0, 0] : f32 from vector<1x1x1xf32>
    %cst_46 = arith.constant 2.000000e+00 : f32
    %85 = arith.mulf %cst_46, %84 : f32
    %86 = vector.broadcast %85 : f32 to vector<1x1xf32>
    %87 = arith.addf %48, %86 : vector<1x1xf32>
    %88 = arith.subf %49, %78 : vector<128x128xf32>
    %89 = arith.addf %50, %78 : vector<128x128xf32>
    %c1_47 = arith.constant 1 : index
    %c0_48 = arith.constant 0 : index
    %90 = vector.load %arg14[%c1_47, %c0_48] : memref<3x128xi32, #tpu.memory_space<vmem>>, vector<1x128xi32>
    %91 = vector.shape_cast %90 : vector<1x128xi32> to vector<128xi32>
    %92 = vector.shape_cast %72 : vector<128xi32> to vector<1x128xi32>
    tpu.vector_store %arg14[%c1_47, %c0_48], %92 {strides = array<i32>} : memref<3x128xi32, #tpu.memory_space<vmem>>, vector<1x128xi32>,
    %c2 = arith.constant 2 : index
    %c0_49 = arith.constant 0 : index
    %c0_50 = arith.constant 0 : index
    %93 = vector.load %arg6[%c2, %c0_49, %c0_50] : memref<3x256x128xf32, #tpu.memory_space<vmem>>, vector<1x256x128xf32>
    %94 = vector.shape_cast %93 : vector<1x256x128xf32> to vector<256x128xf32>
    %c2_51 = arith.constant 2 : index
    %c0_52 = arith.constant 0 : index
    %c0_53 = arith.constant 0 : index
    %95 = vector.load %arg7[%c2_51, %c0_52, %c0_53] : memref<3x128x256xf32, #tpu.memory_space<vmem>>, vector<1x128x256xf32>
    %96 = vector.shape_cast %95 : vector<1x128x256xf32> to vector<128x256xf32>
    %c2_54 = arith.constant 2 : index
    %c0_55 = arith.constant 0 : index
    %c0_56 = arith.constant 0 : index
    %97 = vector.load %arg8[%c2_54, %c0_55, %c0_56] : memref<3x1x256xf32, #tpu.memory_space<vmem>>, vector<1x1x256xf32>
    %98 = vector.shape_cast %97 : vector<1x1x256xf32> to vector<1x256xf32>
    %cst_57 = arith.constant dense<0.000000e+00> : vector<128x256xf32>
    %99 = tpu.matmul %88, %96, %cst_57 {dimension_numbers = #tpu.dot_dimension_numbers<[1], [0], [0], [1], [0, 0, 1, 1], [], []>} : vector<128x128xf32>, vector<128x256xf32>, vector<128x256xf32> -> vector<128x256xf32>
    %cst_58 = arith.constant 2.000000e+00 : f32
    %100 = vector.broadcast %cst_58 : f32 to vector<128x256xf32>
    %101 = arith.mulf %100, %99 : vector<128x256xf32>
    %102 = vector.broadcast %98 : vector<1x256xf32> to vector<128x256xf32>
    %103 = arith.subf %102, %101 : vector<128x256xf32>
    %104 = tpu.iota {dimensions = array<i32: 1>} : vector<128x256xi32>
    %cst_59 = arith.constant dense<0x7F800000> : vector<128xf32>
    %105 = vector.multi_reduction <minimumf>, %103, %cst_59 [1] : vector<128x256xf32> to vector<128xf32>
    %106 = vector.shape_cast %105 : vector<128xf32> to vector<128x1xf32>
    %107 = vector.broadcast %106 : vector<128x1xf32> to vector<128x256xf32>
    %108 = arith.cmpf oeq, %103, %107 : vector<128x256xf32>
    %c256_i32_60 = arith.constant 256 : i32
    %109 = vector.broadcast %c256_i32_60 : i32 to vector<128x256xi32>
    %110 = arith.select %108, %104, %109 : vector<128x256xi1>, vector<128x256xi32>
    %cst_61 = arith.constant dense<2147483647> : vector<128xi32>
    %111 = vector.multi_reduction <minsi>, %110, %cst_61 [1] : vector<128x256xi32> to vector<128xi32>
    %112 = vector.shape_cast %111 : vector<128xi32> to vector<128x1xi32>
    %113 = vector.broadcast %112 : vector<128x1xi32> to vector<128x256xi32>
    %114 = arith.cmpi eq, %104, %113 : vector<128x256xi32>
    %115 = arith.extui %114 : vector<128x256xi1> to vector<128x256xi32>
    %116 = arith.sitofp %115 : vector<128x256xi32> to vector<128x256xf32>
    %cst_62 = arith.constant dense<0.000000e+00> : vector<128x128xf32>
    %117 = tpu.matmul %116, %94, %cst_62 {dimension_numbers = #tpu.dot_dimension_numbers<[1], [0], [0], [1], [0, 0, 1, 1], [], []>} : vector<128x256xf32>, vector<256x128xf32>, vector<128x128xf32> -> vector<128x128xf32>
    %118 = arith.subf %117, %88 : vector<128x128xf32>
    %119 = arith.mulf %118, %118 : vector<128x128xf32>
    %120 = vector.shape_cast %119 : vector<128x128xf32> to vector<1x128x128xf32>
    %cst_63 = arith.constant dense<0.000000e+00> : vector<1xf32>
    %121 = vector.multi_reduction <add>, %120, %cst_63 [1, 2] : vector<1x128x128xf32> to vector<1xf32>
    %122 = vector.shape_cast %121 : vector<1xf32> to vector<1x1x1xf32>
    %123 = vector.extract %122[0, 0, 0] : f32 from vector<1x1x1xf32>
    %cst_64 = arith.constant 2.000000e+00 : f32
    %124 = arith.mulf %cst_64, %123 : f32
    %125 = vector.broadcast %124 : f32 to vector<1x1xf32>
    %126 = arith.addf %87, %125 : vector<1x1xf32>
    %127 = arith.addf %89, %117 : vector<128x128xf32>
    %c2_65 = arith.constant 2 : index
    %c0_66 = arith.constant 0 : index
    %128 = vector.load %arg14[%c2_65, %c0_66] : memref<3x128xi32, #tpu.memory_space<vmem>>, vector<1x128xi32>
    %129 = vector.shape_cast %128 : vector<1x128xi32> to vector<128xi32>
    %130 = vector.shape_cast %111 : vector<128xi32> to vector<1x128xi32>
    tpu.vector_store %arg14[%c2_65, %c0_66], %130 {strides = array<i32>} : memref<3x128xi32, #tpu.memory_space<vmem>>, vector<1x128xi32>,
    %c0_67 = arith.constant 0 : index
    %c0_68 = arith.constant 0 : index
    %131 = vector.load %arg9[%c0_67, %c0_68] : memref<128x128xf32, #tpu.memory_space<vmem>>, vector<128x128xf32>
    %cst_69 = arith.constant dense<0.000000e+00> : vector<128x128xf32>
    %132 = tpu.matmul %127, %131, %cst_69 {dimension_numbers = #tpu.dot_dimension_numbers<[1], [0], [0], [1], [0, 0, 1, 1], [], []>} : vector<128x128xf32>, vector<128x128xf32>, vector<128x128xf32> -> vector<128x128xf32>
    %c0_70 = arith.constant 0 : index
    %c0_71 = arith.constant 0 : index
    %133 = vector.load %arg10[%c0_70, %c0_71] : memref<1x128xf32, #tpu.memory_space<vmem>>, vector<1x128xf32>
    %134 = vector.broadcast %133 : vector<1x128xf32> to vector<128x128xf32>
    %135 = arith.addf %132, %134 : vector<128x128xf32>
    %cst_72 = arith.constant 0.000000e+00 : f32
    %136 = vector.broadcast %cst_72 : f32 to vector<128x128xf32>
    %137 = arith.maximumf %135, %136 : vector<128x128xf32>
    %c0_73 = arith.constant 0 : index
    %c0_74 = arith.constant 0 : index
    %138 = vector.load %arg11[%c0_73, %c0_74] : memref<128x128xf32, #tpu.memory_space<vmem>>, vector<128x128xf32>
    %cst_75 = arith.constant dense<0.000000e+00> : vector<128x128xf32>
    %139 = tpu.matmul %137, %138, %cst_75 {dimension_numbers = #tpu.dot_dimension_numbers<[1], [0], [0], [1], [0, 0, 1, 1], [], []>} : vector<128x128xf32>, vector<128x128xf32>, vector<128x128xf32> -> vector<128x128xf32>
    %c0_76 = arith.constant 0 : index
    %c0_77 = arith.constant 0 : index
    %140 = vector.load %arg12[%c0_76, %c0_77] : memref<1x128xf32, #tpu.memory_space<vmem>>, vector<1x128xf32>
    %141 = vector.broadcast %140 : vector<1x128xf32> to vector<128x128xf32>
    %142 = arith.addf %139, %141 : vector<128x128xf32>
    %c0_78 = arith.constant 0 : index
    %c0_79 = arith.constant 0 : index
    %143 = vector.load %arg13[%c0_78, %c0_79] : memref<128x128xf32, #tpu.memory_space<vmem>>, vector<128x128xf32>
    tpu.vector_store %arg13[%c0_78, %c0_79], %142 {strides = array<i32>} : memref<128x128xf32, #tpu.memory_space<vmem>>, vector<128x128xf32>,
    %cst_80 = arith.constant 3.05175781E-5 : f32
    %144 = vector.broadcast %cst_80 : f32 to vector<1x1xf32>
    %145 = arith.mulf %126, %144 : vector<1x1xf32>
    %146 = vector.shape_cast %145 : vector<1x1xf32> to vector<1x1x1xf32>
    %147 = vector.shape_cast %146 : vector<1x1x1xf32> to vector<1x1x1xf32>
    %148 = vector.broadcast %147 : vector<1x1x1xf32> to vector<1x1x128xf32>
    %c0_81 = arith.constant 0 : index
    %c0_82 = arith.constant 0 : index
    %c0_83 = arith.constant 0 : index
    %149 = vector.load %arg15[%c0_81, %c0_82, %c0_83] : memref<1x1x128xf32, #tpu.memory_space<vmem>>, vector<1x1x128xf32>
    tpu.vector_store %arg15[%c0_81, %c0_82, %c0_83], %148 {strides = array<i32>} : memref<1x1x128xf32, #tpu.memory_space<vmem>>, vector<1x1x128xf32>,
    return
  }
  func.func @transform_0(%arg0: i32) -> (i32, i32) {
    %c0_i32 = arith.constant 0 : i32
    %c0_i32_0 = arith.constant 0 : i32
    return %arg0, %c0_i32 : i32, i32
  }
  func.func @transform_1(%arg0: i32) -> (i32, i32) {
    %c0_i32 = arith.constant 0 : i32
    %c0_i32_0 = arith.constant 0 : i32
    %c0_i32_1 = arith.constant 0 : i32
    return %c0_i32, %c0_i32_0 : i32, i32
  }
  func.func @transform_2(%arg0: i32) -> (i32, i32) {
    %c0_i32 = arith.constant 0 : i32
    %c0_i32_0 = arith.constant 0 : i32
    %c0_i32_1 = arith.constant 0 : i32
    return %c0_i32, %c0_i32_0 : i32, i32
  }
  func.func @transform_3(%arg0: i32) -> (i32, i32) {
    %c0_i32 = arith.constant 0 : i32
    %c0_i32_0 = arith.constant 0 : i32
    %c0_i32_1 = arith.constant 0 : i32
    return %c0_i32, %c0_i32_0 : i32, i32
  }
  func.func @transform_4(%arg0: i32) -> (i32, i32) {
    %c0_i32 = arith.constant 0 : i32
    %c0_i32_0 = arith.constant 0 : i32
    %c0_i32_1 = arith.constant 0 : i32
    return %c0_i32, %c0_i32_0 : i32, i32
  }
  func.func @transform_5(%arg0: i32) -> (i32, i32, i32) {
    %c0_i32 = arith.constant 0 : i32
    %c0_i32_0 = arith.constant 0 : i32
    %c0_i32_1 = arith.constant 0 : i32
    %c0_i32_2 = arith.constant 0 : i32
    return %c0_i32, %c0_i32_0, %c0_i32_1 : i32, i32, i32
  }
  func.func @transform_6(%arg0: i32) -> (i32, i32, i32) {
    %c0_i32 = arith.constant 0 : i32
    %c0_i32_0 = arith.constant 0 : i32
    %c0_i32_1 = arith.constant 0 : i32
    %c0_i32_2 = arith.constant 0 : i32
    return %c0_i32, %c0_i32_0, %c0_i32_1 : i32, i32, i32
  }
  func.func @transform_7(%arg0: i32) -> (i32, i32, i32) {
    %c0_i32 = arith.constant 0 : i32
    %c0_i32_0 = arith.constant 0 : i32
    %c0_i32_1 = arith.constant 0 : i32
    %c0_i32_2 = arith.constant 0 : i32
    return %c0_i32, %c0_i32_0, %c0_i32_1 : i32, i32, i32
  }
  func.func @transform_8(%arg0: i32) -> (i32, i32) {
    %c0_i32 = arith.constant 0 : i32
    %c0_i32_0 = arith.constant 0 : i32
    %c0_i32_1 = arith.constant 0 : i32
    return %c0_i32, %c0_i32_0 : i32, i32
  }
  func.func @transform_9(%arg0: i32) -> (i32, i32) {
    %c0_i32 = arith.constant 0 : i32
    %c0_i32_0 = arith.constant 0 : i32
    %c0_i32_1 = arith.constant 0 : i32
    return %c0_i32, %c0_i32_0 : i32, i32
  }
  func.func @transform_10(%arg0: i32) -> (i32, i32) {
    %c0_i32 = arith.constant 0 : i32
    %c0_i32_0 = arith.constant 0 : i32
    %c0_i32_1 = arith.constant 0 : i32
    return %c0_i32, %c0_i32_0 : i32, i32
  }
  func.func @transform_11(%arg0: i32) -> (i32, i32) {
    %c0_i32 = arith.constant 0 : i32
    %c0_i32_0 = arith.constant 0 : i32
    %c0_i32_1 = arith.constant 0 : i32
    return %c0_i32, %c0_i32_0 : i32, i32
  }
  func.func @transform_12(%arg0: i32) -> (i32, i32) {
    %c0_i32 = arith.constant 0 : i32
    %c0_i32_0 = arith.constant 0 : i32
    return %arg0, %c0_i32 : i32, i32
  }
  func.func @transform_13(%arg0: i32) -> (i32, i32) {
    %c0_i32 = arith.constant 0 : i32
    %c0_i32_0 = arith.constant 0 : i32
    return %c0_i32, %arg0 : i32, i32
  }
  func.func @transform_14(%arg0: i32) -> (i32, i32, i32) {
    %c0_i32 = arith.constant 0 : i32
    %c0_i32_0 = arith.constant 0 : i32
    %c0_i32_1 = arith.constant 0 : i32
    return %arg0, %c0_i32, %c0_i32_0 : i32, i32, i32
  }
}

</mosaic_0001>

<bundles_post_ra>
// kernel: rqvae_forward.1
= control target key start
LH: loop header
LB: loop body
LE: loop exit
PB: predicated region body
PF: predicated region fallthrough
CT: control target
= control target key end

     0   :  { %20 = vsyncpa [#allocation3], 0  ;;  %s9142_s0 = inlined_call_operand.vmem [shape: f32[256,128], index: 0, kind: input, shape index: {}]   ;;  %s9143_s1 = inlined_call_operand.vmem [shape: f32[128,128], index: 1, kind: input, shape index: {}]   ;;  %s9144_s2 = inlined_call_operand.vmem [shape: f32[1,128], index: 2, kind: input, shape index: {}]   ;;  %s9145_s3 = inlined_call_operand.vmem [shape: f32[128,128], index: 3, kind: input, shape index: {}]   ;;  %s9146_s4 = inlined_call_operand.vmem [shape: f32[1,128], index: 4, kind: input, shape index: {}]   ;;  %s9147_s5 = inlined_call_operand.vmem [shape: f32[3,256,128], index: 5, kind: input, shape index: {}]   ;;  %s9148_s6 = inlined_call_operand.vmem [shape: f32[3,128,256], index: 6, kind: input, shape index: {}]   ;;  %s9149_s7 = inlined_call_operand.vmem [shape: f32[3,1,256], index: 7, kind: input, shape index: {}]   ;;  %s9150_s8 = inlined_call_operand.vmem [shape: f32[128,128], index: 8, kind: input, shape index: {}]   ;;  %s9151_s9 = inlined_call_operand.vmem [shape: f32[1,128], index: 9, kind: input, shape index: {}]   ;;  %s9152_s10 = inlined_call_operand.vmem [shape: f32[128,128], index: 10, kind: input, shape index: {}]   ;;  %s9153_s11 = inlined_call_operand.vmem [shape: f32[1,128], index: 11, kind: input, shape index: {}]   ;;  %s9154_s12 = inlined_call_operand.hbm [shape: f32[256,128], index: 12, kind: output, shape index: {0}]   ;;  %s9155_s13 = inlined_call_operand.hbm [shape: s32[3,256], index: 13, kind: output, shape index: {1}]   ;;  %s9156_s14 = inlined_call_operand.vmem [shape: f32[2,1,128], index: 14, kind: output, shape index: {2}]  }
   0x1   :  { %22 = vsyncpa [#allocation3 + $0x1], 0 }
   0x2   :  { %23 = vsyncpa [#allocation5], 0 }
   0x3   :  { %25 = vsyncpa [#allocation5 + $0x1], 0  ;;  %s6128_s29 = smov 0   ;;  %s6130_s30 = smov 0  }
   0x4   :  { %s6132_s15 = smov 0   ;;  %s6134_s16 = smov 0  }
   0x5 LB: > { %9288 = sst [smem:[#allocation8_spill]] %s6033_s29  ;;  %s6149_s17 = sadd.s32 4294967295, %s6045_s16   ;;  %s6045_s16 = sphi %s6134_s16, %s9487_s16   ;;  %s6041_s15 = sphi %s6132_s15, %s9489_s15   ;;  %s6037_s30 = sphi %s6130_s30, %s9491_s30   ;;  %s6033_s29 = sphi %s6128_s29, %s9490_s29  }
   0x6   : > { %9289 = sst [smem:[#allocation9_spill]] %s6041_s15  ;;  %s4643_s18 = sadd.s32 4294967294, %s6045_s16  }
   0x7   : > { %9290 = sst [smem:[#allocation10_spill]] %s6045_s16  ;;  %s6153_s19 = sadd.s32 1, %s6045_s16  }
   0x8   : > { %9291 = sst [smem:[#allocation11_spill]] %s6153_s19  ;;  %s295_s20 = sadd.s32 1, %s6041_s15 }
   0x9   : > { %s292_s21 = ssub.s32 %s6045_s16, %s6153_s19  ;;  %p305_p0 = scmp.ne.s32.totalorder %s6041_s15, %s6037_s30 }
   0xa   : > { %p293_p1 = scmp.eq.s32.totalorder %s292_s21, 0  ;;  %p306_p2 = scmp.eq.s32.totalorder %s6149_s17, 1 }
   0xb   : > { %p311_p3 = scmp.ne.s32.totalorder %s6037_s30, %s6033_s29  ;;  %p312_p4 = scmp.eq.s32.totalorder %s4643_s18, 1 }
   0xc   : > { %s6164_s22 = scalar_select %p293_p1, %s6041_s15, %s295_s20  }
   0xd   : > { %p6166_p5 = por %p306_p2, %p305_p0  ;;  %p6170_p6 = por %p312_p4, %p311_p3 }
   0xe   : > { %9292 = sst [smem:[#allocation12_spill]] %s6164_s22  ;;  %p4646_p7 = scmp.ge.s32.totalorder %s6045_s16, 1 }
   0xf   : > { %s9294_s24 = scalar_select %p6170_p6, 1, 0 }
  0x10   : > { %p424_p8 = scmp.lt.s32.totalorder %s6045_s16, 3 }
  0x11   : > { %9295 = sst [smem:[#allocation13_spill]] %s9294_s24 }
  0x12   : > { %p425_p9 = pnand %p4646_p7, %p424_p8 }
  0x14   : > { %428 = sbr.rel (%p425_p9) target bundleno = 3637 (0xe35), region = 68 }
  0x1b   : > { %v504_v0 = vld [vmem:[%s9143_s1] sm:$0xff]  ;;  %v505_v1 = vld [vmem:[%s9143_s1 + $0x8] sm:$0xff]  ;;  %v506_v2 = vld [vmem:[%s9143_s1 + $0x10] sm:$0xff]  ;;  %s4649_s21 = sshll.u32 %s6149_s17, 4  ;;  %s7259_s26 = sand.u32 1, %s6037_s30  }
  0x1c   : > { %v5577_v3 = vpack.c.bf16 %v505_v1, %v504_v0  ;;  %v507_v4 = vld [vmem:[%s9143_s1 + $0x18] sm:$0xff]  ;;  %p479_p10 = scmp.lt.s32.totalorder %s4649_s21, 31  ;;  %v508_v6 = vld [vmem:[%s9143_s1 + $0x20] sm:$0xff]  ;;  %v509_v7 = vld [vmem:[%s9143_s1 + $0x28] sm:$0xff]  ;;  %p485_p11 = scmp.lt.s32.totalorder %s6149_s17, 1 }
  0x1d   : > { %v5581_v5 = vpack.c.bf16 %v507_v4, %v506_v2  ;;  %v5585_v8 = vpack.c.bf16 %v509_v7, %v508_v6  ;;  %v510_v9 = vld [vmem:[%s9143_s1 + $0x30] sm:$0xff]  ;;  %v688_v10 = vld [vmem:[%s9145_s3] sm:$0xff]  ;;  %v689_v11 = vld [vmem:[%s9145_s3 + $0x8] sm:$0xff]  ;;  %s4981_s24 = sshll.u32 %s6149_s17, 6 }
  0x1e   : > { %5578 = vmatprep.subr.bf16.mxu0 %v5577_v3  ;;  %s9493_s21 = smov (!%p479_p10, %s4649_s21), 31  ;;  %v511_v12 = vld [vmem:[%s9143_s1 + $0x38] sm:$0xff]  ;;  %v5609_v13 = vpack.c.bf16 %v689_v11, %v688_v10  ;;  %v690_v14 = vld [vmem:[%s9145_s3 + $0x10] sm:$0xff]  ;;  %v512_v19 = vld [vmem:[%s9143_s1 + $0x40] sm:$0xff] }
  0x1f   : > { %5580 = vmatpush3.bf16.msra.mxu0 %v5577_v3  ;;  %s4650_s15 = sshll.u32 %s9493_s21, 3  ;;  %v691_v15 = vld [vmem:[%s9145_s3 + $0x18] sm:$0xff]  ;;  %v5589_v18 = vpack.c.bf16 %v511_v12, %v510_v9  ;;  %v513_v20 = vld [vmem:[%s9143_s1 + $0x48] sm:$0xff]  ;;  %v692_v21 = vld [vmem:[%s9145_s3 + $0x20] sm:$0xff] }
  0x20   : > { %5582 = vmatprep.subr.bf16.mxu0 %v5581_v5  ;;  %s6210_s16 = scalar_lea.vmem %s9142_s0, %s4650_s15  ;;  %v5613_v17 = vpack.c.bf16 %v691_v15, %v690_v14  ;;  %5610 = vmatprep.subr.bf16.mxu1 %v5609_v13  ;;  %v693_v22 = vld [vmem:[%s9145_s3 + $0x28] sm:$0xff]  ;;  %v694_v23 = vld [vmem:[%s9145_s3 + $0x30] sm:$0xff]  ;;  %v5593_v24 = vpack.c.bf16 %v513_v20, %v512_v19  ;;  %v695_v26 = vld [vmem:[%s9145_s3 + $0x38] sm:$0xff] }
  0x21   : > { %v488_v16 = vld [vmem:[%s6210_s16] sm:$0xff]  ;;  %5612 = vmatpush3.bf16.msra.mxu1 %v5609_v13  ;;  %v5617_v25 = vpack.c.bf16 %v693_v22, %v692_v21  ;;  %v514_v27 = vld [vmem:[%s9143_s1 + $0x50] sm:$0xff]  ;;  %v515_v28 = vld [vmem:[%s9143_s1 + $0x58] sm:$0xff]  ;;  %v5621_v29 = vpack.c.bf16 %v695_v26, %v694_v23  ;;  %s486_s22 = scalar_select %p485_p11, %s6149_s17, 1 }
  0x22   : > { %5385 = vmatprep.mubr.f32.mxu0 %v488_v16  ;;  %5614 = vmatprep.subr.bf16.mxu1 %v5613_v17  ;;  %v696_v30 = vld [vmem:[%s9145_s3 + $0x40] sm:$0xff]  ;;  %v697_v31 = vld [vmem:[%s9145_s3 + $0x48] sm:$0xff]  ;;  %v5597_v32 = vpack.c.bf16 %v515_v28, %v514_v27  ;;  %v698_v36 = vld [vmem:[%s9145_s3 + $0x50] sm:$0xff] }
  0x23   : > { %5584 = vmatpush3.bf16.msra.mxu0 %v5581_v5  ;;  %v516_v33 = vld [vmem:[%s9143_s1 + $0x60] sm:$0xff]  ;;  %v517_v34 = vld [vmem:[%s9143_s1 + $0x68] sm:$0xff]  ;;  %v5625_v35 = vpack.c.bf16 %v697_v31, %v696_v30  ;;  %v699_v37 = vld [vmem:[%s9145_s3 + $0x58] sm:$0xff]  ;;  %s487_s20 = scalar_lea.vmem %s9156_s14, %s486_s22  ;;  %s4498_s22 = scalar_lea.sflag [#allocation5], %s7259_s26 }
  0x24   : > { %5586 = vmatprep.subr.bf16.mxu0 %v5585_v8  ;;  %v5601_v38 = vpack.c.bf16 %v517_v34, %v516_v33  ;;  %v518_v39 = vld [vmem:[%s9143_s1 + $0x70] sm:$0xff]  ;;  %v519_v40 = vld [vmem:[%s9143_s1 + $0x78] sm:$0xff]  ;;  %v5629_v41 = vpack.c.bf16 %v699_v37, %v698_v36  ;;  %v700_v42 = vld [vmem:[%s9145_s3 + $0x60] sm:$0xff] }
  0x25   : > { %5616 = vmatpush3.bf16.msra.mxu1 %v5613_v17  ;;  %v701_v43 = vld [vmem:[%s9145_s3 + $0x68] sm:$0xff]  ;;  %v5605_v44 = vpack.c.bf16 %v519_v40, %v518_v39  ;;  %v490_v47 = vld [vmem:[%s6210_s16 + $0x10] sm:$0xff]  ;;  %v491_v48 = vld [vmem:[%s6210_s16 + $0x18] sm:$0xff] }
  0x26   : > { %5618 = vmatprep.subr.bf16.mxu1 %v5617_v25  ;;  %v5633_v45 = vpack.c.bf16 %v701_v43, %v700_v42  ;;  %v489_v46 = vld [vmem:[%s6210_s16 + $0x8] sm:$0xff]  ;;  %v492_v49 = vld [vmem:[%s6210_s16 + $0x20] sm:$0xff]  ;;  %v494_v51 = vld [vmem:[%s6210_s16 + $0x30] sm:$0xff] }
  0x27   : > { %5588 = vmatpush3.bf16.msra.mxu0 %v5585_v8  ;;  %v493_v50 = vld [vmem:[%s6210_s16 + $0x28] sm:$0xff]  ;;  %v495_v52 = vld [vmem:[%s6210_s16 + $0x38] sm:$0xff]  ;;  %v496_v53 = vld [vmem:[%s6210_s16 + $0x40] sm:$0xff] }
  0x28   : > { %5590 = vmatprep.subr.bf16.mxu0 %v5589_v18  ;;  %v497_v54 = vld [vmem:[%s6210_s16 + $0x48] sm:$0xff]  ;;  %v498_v55 = vld [vmem:[%s6210_s16 + $0x50] sm:$0xff]  ;;  %v499_v56 = vld [vmem:[%s6210_s16 + $0x58] sm:$0xff] }
  0x29   : > { %5620 = vmatpush3.bf16.msra.mxu1 %v5617_v25  ;;  %v500_v57 = vld [vmem:[%s6210_s16 + $0x60] sm:$0xff]  ;;  %v501_v58 = vld [vmem:[%s6210_s16 + $0x68] sm:$0xff]  ;;  %v502_v59 = vld [vmem:[%s6210_s16 + $0x70] sm:$0xff] }
  0x2a   : > { %5622 = vmatprep.subr.bf16.mxu1 %v5621_v29  ;;  %v503_v60 = vld [vmem:[%s6210_s16 + $0x78] sm:$0xff]  ;;  %v702_v61 = vld [vmem:[%s9145_s3 + $0x70] sm:$0xff]  ;;  %v889_v0 = vld [vmem:[%s9148_s6 + $0x8] sm:$0xff]  ;;  %s4648_s16 = sshll.u32 %s7259_s26, 2 }
  0x2b   : > { %5592 = vmatpush3.bf16.msra.mxu0 %v5589_v18  ;;  %v703_v62 = vld [vmem:[%s9145_s3 + $0x78] sm:$0xff]  ;;  %v888_v2 = vld [vmem:[%s9148_s6] sm:$0xff]  ;;  %v890_v4 = vld [vmem:[%s9148_s6 + $0x10] sm:$0xff]  ;;  %s7284_s21 = scalar_lea.vmem [#allocation4], %s4648_s16 }
  0x2c   : > { %5594 = vmatprep.subr.bf16.mxu0 %v5593_v24  ;;  %v5637_v63 = vpack.c.bf16 %v703_v62, %v702_v61  ;;  %v891_v1 = vld [vmem:[%s9148_s6 + $0x18] sm:$0xff]  ;;  %v893_v5 = vld [vmem:[%s9148_s6 + $0x28] sm:$0xff]  ;;  %v5643_v7 = vpack.c.bf16 %v890_v4, %v888_v2  ;;  %v892_v9 = vld [vmem:[%s9148_s6 + $0x20] sm:$0xff] }
  0x2d   : > { %5624 = vmatpush3.bf16.msra.mxu1 %v5621_v29  ;;  %v5641_v3 = vpack.c.bf16 %v891_v1, %v889_v0  ;;  %v895_v6 = vld [vmem:[%s9148_s6 + $0x38] sm:$0xff]  ;;  %v894_v10 = vld [vmem:[%s9148_s6 + $0x30] sm:$0xff]  ;;  %v897_v11 = vld [vmem:[%s9148_s6 + $0x48] sm:$0xff] }
  0x2e   : > { %5626 = vmatprep.subr.bf16.mxu1 %v5625_v35  ;;  %v5645_v8 = vpack.c.bf16 %v895_v6, %v893_v5  ;;  %v899_v12 = vld [vmem:[%s9148_s6 + $0x58] sm:$0xff]  ;;  %v5647_v13 = vpack.c.bf16 %v894_v10, %v892_v9  ;;  %v896_v15 = vld [vmem:[%s9148_s6 + $0x40] sm:$0xff]  ;;  %v898_v16 = vld [vmem:[%s9148_s6 + $0x50] sm:$0xff] }
  0x2f   : > { %5596 = vmatpush3.bf16.msra.mxu0 %v5593_v24  ;;  %v5649_v14 = vpack.c.bf16 %v899_v12, %v897_v11  ;;  %v901_v17 = vld [vmem:[%s9148_s6 + $0x68] sm:$0xff]  ;;  %v903_v18 = vld [vmem:[%s9148_s6 + $0x78] sm:$0xff]  ;;  %v5651_v19 = vpack.c.bf16 %v898_v16, %v896_v15  ;;  %v900_v21 = vld [vmem:[%s9148_s6 + $0x60] sm:$0xff] }
  0x30   : > { %5598 = vmatprep.subr.bf16.mxu0 %v5597_v32  ;;  %v5653_v20 = vpack.c.bf16 %v903_v18, %v901_v17  ;;  %v902_v22 = vld [vmem:[%s9148_s6 + $0x70] sm:$0xff]  ;;  %v905_v23 = vld [vmem:[%s9148_s6 + $0x88] sm:$0xff]  ;;  %v907_v24 = vld [vmem:[%s9148_s6 + $0x98] sm:$0xff] }
  0x31   : > { %5628 = vmatpush3.bf16.msra.mxu1 %v5625_v35  ;;  %v5655_v25 = vpack.c.bf16 %v902_v22, %v900_v21  ;;  %v5657_v26 = vpack.c.bf16 %v907_v24, %v905_v23  ;;  %v904_v27 = vld [vmem:[%s9148_s6 + $0x80] sm:$0xff]  ;;  %v906_v28 = vld [vmem:[%s9148_s6 + $0x90] sm:$0xff]  ;;  %v909_v29 = vld [vmem:[%s9148_s6 + $0xa8] sm:$0xff] }
  0x32   : > { %5630 = vmatprep.subr.bf16.mxu1 %v5629_v41  ;;  %v911_v30 = vld [vmem:[%s9148_s6 + $0xb8] sm:$0xff]  ;;  %v5659_v31 = vpack.c.bf16 %v906_v28, %v904_v27  ;;  %v908_v33 = vld [vmem:[%s9148_s6 + $0xa0] sm:$0xff]  ;;  %v910_v34 = vld [vmem:[%s9148_s6 + $0xb0] sm:$0xff] }
  0x33   : > { %5600 = vmatpush3.bf16.msra.mxu0 %v5597_v32  ;;  %v5661_v32 = vpack.c.bf16 %v911_v30, %v909_v29  ;;  %v913_v35 = vld [vmem:[%s9148_s6 + $0xc8] sm:$0xff]  ;;  %v915_v36 = vld [vmem:[%s9148_s6 + $0xd8] sm:$0xff]  ;;  %v5663_v37 = vpack.c.bf16 %v910_v34, %v908_v33  ;;  %v912_v39 = vld [vmem:[%s9148_s6 + $0xc0] sm:$0xff]  ;;  %v9163_v33 = vmov 0.0  }
  0x34   : > { %5602 = vmatprep.subr.bf16.mxu0 %v5601_v38  ;;  %v914_v40 = vld [vmem:[%s9148_s6 + $0xd0] sm:$0xff]  ;;  %v919_v42 = vld [vmem:[%s9148_s6 + $0xf8] sm:$0xff]  ;;  %v916_v30 = vld [vmem:[%s9148_s6 + $0xe0] sm:$0xff] }
  0x35   : > { %5632 = vmatpush3.bf16.msra.mxu1 %v5629_v41  ;;  %v917_v41 = vld [vmem:[%s9148_s6 + $0xe8] sm:$0xff]  ;;  %v5667_v43 = vpack.c.bf16 %v914_v40, %v912_v39  ;;  %v4652_v34 = vld [vmem:[%s9146_s4] ss:$0 sm:$0xff] }
  0x36   : > { %5634 = vmatprep.subr.bf16.mxu1 %v5633_v45 }
  0x37   : > { %5604 = vmatpush3.bf16.msra.mxu0 %v5601_v38  ;;  %v5665_v38 = vpack.c.bf16 %v915_v36, %v913_v35 }
  0x38   : > { %5606 = vmatprep.subr.bf16.mxu0 %v5605_v44 }
  0x39   : > { %5636 = vmatpush3.bf16.msra.mxu1 %v5633_v45  ;;  %v4651_v45 = vld [vmem:[%s9144_s2] ss:$0 sm:$0xff] }
  0x3a   : > { %5638 = vmatprep.subr.bf16.mxu1 %v5637_v63 }
  0x3b   : > { %5608 = vmatpush3.bf16.msra.mxu0 %v5605_v44  ;;  %v5669_v44 = vpack.c.bf16 %v919_v42, %v917_v41 }
  0x3c   : > { %5642 = vmatprep.subr.bf16.mxu0 %v5641_v3 }
  0x3d   : > { %5640 = vmatpush3.bf16.msra.mxu1 %v5637_v63 }
  0x3e   : > { %5386 = vmatmul.mubr.f32.vlgmr.msra.gmra.mrb[0].mxu0 %v489_v46 }
  0x3f   : > { %5388 = vmatprep.mubr.f32.mxu0 %v490_v47  ;;  %5644 = vmatpush1.bf16.msra.mxu0 %v5643_v7 }
  0x40   : > { %5646 = vmatprep.subr.bf16.mxu0 %v5645_v8 }
  0x42   : > { %5389 = vmatmul.mubr.f32.gmra.mrb[2].mxu0 %v491_v48 }
  0x43   : > { %5391 = vmatprep.mubr.f32.mxu0 %v492_v49  ;;  %5648 = vmatpush1.bf16.msra.mxu0 %v5647_v13 }
  0x44   : > { %5650 = vmatprep.subr.bf16.mxu0 %v5649_v14 }
  0x46   : > { %5392 = vmatmul.mubr.f32.gmra.mrb[4].mxu0 %v493_v50 }
  0x47   : > { %5394 = vmatprep.mubr.f32.mxu0 %v494_v51  ;;  %5652 = vmatpush1.bf16.msra.mxu0 %v5651_v19 }
  0x48   : > { %5654 = vmatprep.subr.bf16.mxu0 %v5653_v20 }
  0x4a   : > { %5395 = vmatmul.mubr.f32.gmra.mrb[6].mxu0 %v495_v52 }
  0x4b   : > { %5397 = vmatprep.mubr.f32.mxu0 %v496_v53  ;;  %5656 = vmatpush1.bf16.msra.mxu0 %v5655_v25 }
  0x4c   : > { %5658 = vmatprep.subr.bf16.mxu0 %v5657_v26 }
  0x4e   : > { %5398 = vmatmul.mubr.f32.gmra.mrb[8].mxu0 %v497_v54 }
  0x4f   : > { %5400 = vmatprep.mubr.f32.mxu0 %v498_v55  ;;  %5660 = vmatpush1.bf16.msra.mxu0 %v5659_v31  ;;  %v918_v31 = vld [vmem:[%s9148_s6 + $0xf0] sm:$0xff] }
  0x50   : > { %5662 = vmatprep.subr.bf16.mxu0 %v5661_v32  ;;  %v5671_v32 = vpack.c.bf16 %v918_v31, %v916_v30 }
  0x52   : > { %5401 = vmatmul.mubr.f32.gmra.mrb[10].mxu0 %v499_v56 }
  0x53   : > { %5403 = vmatprep.mubr.f32.mxu0 %v500_v57  ;;  %5664 = vmatpush1.bf16.msra.mxu0 %v5663_v37 }
  0x54   : > { %5666 = vmatprep.subr.bf16.mxu0 %v5665_v38 }
  0x56   : > { %5404 = vmatmul.mubr.f32.gmra.mrb[12].mxu0 %v501_v58 }
  0x57   : > { %5406 = vmatprep.mubr.f32.mxu0 %v502_v59  ;;  %5668 = vmatpush1.bf16.msra.mxu0 %v5667_v43 }
  0x58   : > { %5670 = vmatprep.subr.bf16.mxu0 %v5669_v44 }
  0x5a   : > { %5407 = vmatmul.mubr.f32.gmra.mrb[14].mxu0 %v503_v60 }
  0x5b   : > { %5672 = vmatpush1.bf16.msra.mxu0 %v5671_v32  ;;  %985 = vmatprep.mubr.f32.mxu0 %v9163_v33 }
 0x111   : > { %v5387_v46 = vpop.f32.mrb[0].mxu0 }
 0x112   : > { %v599_v47 = vadd.f32 %v5387_v46, %v4651_v45  ;;  %v593_v48 = vpop.f32.mrb[1].mxu0 }
 0x113   : > { %v594_v49 = vadd.f32 %v4651_v45, %v593_v48 }
 0x114   : > { %v673_v52 = vmax.f32 %v599_v47, 0.0 }
 0x115   : > { %v5390_v50 = vpop.f32.mrb[2].mxu0  ;;  %v672_v51 = vmax.f32 %v594_v49, 0.0 }
 0x116   : > { %v609_v53 = vadd.f32 %v5390_v50, %v4651_v45  ;;  %v603_v54 = vpop.f32.mrb[3].mxu0 }
 0x117   : > { %v604_v55 = vadd.f32 %v4651_v45, %v603_v54  ;;  %5441 = vmatprep.mubr.f32.mxu1 %v672_v51 }
 0x118   : > { %v675_v56 = vmax.f32 %v609_v53, 0.0  ;;  %5442 = vmatmul.mubr.f32.vlgmr.msra.gmra.mrb[0].mxu1 %v673_v52 }
 0x119   : > { %v674_v57 = vmax.f32 %v604_v55, 0.0  ;;  %v5393_v58 = vpop.f32.mrb[4].mxu0 }
 0x11a   : > { %v619_v59 = vadd.f32 %v5393_v58, %v4651_v45  ;;  %v613_v60 = vpop.f32.mrb[5].mxu0 }
 0x11b   : > { %5444 = vmatprep.mubr.f32.mxu1 %v674_v57  ;;  %v614_v61 = vadd.f32 %v4651_v45, %v613_v60 }
 0x11c   : > { %5445 = vmatmul.mubr.f32.gmra.mrb[2].mxu1 %v675_v56  ;;  %v677_v62 = vmax.f32 %v619_v59, 0.0 }
 0x11d   : > { %v676_v63 = vmax.f32 %v614_v61, 0.0  ;;  %v5396_v0 = vpop.f32.mrb[6].mxu0 }
 0x11e   : > { %v629_v1 = vadd.f32 %v5396_v0, %v4651_v45  ;;  %v623_v2 = vpop.f32.mrb[7].mxu0 }
 0x11f   : > { %5447 = vmatprep.mubr.f32.mxu1 %v676_v63  ;;  %v624_v3 = vadd.f32 %v4651_v45, %v623_v2 }
 0x120   : > { %5448 = vmatmul.mubr.f32.gmra.mrb[4].mxu1 %v677_v62  ;;  %v679_v4 = vmax.f32 %v629_v1, 0.0 }
 0x121   : > { %v678_v5 = vmax.f32 %v624_v3, 0.0  ;;  %v5399_v6 = vpop.f32.mrb[8].mxu0  ;;  %v1115_v3 = vlaneseq }
 0x122   : > { %v639_v7 = vadd.f32 %v5399_v6, %v4651_v45  ;;  %v633_v8 = vpop.f32.mrb[9].mxu0  ;;  %v920_v6 = vld [vmem:[%s9149_s7] sm:$0x3] }
 0x123   : > { %5450 = vmatprep.mubr.f32.mxu1 %v678_v5  ;;  %v634_v9 = vadd.f32 %v4651_v45, %v633_v8 }
 0x124   : > { %5451 = vmatmul.mubr.f32.gmra.mrb[6].mxu1 %v679_v4  ;;  %v681_v10 = vmax.f32 %v639_v7, 0.0  ;;  %v6462_v4 = vshrl.u32 %v1115_v3, 7 }
 0x125   : > { %v680_v11 = vmax.f32 %v634_v9, 0.0  ;;  %v5402_v12 = vpop.f32.mrb[10].mxu0 }
 0x126   : > { %v649_v13 = vadd.f32 %v5402_v12, %v4651_v45  ;;  %v643_v14 = vpop.f32.mrb[11].mxu0  ;;  %v6465_v5 = vsub.s32 0, %v6462_v4  ;;  %v6471_v7 = vsub.s32 1, %v6462_v4 }
 0x127   : > { %5453 = vmatprep.mubr.f32.mxu1 %v680_v11  ;;  %v644_v15 = vadd.f32 %v4651_v45, %v643_v14 }
 0x128   : > { %5454 = vmatmul.mubr.f32.gmra.mrb[8].mxu1 %v681_v10  ;;  %v683_v16 = vmax.f32 %v649_v13, 0.0  ;;  %9312 = vst [vmem:[#allocation30_spill] sm:$0xff] %v6465_v5  ;;  %9313 = vst [vmem:[#allocation31_spill] sm:$0xff] %v6471_v7  ;;  %v6474_v8 = vrot.slane %v920_v6, %v6465_v5  ;;  %v6477_v10 = vrot.slane %v920_v6, %v6471_v7  ;;  %v879_v7 = vld [vmem:[%s9147_s5 + $0xb8] sm:$0xff] }
 0x129   : > { %v682_v17 = vmax.f32 %v644_v15, 0.0  ;;  %v5405_v18 = vpop.f32.mrb[12].mxu0 }
 0x12a   : > { %v659_v19 = vadd.f32 %v5405_v18, %v4651_v45  ;;  %v653_v20 = vpop.f32.mrb[13].mxu0 }
 0x12b   : > { %5456 = vmatprep.mubr.f32.mxu1 %v682_v17  ;;  %v654_v21 = vadd.f32 %v4651_v45, %v653_v20 }
 0x12c   : > { %5457 = vmatmul.mubr.f32.gmra.mrb[10].mxu1 %v683_v16  ;;  %v685_v22 = vmax.f32 %v659_v19, 0.0 }
 0x12d   : > { %v684_v23 = vmax.f32 %v654_v21, 0.0  ;;  %v5408_v24 = vpop.f32.mrb[14].mxu0 }
 0x12e   : > { %v669_v25 = vadd.f32 %v5408_v24, %v4651_v45  ;;  %v663_v26 = vpop.f32.mrb[15].mxu0 }
 0x12f   : > { %5459 = vmatprep.mubr.f32.mxu1 %v684_v23  ;;  %v664_v27 = vadd.f32 %v4651_v45, %v663_v26 }
 0x130   : > { %5460 = vmatmul.mubr.f32.gmra.mrb[12].mxu1 %v685_v22  ;;  %v687_v28 = vmax.f32 %v669_v25, 0.0 }
 0x131   : > { %v686_v29 = vmax.f32 %v664_v27, 0.0 }
 0x133   : > { %5462 = vmatprep.mubr.f32.mxu1 %v686_v29 }
 0x134   : > { %5463 = vmatmul.mubr.f32.gmra.mrb[14].mxu1 %v687_v28 }
 0x1eb   : > { %v5443_v35 = vpop.f32.mrb[0].mxu1 }
 0x1ec   : > { %v777_v36 = vpop.f32.mrb[1].mxu1  ;;  %v6401_v40 = vadd.f32 %v5443_v35, %v4652_v34 }
 0x1ed   : > { %v6397_v37 = vadd.f32 %v4652_v34, %v777_v36 }
 0x1ee   : > { %9297 = vst [vmem:[#allocation15_spill] sm:$0xff] %v6401_v40 }
 0x1ef   : > { %9296 = vst [vmem:[#allocation14_spill] sm:$0xff] %v6397_v37  ;;  %986 = vmatmul.mubr.f32.vlgmr.msra.gmra.mrb[16].mxu0 %v6397_v37  ;;  %v5446_v38 = vpop.f32.mrb[2].mxu1 }
 0x1f0   : > { %v787_v39 = vpop.f32.mrb[3].mxu1  ;;  %991 = vmatprep.mubr.f32.mxu0 %v9163_v33  ;;  %v6409_v46 = vadd.f32 %v5446_v38, %v4652_v34 }
 0x1f1   : > { %v6405_v43 = vadd.f32 %v4652_v34, %v787_v39 }
 0x1f2   : > { %9299 = vst [vmem:[#allocation17_spill] sm:$0xff] %v6409_v46 }
 0x1f3   : > { %992 = vmatmul.mubr.f32.gmra.mrb[18].mxu0 %v6401_v40  ;;  %v5449_v41 = vpop.f32.mrb[4].mxu1  ;;  %9298 = vst [vmem:[#allocation16_spill] sm:$0xff] %v6405_v43 }
 0x1f4   : > { %997 = vmatprep.mubr.f32.mxu0 %v9163_v33  ;;  %v797_v42 = vpop.f32.mrb[5].mxu1  ;;  %v6417_v52 = vadd.f32 %v5449_v41, %v4652_v34 }
 0x1f5   : > { %v6413_v49 = vadd.f32 %v4652_v34, %v797_v42 }
 0x1f6   : > { %9301 = vst [vmem:[#allocation19_spill] sm:$0xff] %v6417_v52 }
 0x1f7   : > { %998 = vmatmul.mubr.f32.gmra.mrb[20].mxu0 %v6405_v43  ;;  %v5452_v44 = vpop.f32.mrb[6].mxu1  ;;  %9300 = vst [vmem:[#allocation18_spill] sm:$0xff] %v6413_v49 }
 0x1f8   : > { %1003 = vmatprep.mubr.f32.mxu0 %v9163_v33  ;;  %v807_v45 = vpop.f32.mrb[7].mxu1  ;;  %v6425_v58 = vadd.f32 %v5452_v44, %v4652_v34 }
 0x1f9   : > { %v6421_v55 = vadd.f32 %v4652_v34, %v807_v45 }
 0x1fa   : > { %9303 = vst [vmem:[#allocation21_spill] sm:$0xff] %v6425_v58 }
 0x1fb   : > { %1004 = vmatmul.mubr.f32.gmra.mrb[22].mxu0 %v6409_v46  ;;  %v5455_v47 = vpop.f32.mrb[8].mxu1  ;;  %9302 = vst [vmem:[#allocation20_spill] sm:$0xff] %v6421_v55 }
 0x1fc   : > { %1009 = vmatprep.mubr.f32.mxu0 %v9163_v33  ;;  %v817_v48 = vpop.f32.mrb[9].mxu1  ;;  %v6433_v60 = vadd.f32 %v5455_v47, %v4652_v34 }
 0x1fd   : > { %v6429_v59 = vadd.f32 %v4652_v34, %v817_v48 }
 0x1fe   : > { %9305 = vst [vmem:[#allocation23_spill] sm:$0xff] %v6433_v60 }
 0x1ff   : > { %1010 = vmatmul.mubr.f32.gmra.mrb[24].mxu0 %v6413_v49  ;;  %v5458_v50 = vpop.f32.mrb[10].mxu1  ;;  %9304 = vst [vmem:[#allocation22_spill] sm:$0xff] %v6429_v59 }
 0x200   : > { %1015 = vmatprep.mubr.f32.mxu0 %v9163_v33  ;;  %v827_v51 = vpop.f32.mrb[11].mxu1  ;;  %v6441_v62 = vadd.f32 %v5458_v50, %v4652_v34 }
 0x201   : > { %v6437_v61 = vadd.f32 %v4652_v34, %v827_v51 }
 0x202   : > { %9307 = vst [vmem:[#allocation25_spill] sm:$0xff] %v6441_v62 }
 0x203   : > { %1016 = vmatmul.mubr.f32.gmra.mrb[26].mxu0 %v6417_v52  ;;  %v5461_v53 = vpop.f32.mrb[12].mxu1  ;;  %9306 = vst [vmem:[#allocation24_spill] sm:$0xff] %v6437_v61 }
 0x204   : > { %1021 = vmatprep.mubr.f32.mxu0 %v9163_v33  ;;  %v837_v54 = vpop.f32.mrb[13].mxu1  ;;  %v6449_v0 = vadd.f32 %v5461_v53, %v4652_v34 }
 0x205   : > { %v6445_v63 = vadd.f32 %v4652_v34, %v837_v54 }
 0x206   : > { %9309 = vst [vmem:[#allocation27_spill] sm:$0xff] %v6449_v0 }
 0x207   : > { %1022 = vmatmul.mubr.f32.gmra.mrb[28].mxu0 %v6421_v55  ;;  %v5464_v56 = vpop.f32.mrb[14].mxu1  ;;  %9308 = vst [vmem:[#allocation26_spill] sm:$0xff] %v6445_v63 }
 0x208   : > { %1027 = vmatprep.mubr.f32.mxu0 %v9163_v33  ;;  %v847_v57 = vpop.f32.mrb[15].mxu1  ;;  %v6457_v2 = vadd.f32 %v5464_v56, %v4652_v34 }
 0x209   : > { %v6453_v1 = vadd.f32 %v4652_v34, %v847_v57 }
 0x20a   : > { %9311 = vst [vmem:[#allocation29_spill] sm:$0xff] %v6457_v2 }
 0x20b   : > { %1028 = vmatmul.mubr.f32.gmra.mrb[30].mxu0 %v6425_v58  ;;  %9310 = vst [vmem:[#allocation28_spill] sm:$0xff] %v6453_v1 }
 0x20c   : > { %1033 = vmatprep.mubr.f32.mxu0 %v9163_v33 }
 0x20f   : > { %1034 = vmatmul.mubr.f32.gmra.mrb[32].mxu0 %v6429_v59 }
 0x210   : > { %1039 = vmatprep.mubr.f32.mxu0 %v9163_v33 }
 0x213   : > { %1040 = vmatmul.mubr.f32.gmra.mrb[34].mxu0 %v6433_v60 }
 0x214   : > { %1045 = vmatprep.mubr.f32.mxu0 %v9163_v33 }
 0x217   : > { %1046 = vmatmul.mubr.f32.gmra.mrb[36].mxu0 %v6437_v61 }
 0x218   : > { %1051 = vmatprep.mubr.f32.mxu0 %v9163_v33 }
 0x21b   : > { %1052 = vmatmul.mubr.f32.gmra.mrb[38].mxu0 %v6441_v62 }
 0x21c   : > { %1057 = vmatprep.mubr.f32.mxu0 %v9163_v33 }
 0x21f   : > { %1058 = vmatmul.mubr.f32.gmra.mrb[40].mxu0 %v6445_v63 }
 0x220   : > { %1063 = vmatprep.mubr.f32.mxu0 %v9163_v33 }
 0x223   : > { %1064 = vmatmul.mubr.f32.gmra.mrb[42].mxu0 %v6449_v0 }
 0x224   : > { %1069 = vmatprep.mubr.f32.mxu0 %v9163_v33 }
 0x227   : > { %1070 = vmatmul.mubr.f32.gmra.mrb[44].mxu0 %v6453_v1 }
 0x228   : > { %1075 = vmatprep.mubr.f32.mxu0 %v9163_v33 }
 0x22b   : > { %1076 = vmatmul.mubr.f32.gmra.mrb[46].mxu0 %v6457_v2 }
 0x22c   : > { %2102 = vmatprep.mubr.f32.mxu0 %v9163_v33  ;;  %v877_v33 = vld [vmem:[%s9147_s5 + $0xa8] sm:$0xff] }
 0x2c2   : > { %v987_v9 = vpop.f32.mrb[16].mxu0 }
 0x2c3   : > { %v1082_v11 = vmul.f32 2.0, %v987_v9  ;;  %v989_v12 = vpop.f32.mrb[17].mxu0 }
 0x2c4   : > { %v1083_v13 = vmul.f32 2.0, %v989_v12 }
 0x2c5   : > { %v6480_v14 = vsub.f32 %v6474_v8, %v1082_v11 }
 0x2c6   : > { %v993_v15 = vpop.f32.mrb[18].mxu0  ;;  %v6483_v16 = vsub.f32 %v6477_v10, %v1083_v13 }
 0x2c7   : > { %v1084_v17 = vmul.f32 2.0, %v993_v15  ;;  %v995_v18 = vpop.f32.mrb[19].mxu0 }
 0x2c8   : > { %v1085_v19 = vmul.f32 2.0, %v995_v18  ;;  %v1160_v20 = vmin.f32 %v6480_v14, %v6483_v16 }
 0x2c9   : > { %v6488_v21 = vsub.f32 %v6474_v8, %v1084_v17 }
 0x2ca   : > { %v6491_v22 = vsub.f32 %v6477_v10, %v1085_v19  ;;  %1161 = vmin.xlane.f32.xlu0 %v1160_v20  ;;  %v999_v23 = vpop.f32.mrb[20].mxu0 }
 0x2cb   : > { %v1086_v24 = vmul.f32 2.0, %v999_v23  ;;  %v1001_v25 = vpop.f32.mrb[21].mxu0 }
 0x2cc   : > { %v1087_v26 = vmul.f32 2.0, %v1001_v25  ;;  %v1163_v27 = vmin.f32 %v6488_v21, %v6491_v22 }
 0x2cd   : > { %v6496_v28 = vsub.f32 %v6474_v8, %v1086_v24 }
 0x2ce   : > { %1164 = vmin.xlane.f32.xlu0 %v1163_v27  ;;  %v1005_v29 = vpop.f32.mrb[22].mxu0  ;;  %v6499_v30 = vsub.f32 %v6477_v10, %v1087_v26 }
 0x2cf   : > { %v1088_v31 = vmul.f32 2.0, %v1005_v29  ;;  %v1007_v32 = vpop.f32.mrb[23].mxu0 }
 0x2d0   : > { %v1089_v34 = vmul.f32 2.0, %v1007_v32  ;;  %v1166_v35 = vmin.f32 %v6496_v28, %v6499_v30 }
 0x2d1   : > { %v6504_v36 = vsub.f32 %v6474_v8, %v1088_v31 }
 0x2d2   : > { %v6507_v38 = vsub.f32 %v6477_v10, %v1089_v34  ;;  %1167 = vmin.xlane.f32.xlu1 %v1166_v35  ;;  %v1011_v39 = vpop.f32.mrb[24].mxu0 }
 0x2d3   : > { %v1090_v41 = vmul.f32 2.0, %v1011_v39  ;;  %v1013_v42 = vpop.f32.mrb[25].mxu0 }
 0x2d4   : > { %v1091_v44 = vmul.f32 2.0, %v1013_v42  ;;  %v1169_v45 = vmin.f32 %v6504_v36, %v6507_v38 }
 0x2d5   : > { %v6512_v47 = vsub.f32 %v6474_v8, %v1090_v41 }
 0x2d6   : > { %v6515_v48 = vsub.f32 %v6477_v10, %v1091_v44  ;;  %1170 = vmin.xlane.f32.xlu1 %v1169_v45  ;;  %v1017_v50 = vpop.f32.mrb[26].mxu0 }
 0x2d7   : > { %v1092_v51 = vmul.f32 2.0, %v1017_v50  ;;  %v1019_v53 = vpop.f32.mrb[27].mxu0 }
 0x2d8   : > { %v1093_v54 = vmul.f32 2.0, %v1019_v53  ;;  %v1172_v56 = vmin.f32 %v6512_v47, %v6515_v48 }
 0x2d9   : > { %v6520_v57 = vsub.f32 %v6474_v8, %v1092_v51 }
 0x2da   : > { %v6523_v6 = vsub.f32 %v6477_v10, %v1093_v54  ;;  %1173 = vmin.xlane.f32.xlu0 %v1172_v56  ;;  %v1023_v9 = vpop.f32.mrb[28].mxu0 }
 0x2db   : > { %v1094_v11 = vmul.f32 2.0, %v1023_v9  ;;  %v1025_v12 = vpop.f32.mrb[29].mxu0 }
 0x2dc   : > { %v1095_v13 = vmul.f32 2.0, %v1025_v12  ;;  %v1175_v15 = vmin.f32 %v6520_v57, %v6523_v6 }
 0x2dd   : > { %v6528_v17 = vsub.f32 %v6474_v8, %v1094_v11 }
 0x2de   : > { %v6531_v18 = vsub.f32 %v6477_v10, %v1095_v13  ;;  %1176 = vmin.xlane.f32.xlu1 %v1175_v15  ;;  %v1029_v19 = vpop.f32.mrb[30].mxu0 }
 0x2df   : > { %v1096_v20 = vmul.f32 2.0, %v1029_v19  ;;  %v1031_v23 = vpop.f32.mrb[31].mxu0 }
 0x2e0   : > { %v1097_v24 = vmul.f32 2.0, %v1031_v23  ;;  %v1178_v25 = vmin.f32 %v6528_v17, %v6531_v18 }
 0x2e1   : > { %v6536_v26 = vsub.f32 %v6474_v8, %v1096_v20 }
 0x2e2   : > { %v6539_v27 = vsub.f32 %v6477_v10, %v1097_v24  ;;  %1179 = vmin.xlane.f32.xlu0 %v1178_v25  ;;  %v1035_v29 = vpop.f32.mrb[32].mxu0 }
 0x2e3   : > { %v1098_v31 = vmul.f32 2.0, %v1035_v29  ;;  %v1037_v32 = vpop.f32.mrb[33].mxu0 }
 0x2e4   : > { %v1099_v34 = vmul.f32 2.0, %v1037_v32  ;;  %v1181_v35 = vmin.f32 %v6536_v26, %v6539_v27 }
 0x2e5   : > { %v6544_v39 = vsub.f32 %v6474_v8, %v1098_v31 }
 0x2e6   : > { %v6547_v41 = vsub.f32 %v6477_v10, %v1099_v34  ;;  %1182 = vmin.xlane.f32.xlu1 %v1181_v35  ;;  %v1041_v42 = vpop.f32.mrb[34].mxu0 }
 0x2e7   : > { %v1100_v44 = vmul.f32 2.0, %v1041_v42  ;;  %v1043_v45 = vpop.f32.mrb[35].mxu0 }
 0x2e8   : > { %v1101_v50 = vmul.f32 2.0, %v1043_v45  ;;  %v1184_v51 = vmin.f32 %v6544_v39, %v6547_v41 }
 0x2e9   : > { %v6552_v53 = vsub.f32 %v6474_v8, %v1100_v44 }
 0x2ea   : > { %v6555_v54 = vsub.f32 %v6477_v10, %v1101_v50  ;;  %1185 = vmin.xlane.f32.xlu0 %v1184_v51  ;;  %v1047_v56 = vpop.f32.mrb[36].mxu0 }
 0x2eb   : > { %v1102_v9 = vmul.f32 2.0, %v1047_v56  ;;  %v1049_v11 = vpop.f32.mrb[37].mxu0 }
 0x2ec   : > { %v1103_v12 = vmul.f32 2.0, %v1049_v11  ;;  %v1187_v13 = vmin.f32 %v6552_v53, %v6555_v54 }
 0x2ed   : > { %v6560_v15 = vsub.f32 %v6474_v8, %v1102_v9 }
 0x2ee   : > { %v6563_v19 = vsub.f32 %v6477_v10, %v1103_v12  ;;  %1188 = vmin.xlane.f32.xlu1 %v1187_v13  ;;  %v1053_v20 = vpop.f32.mrb[38].mxu0 }
 0x2ef   : > { %v1104_v23 = vmul.f32 2.0, %v1053_v20  ;;  %v1055_v24 = vpop.f32.mrb[39].mxu0 }
 0x2f0   : > { %v1105_v25 = vmul.f32 2.0, %v1055_v24  ;;  %v1190_v29 = vmin.f32 %v6560_v15, %v6563_v19 }
 0x2f1   : > { %v6568_v31 = vsub.f32 %v6474_v8, %v1104_v23 }
 0x2f2   : > { %v6571_v32 = vsub.f32 %v6477_v10, %v1105_v25  ;;  %1191 = vmin.xlane.f32.xlu0 %v1190_v29  ;;  %v1059_v34 = vpop.f32.mrb[40].mxu0 }
 0x2f3   : > { %v1106_v35 = vmul.f32 2.0, %v1059_v34  ;;  %v1061_v42 = vpop.f32.mrb[41].mxu0 }
 0x2f4   : > { %v1107_v44 = vmul.f32 2.0, %v1061_v42  ;;  %v1193_v45 = vmin.f32 %v6568_v31, %v6571_v32 }
 0x2f5   : > { %v6576_v50 = vsub.f32 %v6474_v8, %v1106_v35 }
 0x2f6   : > { %v6579_v51 = vsub.f32 %v6477_v10, %v1107_v44  ;;  %1194 = vmin.xlane.f32.xlu1 %v1193_v45  ;;  %v1065_v56 = vpop.f32.mrb[42].mxu0 }
 0x2f7   : > { %v1108_v9 = vmul.f32 2.0, %v1065_v56  ;;  %v1067_v11 = vpop.f32.mrb[43].mxu0 }
 0x2f8   : > { %v1109_v12 = vmul.f32 2.0, %v1067_v11  ;;  %v1196_v13 = vmin.f32 %v6576_v50, %v6579_v51 }
 0x2f9   : > { %v6584_v20 = vsub.f32 %v6474_v8, %v1108_v9 }
 0x2fa   : > { %v6587_v23 = vsub.f32 %v6477_v10, %v1109_v12  ;;  %1197 = vmin.xlane.f32.xlu0 %v1196_v13  ;;  %v1071_v24 = vpop.f32.mrb[44].mxu0 }
 0x2fb   : > { %v1110_v25 = vmul.f32 2.0, %v1071_v24  ;;  %v1073_v29 = vpop.f32.mrb[45].mxu0 }
 0x2fc   : > { %v1111_v34 = vmul.f32 2.0, %v1073_v29  ;;  %v1199_v35 = vmin.f32 %v6584_v20, %v6587_v23  ;;  %v6608_v29 = vand.u32 127, %v1115_v3 }
 0x2fd   : > { %v6592_v42 = vsub.f32 %v6474_v8, %v1110_v25 }
 0x2fe   : > { %v6595_v44 = vsub.f32 %v6477_v10, %v1111_v34  ;;  %1200 = vmin.xlane.f32.xlu1 %v1199_v35  ;;  %v1077_v45 = vpop.f32.mrb[46].mxu0  ;;  %v6611_v34 = vadd.s32 128, %v6608_v29 }
 0x2ff   : > { %v1112_v56 = vmul.f32 2.0, %v1077_v45  ;;  %v1079_v9 = vpop.f32.mrb[47].mxu0 }
 0x300   : > { %v1113_v11 = vmul.f32 2.0, %v1079_v9  ;;  %v1202_v12 = vmin.f32 %v6592_v42, %v6595_v44 }
 0x301   : > { %v6600_v13 = vsub.f32 %v6474_v8, %v1112_v56 }
 0x302   : > { %v6603_v24 = vsub.f32 %v6477_v10, %v1113_v11  ;;  %1203 = vmin.xlane.f32.xlu0 %v1202_v12 }
 0x304   : > { %v1205_v25 = vmin.f32 %v6600_v13, %v6603_v24 }
 0x306   : > { %1206 = vmin.xlane.f32.xlu1 %v1205_v25 }
 0x357   : > { %v1162_v35 = vpop.xlane.xlu0 %1161 }
 0x358   : > { %vm1208_vm0 = vcmp.eq.f32.partialorder %v6480_v14, %v1162_v35  ;;  %vm1209_vm1 = vcmp.eq.f32.partialorder %v6483_v16, %v1162_v35 }
 0x359   : > { %v1240_v8 = vsel %vm1208_vm0, %v6608_v29, 256  ;;  %v1241_v10 = vsel %vm1209_vm1, %v6611_v34, 256 }
 0x35a   : > { %vm1272_vm2 = vcmp.lt.s32.totalorder %v1240_v8, %v1241_v10 }
 0x35b   : > { %v1165_v45 = vpop.xlane.xlu0 %1164  ;;  %v6617_v56 = vsel %vm1272_vm2, %v1240_v8, %v1241_v10 }
 0x35c   : > { %vm1210_vm3 = vcmp.eq.f32.partialorder %v6488_v21, %v1165_v45  ;;  %vm1211_vm4 = vcmp.eq.f32.partialorder %v6491_v22, %v1165_v45  ;;  %v1275_v3 = vshra.s32 %v6617_v56, 16 }
 0x35d   : > { %v1242_v9 = vsel %vm1210_vm3, %v6608_v29, 256  ;;  %v1243_v14 = vsel %vm1211_vm4, %v6611_v34, 256 }
 0x35e   : > { %v6624_v11 = vcvt.s32.f32 %v1275_v3  ;;  %vm1288_vm5 = vcmp.lt.s32.totalorder %v1242_v9, %v1243_v14 }
 0x35f   : > { %v1168_v16 = vpop.xlane.xlu1 %1167  ;;  %v6626_v12 = vsel %vm1288_vm5, %v1242_v9, %v1243_v14 }
 0x360   : > { %vm1212_vm6 = vcmp.eq.f32.partialorder %v6496_v28, %v1168_v16  ;;  %vm1213_vm7 = vcmp.eq.f32.partialorder %v6499_v30, %v1168_v16  ;;  %1278 = vmin.xlane.f32.xlu0 %v6624_v11  ;;  %v1291_v21 = vshra.s32 %v6626_v12, 16 }
 0x361   : > { %v1244_v22 = vsel %vm1212_vm6, %v6608_v29, 256  ;;  %v1245_v25 = vsel %vm1213_vm7, %v6611_v34, 256 }
 0x362   : > { %v6634_v35 = vcvt.s32.f32 %v1291_v21  ;;  %vm1304_vm8 = vcmp.lt.s32.totalorder %v1244_v22, %v1245_v25 }
 0x363   : > { %v1171_v8 = vpop.xlane.xlu1 %1170  ;;  %v6636_v10 = vsel %vm1304_vm8, %v1244_v22, %v1245_v25 }
 0x364   : > { %vm1214_vm9 = vcmp.eq.f32.partialorder %v6504_v36, %v1171_v8  ;;  %vm1215_vm10 = vcmp.eq.f32.partialorder %v6507_v38, %v1171_v8  ;;  %1294 = vmin.xlane.f32.xlu1 %v6634_v35  ;;  %v1307_v28 = vshra.s32 %v6636_v10, 16 }
 0x365   : > { %v1246_v30 = vsel %vm1214_vm9, %v6608_v29, 256  ;;  %v1247_v45 = vsel %vm1215_vm10, %v6611_v34, 256 }
 0x366   : > { %v6644_v3 = vcvt.s32.f32 %v1307_v28  ;;  %vm1320_vm11 = vcmp.lt.s32.totalorder %v1246_v30, %v1247_v45 }
 0x367   : > { %v1174_v9 = vpop.xlane.xlu0 %1173  ;;  %v6646_v14 = vsel %vm1320_vm11, %v1246_v30, %v1247_v45 }
 0x368   : > { %vm1216_vm12 = vcmp.eq.f32.partialorder %v6512_v47, %v1174_v9  ;;  %vm1217_vm13 = vcmp.eq.f32.partialorder %v6515_v48, %v1174_v9  ;;  %1310 = vmin.xlane.f32.xlu0 %v6644_v3  ;;  %v1323_v36 = vshra.s32 %v6646_v14, 16 }
 0x369   : > { %v1248_v38 = vsel %vm1216_vm12, %v6608_v29, 256  ;;  %v1249_v16 = vsel %vm1217_vm13, %v6611_v34, 256 }
 0x36a   : > { %v6654_v21 = vcvt.s32.f32 %v1323_v36  ;;  %vm1336_vm14 = vcmp.lt.s32.totalorder %v1248_v38, %v1249_v16 }
 0x36b   : > { %v1177_v22 = vpop.xlane.xlu1 %1176  ;;  %v6656_v25 = vsel %vm1336_vm14, %v1248_v38, %v1249_v16 }
 0x36c   : > { %vm1218_vm15 = vcmp.eq.f32.partialorder %v6520_v57, %v1177_v22  ;;  %vm1219_vm0 = vcmp.eq.f32.partialorder %v6523_v6, %v1177_v22  ;;  %1326 = vmin.xlane.f32.xlu1 %v6654_v21  ;;  %v1339_v47 = vshra.s32 %v6656_v25, 16 }
 0x36d   : > { %v1250_v48 = vsel %vm1218_vm15, %v6608_v29, 256  ;;  %v1251_v8 = vsel %vm1219_vm0, %v6611_v34, 256 }
 0x36e   : > { %v6664_v28 = vcvt.s32.f32 %v1339_v47  ;;  %vm1352_vm1 = vcmp.lt.s32.totalorder %v1250_v48, %v1251_v8 }
 0x36f   : > { %v1180_v30 = vpop.xlane.xlu0 %1179  ;;  %v6666_v45 = vsel %vm1352_vm1, %v1250_v48, %v1251_v8 }
 0x370   : > { %vm1220_vm2 = vcmp.eq.f32.partialorder %v6528_v17, %v1180_v30  ;;  %vm1221_vm3 = vcmp.eq.f32.partialorder %v6531_v18, %v1180_v30  ;;  %1342 = vmin.xlane.f32.xlu0 %v6664_v28  ;;  %v1355_v57 = vshra.s32 %v6666_v45, 16 }
 0x371   : > { %v1252_v6 = vsel %vm1220_vm2, %v6608_v29, 256  ;;  %v1253_v9 = vsel %vm1221_vm3, %v6611_v34, 256 }
 0x372   : > { %v6674_v36 = vcvt.s32.f32 %v1355_v57  ;;  %vm1368_vm4 = vcmp.lt.s32.totalorder %v1252_v6, %v1253_v9 }
 0x373   : > { %v1183_v38 = vpop.xlane.xlu1 %1182  ;;  %v6676_v16 = vsel %vm1368_vm4, %v1252_v6, %v1253_v9 }
 0x374   : > { %vm1222_vm5 = vcmp.eq.f32.partialorder %v6536_v26, %v1183_v38  ;;  %vm1223_vm6 = vcmp.eq.f32.partialorder %v6539_v27, %v1183_v38  ;;  %1358 = vmin.xlane.f32.xlu1 %v6674_v36  ;;  %v1371_v17 = vshra.s32 %v6676_v16, 16 }
 0x375   : > { %v1254_v18 = vsel %vm1222_vm5, %v6608_v29, 256  ;;  %v1255_v22 = vsel %vm1223_vm6, %v6611_v34, 256 }
 0x376   : > { %v6684_v47 = vcvt.s32.f32 %v1371_v17  ;;  %vm1384_vm7 = vcmp.lt.s32.totalorder %v1254_v18, %v1255_v22 }
 0x377   : > { %v1186_v48 = vpop.xlane.xlu0 %1185  ;;  %v6686_v8 = vsel %vm1384_vm7, %v1254_v18, %v1255_v22 }
 0x378   : > { %vm1224_vm8 = vcmp.eq.f32.partialorder %v6544_v39, %v1186_v48  ;;  %vm1225_vm9 = vcmp.eq.f32.partialorder %v6547_v41, %v1186_v48  ;;  %1374 = vmin.xlane.f32.xlu0 %v6684_v47  ;;  %v1387_v26 = vshra.s32 %v6686_v8, 16 }
 0x379   : > { %v1256_v27 = vsel %vm1224_vm8, %v6608_v29, 256  ;;  %v1257_v30 = vsel %vm1225_vm9, %v6611_v34, 256 }
 0x37a   : > { %v6694_v57 = vcvt.s32.f32 %v1387_v26  ;;  %vm1400_vm10 = vcmp.lt.s32.totalorder %v1256_v27, %v1257_v30 }
 0x37b   : > { %v1189_v6 = vpop.xlane.xlu1 %1188  ;;  %v6696_v9 = vsel %vm1400_vm10, %v1256_v27, %v1257_v30 }
 0x37c   : > { %vm1226_vm11 = vcmp.eq.f32.partialorder %v6552_v53, %v1189_v6  ;;  %vm1227_vm12 = vcmp.eq.f32.partialorder %v6555_v54, %v1189_v6  ;;  %1390 = vmin.xlane.f32.xlu1 %v6694_v57  ;;  %v1403_v39 = vshra.s32 %v6696_v9, 16 }
 0x37d   : > { %v1258_v41 = vsel %vm1226_vm11, %v6608_v29, 256  ;;  %v1259_v38 = vsel %vm1227_vm12, %v6611_v34, 256 }
 0x37e   : > { %v6704_v17 = vcvt.s32.f32 %v1403_v39  ;;  %vm1416_vm13 = vcmp.lt.s32.totalorder %v1258_v41, %v1259_v38 }
 0x37f   : > { %v1192_v18 = vpop.xlane.xlu0 %1191  ;;  %v6706_v22 = vsel %vm1416_vm13, %v1258_v41, %v1259_v38 }
 0x380   : > { %vm1228_vm14 = vcmp.eq.f32.partialorder %v6560_v15, %v1192_v18  ;;  %vm1229_vm15 = vcmp.eq.f32.partialorder %v6563_v19, %v1192_v18  ;;  %1406 = vmin.xlane.f32.xlu0 %v6704_v17  ;;  %v1419_v53 = vshra.s32 %v6706_v22, 16 }
 0x381   : > { %v1260_v54 = vsel %vm1228_vm14, %v6608_v29, 256  ;;  %v1261_v48 = vsel %vm1229_vm15, %v6611_v34, 256 }
 0x382   : > { %v6714_v26 = vcvt.s32.f32 %v1419_v53  ;;  %vm1432_vm0 = vcmp.lt.s32.totalorder %v1260_v54, %v1261_v48 }
 0x383   : > { %v1195_v27 = vpop.xlane.xlu1 %1194  ;;  %v6716_v30 = vsel %vm1432_vm0, %v1260_v54, %v1261_v48 }
 0x384   : > { %vm1230_vm1 = vcmp.eq.f32.partialorder %v6568_v31, %v1195_v27  ;;  %vm1231_vm2 = vcmp.eq.f32.partialorder %v6571_v32, %v1195_v27  ;;  %1422 = vmin.xlane.f32.xlu1 %v6714_v26  ;;  %v1435_v15 = vshra.s32 %v6716_v30, 16 }
 0x385   : > { %v1262_v19 = vsel %vm1230_vm1, %v6608_v29, 256  ;;  %v1263_v6 = vsel %vm1231_vm2, %v6611_v34, 256 }
 0x386   : > { %v6724_v39 = vcvt.s32.f32 %v1435_v15  ;;  %vm1448_vm3 = vcmp.lt.s32.totalorder %v1262_v19, %v1263_v6 }
 0x387   : > { %v1198_v41 = vpop.xlane.xlu0 %1197  ;;  %v6726_v38 = vsel %vm1448_vm3, %v1262_v19, %v1263_v6 }
 0x388   : > { %vm1232_vm4 = vcmp.eq.f32.partialorder %v6576_v50, %v1198_v41  ;;  %vm1233_vm5 = vcmp.eq.f32.partialorder %v6579_v51, %v1198_v41  ;;  %1438 = vmin.xlane.f32.xlu0 %v6724_v39  ;;  %v1451_v31 = vshra.s32 %v6726_v38, 16 }
 0x389   : > { %v1264_v32 = vsel %vm1232_vm4, %v6608_v29, 256  ;;  %v1265_v18 = vsel %vm1233_vm5, %v6611_v34, 256 }
 0x38a   : > { %v6734_v53 = vcvt.s32.f32 %v1451_v31  ;;  %vm1464_vm6 = vcmp.lt.s32.totalorder %v1264_v32, %v1265_v18 }
 0x38b   : > { %v1201_v54 = vpop.xlane.xlu1 %1200  ;;  %v6736_v48 = vsel %vm1464_vm6, %v1264_v32, %v1265_v18 }
 0x38c   : > { %vm1234_vm7 = vcmp.eq.f32.partialorder %v6584_v20, %v1201_v54  ;;  %vm1235_vm8 = vcmp.eq.f32.partialorder %v6587_v23, %v1201_v54  ;;  %1454 = vmin.xlane.f32.xlu1 %v6734_v53  ;;  %v1467_v50 = vshra.s32 %v6736_v48, 16 }
 0x38d   : > { %v1266_v51 = vsel %vm1234_vm7, %v6608_v29, 256  ;;  %v1267_v27 = vsel %vm1235_vm8, %v6611_v34, 256 }
 0x38e   : > { %v6744_v15 = vcvt.s32.f32 %v1467_v50  ;;  %vm1480_vm9 = vcmp.lt.s32.totalorder %v1266_v51, %v1267_v27 }
 0x38f   : > { %v1204_v19 = vpop.xlane.xlu0 %1203  ;;  %v6746_v6 = vsel %vm1480_vm9, %v1266_v51, %v1267_v27 }
 0x390   : > { %vm1236_vm10 = vcmp.eq.f32.partialorder %v6592_v42, %v1204_v19  ;;  %vm1237_vm11 = vcmp.eq.f32.partialorder %v6595_v44, %v1204_v19  ;;  %1470 = vmin.xlane.f32.xlu0 %v6744_v15  ;;  %v1483_v20 = vshra.s32 %v6746_v6, 16  ;;  %v873_v19 = vld [vmem:[%s9147_s5 + $0x88] sm:$0xff] }
 0x391   : > { %v1268_v23 = vsel %vm1236_vm10, %v6608_v29, 256  ;;  %v1269_v41 = vsel %vm1237_vm11, %v6611_v34, 256 }
 0x392   : > { %v6754_v31 = vcvt.s32.f32 %v1483_v20  ;;  %vm1496_vm12 = vcmp.lt.s32.totalorder %v1268_v23, %v1269_v41  ;;  %v856_v20 = vld [vmem:[%s9147_s5] sm:$0xff] }
 0x393   : > { %v1207_v32 = vpop.xlane.xlu1 %1206  ;;  %v6756_v18 = vsel %vm1496_vm12, %v1268_v23, %v1269_v41  ;;  %v857_v41 = vld [vmem:[%s9147_s5 + $0x8] sm:$0xff] }
 0x394   : > { %vm1238_vm13 = vcmp.eq.f32.partialorder %v6600_v13, %v1207_v32  ;;  %vm1239_vm14 = vcmp.eq.f32.partialorder %v6603_v24, %v1207_v32  ;;  %1486 = vmin.xlane.f32.xlu1 %v6754_v31  ;;  %v1499_v42 = vshra.s32 %v6756_v18, 16  ;;  %v872_v24 = vld [vmem:[%s9147_s5 + $0x80] sm:$0xff]  ;;  %v874_v32 = vld [vmem:[%s9147_s5 + $0x90] sm:$0xff] }
 0x395   : > { %v1270_v44 = vsel %vm1238_vm13, %v6608_v29, 256  ;;  %v1271_v54 = vsel %vm1239_vm14, %v6611_v34, 256  ;;  %v5673_v23 = vpack.c.bf16 %v873_v19, %v872_v24  ;;  %v859_v24 = vld [vmem:[%s9147_s5 + $0x18] sm:$0xff]  ;;  %v876_v19 = vld [vmem:[%s9147_s5 + $0xa0] sm:$0xff] }
 0x396   : > { %v6764_v50 = vcvt.s32.f32 %v1499_v42  ;;  %vm1512_vm15 = vcmp.lt.s32.totalorder %v1270_v44, %v1271_v54  ;;  %v875_v42 = vld [vmem:[%s9147_s5 + $0x98] sm:$0xff] }
 0x397   : > { %v6766_v51 = vsel %vm1512_vm15, %v1270_v44, %v1271_v54  ;;  %v5675_v44 = vpack.c.bf16 %v857_v41, %v856_v20  ;;  %v5677_v54 = vpack.c.bf16 %v875_v42, %v874_v32  ;;  %5674 = vmatprep.subr.bf16.mxu1 %v5673_v23  ;;  %v5681_v41 = vpack.c.bf16 %v877_v33, %v876_v19  ;;  %v860_v32 = vld [vmem:[%s9147_s5 + $0x20] sm:$0xff]  ;;  %v861_v42 = vld [vmem:[%s9147_s5 + $0x28] sm:$0xff]  ;;  %v878_v23 = vld [vmem:[%s9147_s5 + $0xb0] sm:$0xff] }
 0x398   : > { %1502 = vmin.xlane.f32.xlu0 %v6764_v50  ;;  %v1515_v27 = vshra.s32 %v6766_v51, 16  ;;  %v5685_v33 = vpack.c.bf16 %v879_v7, %v878_v23  ;;  %v881_v19 = vld [vmem:[%s9147_s5 + $0xc8] sm:$0xff]  ;;  %v883_v23 = vld [vmem:[%s9147_s5 + $0xd8] sm:$0xff] }
 0x399   : > { %5676 = vmatpush3.bf16.msra.mxu1 %v5675_v44  ;;  %v5683_v44 = vpack.c.bf16 %v861_v42, %v860_v32  ;;  %v865_v32 = vld [vmem:[%s9147_s5 + $0x48] sm:$0xff]  ;;  %v882_v42 = vld [vmem:[%s9147_s5 + $0xd0] sm:$0xff] }
 0x39a   : > { %v6770_v13 = vcvt.s32.f32 %v1515_v27  ;;  %v858_v27 = vld [vmem:[%s9147_s5 + $0x10] sm:$0xff]  ;;  %5678 = vmatprep.subr.bf16.mxu1 %v5677_v54 }
 0x39b   : > { %v5679_v20 = vpack.c.bf16 %v859_v24, %v858_v27  ;;  %v862_v54 = vld [vmem:[%s9147_s5 + $0x30] sm:$0xff]  ;;  %v863_v27 = vld [vmem:[%s9147_s5 + $0x38] sm:$0xff]  ;;  %v880_v24 = vld [vmem:[%s9147_s5 + $0xc0] sm:$0xff] }
 0x39c   : > { %1518 = vmin.xlane.f32.xlu1 %v6770_v13  ;;  %v5689_v7 = vpack.c.bf16 %v881_v19, %v880_v24  ;;  %v884_v24 = vld [vmem:[%s9147_s5 + $0xe0] sm:$0xff]  ;;  %v885_v19 = vld [vmem:[%s9147_s5 + $0xe8] sm:$0xff] }
 0x39d   : > { %5680 = vmatpush3.bf16.msra.mxu1 %v5679_v20  ;;  %v5687_v20 = vpack.c.bf16 %v863_v27, %v862_v54  ;;  %v866_v54 = vld [vmem:[%s9147_s5 + $0x50] sm:$0xff]  ;;  %v867_v27 = vld [vmem:[%s9147_s5 + $0x58] sm:$0xff] }
 0x39e   : > { %5682 = vmatprep.subr.bf16.mxu1 %v5681_v41  ;;  %v864_v41 = vld [vmem:[%s9147_s5 + $0x40] sm:$0xff] }
 0x3a1   : > { %5684 = vmatpush3.bf16.msra.mxu1 %v5683_v44  ;;  %v5691_v44 = vpack.c.bf16 %v865_v32, %v864_v41  ;;  %v868_v41 = vld [vmem:[%s9147_s5 + $0x60] sm:$0xff]  ;;  %v869_v32 = vld [vmem:[%s9147_s5 + $0x68] sm:$0xff] }
 0x3a2   : > { %5686 = vmatprep.subr.bf16.mxu1 %v5685_v33  ;;  %v5693_v33 = vpack.c.bf16 %v883_v23, %v882_v42  ;;  %v5699_v42 = vpack.c.bf16 %v869_v32, %v868_v41  ;;  %v1274_v23 = vand.u32 65535, %v6617_v56 }
 0x3a5   : > { %5688 = vmatpush3.bf16.msra.mxu1 %v5687_v20  ;;  %v5695_v20 = vpack.c.bf16 %v867_v27, %v866_v54 }
 0x3a6   : > { %5690 = vmatprep.subr.bf16.mxu1 %v5689_v7  ;;  %v5697_v7 = vpack.c.bf16 %v885_v19, %v884_v24  ;;  %v1306_v19 = vand.u32 65535, %v6636_v10  ;;  %v1338_v10 = vand.u32 65535, %v6656_v25 }
 0x3a9   : > { %5692 = vmatpush3.bf16.msra.mxu1 %v5691_v44  ;;  %v1276_v44 = vcvt.s32.f32 %v1274_v23  ;;  %v1340_v23 = vcvt.s32.f32 %v1338_v10 }
 0x3aa   : > { %5694 = vmatprep.subr.bf16.mxu1 %v5693_v33  ;;  %v1290_v33 = vand.u32 65535, %v6626_v12  ;;  %v1322_v12 = vand.u32 65535, %v6646_v14  ;;  %v1354_v14 = vand.u32 65535, %v6666_v45  ;;  %v871_v45 = vld [vmem:[%s9147_s5 + $0x78] sm:$0xff] }
 0x3ac   : > { %v1292_v24 = vcvt.s32.f32 %v1290_v33  ;;  %v1324_v32 = vcvt.s32.f32 %v1322_v12 }
 0x3ad   : > { %5696 = vmatpush3.bf16.msra.mxu1 %v5695_v20 }
 0x3ae   : > { %5698 = vmatprep.subr.bf16.mxu1 %v5697_v7  ;;  %v1308_v7 = vcvt.s32.f32 %v1306_v19  ;;  %v1356_v19 = vcvt.s32.f32 %v1354_v14 }
 0x3b1   : > { %5700 = vmatpush3.bf16.msra.mxu1 %v5699_v42 }
 0x3ed   : > { %v6858_v5 = vpop.xlane.xlu0 %1278 }
 0x3ee   : > { %vm1280_vm0 = vcmp.eq.f32.partialorder %v6624_v11, %v6858_v5 }
 0x3ef   : > { %v1281_v54 = vsel %vm1280_vm0, %v1276_v44, inf  ;;  %v887_v44 = vld [vmem:[%s9147_s5 + $0xf8] sm:$0xff] }
 0x3f0   : > { %1282 = vmin.xlane.f32.xlu0 %v1281_v54 }
 0x3f1   : > { %v6863_v27 = vpop.xlane.xlu1 %1294 }
 0x3f2   : > { %vm1296_vm1 = vcmp.eq.f32.partialorder %v6634_v35, %v6863_v27 }
 0x3f3   : > { %v1297_v20 = vsel %vm1296_vm1, %v1292_v24, inf }
 0x3f4   : > { %1298 = vmin.xlane.f32.xlu1 %v1297_v20  ;;  %v1370_v20 = vand.u32 65535, %v6676_v16  ;;  %v1402_v16 = vand.u32 65535, %v6696_v9  ;;  %v1434_v9 = vand.u32 65535, %v6716_v30  ;;  %v1466_v30 = vand.u32 65535, %v6736_v48 }
 0x3f5   : > { %v6868_v56 = vpop.xlane.xlu0 %1310  ;;  %v1498_v48 = vand.u32 65535, %v6756_v18 }
 0x3f6   : > { %vm1312_vm2 = vcmp.eq.f32.partialorder %v6644_v3, %v6868_v56  ;;  %v886_v3 = vld [vmem:[%s9147_s5 + $0xf0] sm:$0xff]  ;;  %v1372_v12 = vcvt.s32.f32 %v1370_v20  ;;  %v1404_v14 = vcvt.s32.f32 %v1402_v16 }
 0x3f7   : > { %v1313_v11 = vsel %vm1312_vm2, %v1308_v7, inf  ;;  %v5701_v25 = vpack.c.bf16 %v887_v44, %v886_v3 }
 0x3f8   : > { %1314 = vmin.xlane.f32.xlu0 %v1313_v11  ;;  %v1386_v11 = vand.u32 65535, %v6686_v8  ;;  %v1418_v8 = vand.u32 65535, %v6706_v22  ;;  %v1450_v22 = vand.u32 65535, %v6726_v38  ;;  %v1482_v38 = vand.u32 65535, %v6746_v6 }
 0x3f9   : > { %v6873_v41 = vpop.xlane.xlu1 %1326  ;;  %5702 = vmatprep.subr.bf16.mxu1 %v5701_v25  ;;  %v1514_v6 = vand.u32 65535, %v6766_v51  ;;  %v4752_v51 = vld [vmem:[%s9148_s6 + $0x118] sm:$0xff] }
 0x3fa   : > { %vm1328_vm3 = vcmp.eq.f32.partialorder %v6654_v21, %v6873_v41  ;;  %v870_v21 = vld [vmem:[%s9147_s5 + $0x70] sm:$0xff]  ;;  %v1420_v44 = vcvt.s32.f32 %v1418_v8 }
 0x3fb   : > { %v1329_v35 = vsel %vm1328_vm3, %v1324_v32, inf  ;;  %v5703_v54 = vpack.c.bf16 %v871_v45, %v870_v21  ;;  %v1436_v21 = vcvt.s32.f32 %v1434_v9  ;;  %v4755_v9 = vld [vmem:[%s9148_s6 + $0x130] sm:$0xff] }
 0x3fc   : > { %1330 = vmin.xlane.f32.xlu1 %v1329_v35  ;;  %v1388_v35 = vcvt.s32.f32 %v1386_v11  ;;  %v1500_v11 = vcvt.s32.f32 %v1498_v48  ;;  %v4763_v48 = vld [vmem:[%s9148_s6 + $0x170] sm:$0xff] }
 0x3fd   : > { %v6878_v42 = vpop.xlane.xlu0 %1342  ;;  %5704 = vmatpush3.bf16.msra.mxu1 %v5703_v54 }
 0x3fe   : > { %vm1344_vm4 = vcmp.eq.f32.partialorder %v6664_v28, %v6878_v42 }
 0x3ff   : > { %v1345_v33 = vsel %vm1344_vm4, %v1340_v23, inf }
 0x400   : > { %1346 = vmin.xlane.f32.xlu0 %v1345_v33  ;;  %v1452_v33 = vcvt.s32.f32 %v1450_v22 }
 0x401   : > { %v6895_v24 = vpop.xlane.xlu1 %1358 }
 0x402   : > { %vm1360_vm5 = vcmp.eq.f32.partialorder %v6674_v36, %v6895_v24 }
 0x403   : > { %v1361_v28 = vsel %vm1360_vm5, %v1356_v19, inf  ;;  %v1468_v19 = vcvt.s32.f32 %v1466_v30  ;;  %v4759_v30 = vld [vmem:[%s9148_s6 + $0x150] sm:$0xff] }
 0x404   : > { %1362 = vmin.xlane.f32.xlu1 %v1361_v28  ;;  %v1484_v28 = vcvt.s32.f32 %v1482_v38 }
 0x405   : > { %v6900_v7 = vpop.xlane.xlu0 %1374 }
 0x406   : > { %vm1376_vm6 = vcmp.eq.f32.partialorder %v6684_v47, %v6900_v7 }
 0x407   : > { %v1377_v32 = vsel %vm1376_vm6, %v1372_v12, inf }
 0x408   : > { %1378 = vmin.xlane.f32.xlu0 %v1377_v32 }
 0x409   : > { %v6905_v10 = vpop.xlane.xlu1 %1390 }
 0x40a   : > { %vm1392_vm7 = vcmp.eq.f32.partialorder %v6694_v57, %v6905_v10 }
 0x40b   : > { %v1393_v36 = vsel %vm1392_vm7, %v1388_v35, inf  ;;  %v1516_v35 = vcvt.s32.f32 %v1514_v6 }
 0x40c   : > { %1394 = vmin.xlane.f32.xlu1 %v1393_v36  ;;  %v4751_v36 = vld [vmem:[%s9148_s6 + $0x110] sm:$0xff] }
 0x40d   : > { %v6910_v23 = vpop.xlane.xlu0 %1406 }
 0x40e   : > { %vm1408_vm8 = vcmp.eq.f32.partialorder %v6704_v17, %v6910_v23 }
 0x40f   : > { %v1409_v47 = vsel %vm1408_vm8, %v1404_v14, inf  ;;  %v4756_v14 = vld [vmem:[%s9148_s6 + $0x138] sm:$0xff] }
 0x410   : > { %1410 = vmin.xlane.f32.xlu0 %v1409_v47 }
 0x411   : > { %v6915_v3 = vpop.xlane.xlu1 %1422 }
 0x412   : > { %vm1424_vm9 = vcmp.eq.f32.partialorder %v6714_v26, %v6915_v3 }
 0x413   : > { %v1425_v57 = vsel %vm1424_vm9, %v1420_v44, inf  ;;  %v4753_v44 = vld [vmem:[%s9148_s6 + $0x120] sm:$0xff] }
 0x414   : > { %1426 = vmin.xlane.f32.xlu1 %v1425_v57  ;;  %v4758_v57 = vld [vmem:[%s9148_s6 + $0x148] sm:$0xff]  ;;  %v5711_v22 = vpack.c.bf16 %v4755_v9, %v4753_v44  ;;  %v4773_v9 = vld [vmem:[%s9148_s6 + $0x1c0] sm:$0xff] }
 0x415   : > { %v6920_v25 = vpop.xlane.xlu0 %1438 }
 0x416   : > { %vm1440_vm10 = vcmp.eq.f32.partialorder %v6724_v39, %v6920_v25 }
 0x417   : > { %v1441_v17 = vsel %vm1440_vm10, %v1436_v21, inf  ;;  %v4760_v21 = vld [vmem:[%s9148_s6 + $0x158] sm:$0xff] }
 0x418   : > { %1442 = vmin.xlane.f32.xlu0 %v1441_v17  ;;  %v5713_v17 = vpack.c.bf16 %v4760_v21, %v4758_v57  ;;  %v4775_v57 = vld [vmem:[%s9148_s6 + $0x1d0] sm:$0xff]  ;;  %v4778_v21 = vld [vmem:[%s9148_s6 + $0x1e8] sm:$0xff] }
 0x419   : > { %v6925_v45 = vpop.xlane.xlu1 %1454 }
 0x41a   : > { %vm1456_vm11 = vcmp.eq.f32.partialorder %v6734_v53, %v6925_v45 }
 0x41b   : > { %v1457_v26 = vsel %vm1456_vm11, %v1452_v33, inf  ;;  %v4757_v33 = vld [vmem:[%s9148_s6 + $0x140] sm:$0xff] }
 0x41c   : > { %1458 = vmin.xlane.f32.xlu1 %v1457_v26  ;;  %v4762_v26 = vld [vmem:[%s9148_s6 + $0x168] sm:$0xff]  ;;  %v5715_v38 = vpack.c.bf16 %v4759_v30, %v4757_v33  ;;  %v4777_v30 = vld [vmem:[%s9148_s6 + $0x1e0] sm:$0xff] }
 0x41d   : > { %v6930_v54 = vpop.xlane.xlu0 %1470 }
 0x41e   : > { %vm1472_vm12 = vcmp.eq.f32.partialorder %v6744_v15, %v6930_v54 }
 0x41f   : > { %v1473_v39 = vsel %vm1472_vm12, %v1468_v19, inf  ;;  %v4764_v19 = vld [vmem:[%s9148_s6 + $0x178] sm:$0xff] }
 0x420   : > { %1474 = vmin.xlane.f32.xlu0 %v1473_v39  ;;  %v5717_v39 = vpack.c.bf16 %v4764_v19, %v4762_v26  ;;  %v4779_v26 = vld [vmem:[%s9148_s6 + $0x1f0] sm:$0xff] }
 0x421   : > { %v6935_v20 = vpop.xlane.xlu1 %1486  ;;  %v5735_v19 = vpack.c.bf16 %v4779_v26, %v4777_v30 }
 0x422   : > { %vm1488_vm13 = vcmp.eq.f32.partialorder %v6754_v31, %v6935_v20  ;;  %v4750_v31 = vld [vmem:[%s9148_s6 + $0x108] sm:$0xff] }
 0x423   : > { %v1489_v53 = vsel %vm1488_vm13, %v1484_v28, inf  ;;  %v5705_v16 = vpack.c.bf16 %v4752_v51, %v4750_v31  ;;  %v4761_v28 = vld [vmem:[%s9148_s6 + $0x160] sm:$0xff]  ;;  %v4770_v31 = vld [vmem:[%s9148_s6 + $0x1a8] sm:$0xff]  ;;  %v4772_v51 = vld [vmem:[%s9148_s6 + $0x1b8] sm:$0xff] }
 0x424   : > { %1490 = vmin.xlane.f32.xlu1 %v1489_v53  ;;  %v4766_v53 = vld [vmem:[%s9148_s6 + $0x188] sm:$0xff]  ;;  %v5719_v6 = vpack.c.bf16 %v4763_v48, %v4761_v28  ;;  %v1301_v48 = vcvt.f32.s32 %v6863_v27 }
 0x425   : > { %v6940_v12 = vpop.xlane.xlu0 %1502  ;;  %5706 = vmatprep.subr.bf16.mxu0 %v5705_v16  ;;  %v5725_v16 = vpack.c.bf16 %v4772_v51, %v4770_v31  ;;  %v9172_v31 = vmov 1.0  }
 0x426   : > { %vm1504_vm14 = vcmp.eq.f32.partialorder %v6764_v50, %v6940_v12  ;;  %v4749_v50 = vld [vmem:[%s9148_s6 + $0x100] sm:$0xff] }
 0x427   : > { %v1505_v15 = vsel %vm1504_vm14, %v1500_v11, inf  ;;  %v5707_v8 = vpack.c.bf16 %v4751_v36, %v4749_v50  ;;  %v4768_v11 = vld [vmem:[%s9148_s6 + $0x198] sm:$0xff]  ;;  %v4769_v36 = vld [vmem:[%s9148_s6 + $0x1a0] sm:$0xff] }
 0x428   : > { %1506 = vmin.xlane.f32.xlu0 %v1505_v15  ;;  %v5721_v15 = vpack.c.bf16 %v4768_v11, %v4766_v53 }
 0x429   : > { %v6945_v32 = vpop.xlane.xlu1 %1518  ;;  %5708 = vmatpush1.bf16.msra.mxu0 %v5707_v8  ;;  %v4776_v8 = vld [vmem:[%s9148_s6 + $0x1d8] sm:$0xff] }
 0x42a   : > { %vm1520_vm15 = vcmp.eq.f32.partialorder %v6770_v13, %v6945_v32  ;;  %v4754_v13 = vld [vmem:[%s9148_s6 + $0x128] sm:$0xff] }
 0x42b   : > { %v1521_v18 = vsel %vm1520_vm15, %v1516_v35, inf  ;;  %v5709_v47 = vpack.c.bf16 %v4756_v14, %v4754_v13  ;;  %v4765_v35 = vld [vmem:[%s9148_s6 + $0x180] sm:$0xff]  ;;  %v4771_v13 = vld [vmem:[%s9148_s6 + $0x1b0] sm:$0xff]  ;;  %v4774_v14 = vld [vmem:[%s9148_s6 + $0x1c8] sm:$0xff] }
 0x42c   : > { %1522 = vmin.xlane.f32.xlu1 %v1521_v18  ;;  %v4767_v18 = vld [vmem:[%s9148_s6 + $0x190] sm:$0xff]  ;;  %v5729_v44 = vpack.c.bf16 %v4776_v8, %v4774_v14 }
 0x42d   : > { %5710 = vmatprep.subr.bf16.mxu0 %v5709_v47  ;;  %v5723_v50 = vpack.c.bf16 %v4767_v18, %v4765_v35  ;;  %v5727_v47 = vpack.c.bf16 %v4771_v13, %v4769_v36  ;;  %v1302_v35 = vshll.u32 %v1301_v48, 16  ;;  %v1349_v36 = vcvt.f32.s32 %v6878_v42 }
 0x42e   : > { %5712 = vmatpush1.bf16.msra.mxu0 %v5711_v22  ;;  %v4780_v22 = vld [vmem:[%s9148_s6 + $0x1f8] sm:$0xff] }
 0x42f   : > { %5714 = vmatprep.subr.bf16.mxu0 %v5713_v17  ;;  %v5731_v17 = vpack.c.bf16 %v4775_v57, %v4773_v9  ;;  %v5733_v33 = vpack.c.bf16 %v4780_v22, %v4778_v21  ;;  %v1365_v9 = vcvt.f32.s32 %v6895_v24  ;;  %v1381_v21 = vcvt.f32.s32 %v6900_v7 }
 0x431   : > { %v1382_v30 = vshll.u32 %v1381_v21, 16 }
 0x432   : > { %5716 = vmatpush1.bf16.msra.mxu0 %v5715_v38  ;;  %v1285_v38 = vcvt.f32.s32 %v6858_v5 }
 0x433   : > { %5718 = vmatprep.subr.bf16.mxu0 %v5717_v39 }
 0x434   : > { %v1286_v28 = vshll.u32 %v1285_v38, 16 }
 0x436   : > { %5720 = vmatpush1.bf16.msra.mxu0 %v5719_v6  ;;  %v1317_v6 = vcvt.f32.s32 %v6868_v56  ;;  %v1333_v56 = vcvt.f32.s32 %v6873_v41 }
 0x437   : > { %5722 = vmatprep.subr.bf16.mxu0 %v5721_v15 }
 0x438   : > { %v1318_v27 = vshll.u32 %v1317_v6, 16  ;;  %v1334_v14 = vshll.u32 %v1333_v56, 16 }
 0x43a   : > { %5724 = vmatpush1.bf16.msra.mxu0 %v5723_v50 }
 0x43b   : > { %5726 = vmatprep.subr.bf16.mxu0 %v5725_v16 }
 0x43e   : > { %5728 = vmatpush1.bf16.msra.mxu0 %v5727_v47  ;;  %v1350_v47 = vshll.u32 %v1349_v36, 16  ;;  %v1871_v36 = vadd.s32 4294967280, %v6608_v29 }
 0x43f   : > { %5730 = vmatprep.subr.bf16.mxu0 %v5729_v44 }
 0x442   : > { %5732 = vmatpush1.bf16.msra.mxu0 %v5731_v17  ;;  %v1366_v17 = vshll.u32 %v1365_v9, 16  ;;  %v1892_v9 = vadd.s32 4294967256, %v6608_v29 }
 0x443   : > { %5734 = vmatprep.subr.bf16.mxu0 %v5733_v33 }
 0x446   : > { %5736 = vmatpush1.bf16.msra.mxu0 %v5735_v19  ;;  %v1397_v19 = vcvt.f32.s32 %v6905_v10 }
 0x448   : > { %v1398_v48 = vshll.u32 %v1397_v19, 16 }
 0x47d   : > { %v1283_v39 = vpop.xlane.xlu0 %1282 }
 0x47e   : > { %v1284_v53 = vcvt.f32.s32 %v1283_v39  ;;  %v1413_v39 = vcvt.f32.s32 %v6910_v23 }
 0x480   : > { %v7047_v11 = vadd.s32 %v1286_v28, %v1284_v53  ;;  %v1414_v6 = vshll.u32 %v1413_v39, 16 }
 0x481   : > { %v1299_v15 = vpop.xlane.xlu1 %1298 }
 0x482   : > { %vm1528_vm0 = vcmp.eq.s32.totalorder %v6608_v29, %v7047_v11  ;;  %v1300_v18 = vcvt.f32.s32 %v1299_v15  ;;  %vm1529_vm1 = vcmp.eq.s32.totalorder %v6611_v34, %v7047_v11 }
 0x483   : > { %4685 = vmatprep.mubr.msk.f32.mxu1 %vm1529_vm1, %v9172_v31 }
 0x484   : > { %v7055_v5 = vadd.s32 %v1302_v35, %v1300_v18  ;;  %4686 = vmatmul.mubr.msk.f32.vlgmr.msra.gmra.mrb[16].mxu1 %vm1528_vm0, %v9172_v31  ;;  %v1429_v35 = vcvt.f32.s32 %v6915_v3 }
 0x485   : > { %v1315_v51 = vpop.xlane.xlu0 %1314 }
 0x486   : > { %v1316_v50 = vcvt.f32.s32 %v1315_v51  ;;  %vm1531_vm2 = vcmp.eq.s32.totalorder %v6611_v34, %v7055_v5  ;;  %vm1530_vm3 = vcmp.eq.s32.totalorder %v6608_v29, %v7055_v5  ;;  %v1864_v51 = vadd.s32 4294967288, %v6608_v29 }
 0x487   : > { %4687 = vmatprep.mubr.msk.f32.mxu1 %vm1531_vm2, %v9172_v31  ;;  %vm1869_vm2 = vcmask 130112  }
 0x488   : > { %v7064_v16 = vadd.s32 %v1318_v27, %v1316_v50  ;;  %4688 = vmatmul.mubr.msk.f32.gmra.mrb[18].mxu1 %vm1530_vm3, %v9172_v31  ;;  %v1445_v27 = vcvt.f32.s32 %v6920_v25  ;;  %v1430_v50 = vshll.u32 %v1429_v35, 16  ;;  %v7132_v25 = vsub.s32 %v6608_v29, %v6462_v4 }
 0x489   : > { %v1331_v13 = vpop.xlane.xlu1 %1330 }
 0x48a   : > { %v1332_v8 = vcvt.f32.s32 %v1331_v13  ;;  %vm1533_vm4 = vcmp.eq.s32.totalorder %v6611_v34, %v7064_v16  ;;  %vm1532_vm5 = vcmp.eq.s32.totalorder %v6608_v29, %v7064_v16  ;;  %v1878_v13 = vadd.s32 4294967272, %v6608_v29 }
 0x48b   : > { %4689 = vmatprep.mubr.msk.f32.mxu1 %vm1533_vm4, %v9172_v31 }
 0x48c   : > { %v7073_v41 = vadd.s32 %v1334_v14, %v1332_v8  ;;  %4690 = vmatmul.mubr.msk.f32.gmra.mrb[20].mxu1 %vm1532_vm5, %v9172_v31  ;;  %v1885_v14 = vadd.s32 4294967264, %v6608_v29  ;;  %vm1876_vm5 = vcmask 195712  }
 0x48d   : > { %v1347_v44 = vpop.xlane.xlu0 %1346 }
 0x48e   : > { %v1348_v42 = vcvt.f32.s32 %v1347_v44  ;;  %vm1535_vm6 = vcmp.eq.s32.totalorder %v6611_v34, %v7073_v41  ;;  %vm1534_vm7 = vcmp.eq.s32.totalorder %v6608_v29, %v7073_v41  ;;  %v7139_v44 = vsub.s32 %v1864_v51, %v6462_v4 }
 0x48f   : > { %4691 = vmatprep.mubr.msk.f32.mxu1 %vm1535_vm6, %v9172_v31  ;;  %vm1883_vm6 = vcmask 261312   ;;  %v7158_v19 = vsub.s32 %v1885_v14, %v6462_v4 }
 0x490   : > { %v7082_v57 = vadd.s32 %v1350_v47, %v1348_v42  ;;  %4692 = vmatmul.mubr.msk.f32.gmra.mrb[22].mxu1 %vm1534_vm7, %v9172_v31  ;;  %v1446_v47 = vshll.u32 %v1445_v27, 16  ;;  %v1899_v42 = vadd.s32 4294967248, %v6608_v29  ;;  %vm1890_vm7 = vcmask 326912  }
 0x491   : > { %v1363_v22 = vpop.xlane.xlu1 %1362  ;;  %v1927_v27 = vadd.s32 4294967216, %v6608_v29 }
 0x492   : > { %v1364_v33 = vcvt.f32.s32 %v1363_v22  ;;  %vm1537_vm8 = vcmp.eq.s32.totalorder %v6611_v34, %v7082_v57  ;;  %vm1536_vm9 = vcmp.eq.s32.totalorder %v6608_v29, %v7082_v57  ;;  %v1461_v22 = vcvt.f32.s32 %v6925_v45 }
 0x493   : > { %4693 = vmatprep.mubr.msk.f32.mxu1 %vm1537_vm8, %v9172_v31  ;;  %v1477_v45 = vcvt.f32.s32 %v6930_v54  ;;  %v1920_v54 = vadd.s32 4294967224, %v6608_v29  ;;  %vm1897_vm8 = vcmask 392512  }
 0x494   : > { %v7091_v24 = vadd.s32 %v1366_v17, %v1364_v33  ;;  %4694 = vmatmul.mubr.msk.f32.gmra.mrb[24].mxu1 %vm1536_vm9, %v9172_v31  ;;  %v7149_v33 = vsub.s32 %v1871_v36, %v6462_v4 }
 0x495   : > { %v1379_v26 = vpop.xlane.xlu0 %1378  ;;  %v1478_v51 = vshll.u32 %v1477_v45, 16 }
 0x496   : > { %v1380_v7 = vcvt.f32.s32 %v1379_v26  ;;  %vm1539_vm10 = vcmp.eq.s32.totalorder %v6611_v34, %v7091_v24  ;;  %vm1538_vm11 = vcmp.eq.s32.totalorder %v6608_v29, %v7091_v24  ;;  %v1906_v26 = vadd.s32 4294967240, %v6608_v29 }
 0x497   : > { %4695 = vmatprep.mubr.msk.f32.mxu1 %vm1539_vm10, %v9172_v31  ;;  %v1875_v36 = vrot.slane %v7064_v16, %v7149_v33 }
 0x498   : > { %v7100_v38 = vadd.s32 %v1382_v30, %v1380_v7  ;;  %4696 = vmatmul.mubr.msk.f32.gmra.mrb[26].mxu1 %vm1538_vm11, %v9172_v31  ;;  %v7152_v30 = vsub.s32 %v1878_v13, %v6462_v4  ;;  %v1913_v7 = vadd.s32 4294967232, %v6608_v29  ;;  %vm1904_vm11 = vcmask 458112  }
 0x499   : > { %v1395_v28 = vpop.xlane.xlu1 %1394  ;;  %v7193_v13 = vsub.s32 %v1920_v54, %v6462_v4 }
 0x49a   : > { %v1396_v53 = vcvt.f32.s32 %v1395_v28  ;;  %vm1541_vm12 = vcmp.eq.s32.totalorder %v6611_v34, %v7100_v38  ;;  %vm1540_vm13 = vcmp.eq.s32.totalorder %v6608_v29, %v7100_v38  ;;  %v1493_v28 = vcvt.f32.s32 %v6935_v20 }
 0x49b   : > { %4697 = vmatprep.mubr.msk.f32.mxu1 %vm1541_vm12, %v9172_v31  ;;  %v1509_v20 = vcvt.f32.s32 %v6940_v12  ;;  %vm1911_vm12 = vcmask 523712   ;;  %v1882_v16 = vrot.slane %v7073_v41, %v7152_v30  ;;  %v1525_v41 = vcvt.f32.s32 %v6945_v32 }
 0x49c   : > { %v7109_v10 = vadd.s32 %v1398_v48, %v1396_v53  ;;  %4698 = vmatmul.mubr.msk.f32.gmra.mrb[28].mxu1 %vm1540_vm13, %v9172_v31  ;;  %v7166_v48 = vsub.s32 %v1892_v9, %v6462_v4  ;;  %v7169_v53 = vsub.s32 %v1899_v42, %v6462_v4  ;;  %v1494_v12 = vshll.u32 %v1493_v28, 16 }
 0x49d   : > { %v1411_v15 = vpop.xlane.xlu0 %1410  ;;  %vm9171_vm13 = vcmask 589312   ;;  %v1510_v9 = vshll.u32 %v1509_v20, 16  ;;  %v7204_v42 = vsub.s32 %v1927_v27, %v6462_v4  ;;  %v1948_v28 = vadd.s32 4294967192, %v6608_v29 }
 0x49e   : > { %v1412_v23 = vcvt.f32.s32 %v1411_v15  ;;  %vm1543_vm14 = vcmp.eq.s32.totalorder %v6611_v34, %v7109_v10  ;;  %vm1542_vm15 = vcmp.eq.s32.totalorder %v6608_v29, %v7109_v10  ;;  %v1462_v15 = vshll.u32 %v1461_v22, 16 }
 0x49f   : > { %4699 = vmatprep.mubr.msk.f32.mxu1 %vm1543_vm14, %v9172_v31  ;;  %vm9169_vm14 = vcmask 654912   ;;  %v1889_v22 = vrot.slane %v7082_v57, %v7158_v19 }
 0x4a0   : > { %v7118_v18 = vadd.s32 %v1414_v6, %v1412_v23  ;;  %4700 = vmatmul.mubr.msk.f32.gmra.mrb[30].mxu1 %vm1542_vm15, %v9172_v31  ;;  %v7178_v23 = vsub.s32 %v1906_v26, %v6462_v4 }
 0x4a1   : > { %v1427_v56 = vpop.xlane.xlu1 %1426 }
 0x4a2   : > { %v1428_v3 = vcvt.f32.s32 %v1427_v56  ;;  %vm1545_vm0 = vcmp.eq.s32.totalorder %v6611_v34, %v7118_v18  ;;  %vm1544_vm1 = vcmp.eq.s32.totalorder %v6608_v29, %v7118_v18  ;;  %v1868_v56 = vrot.slane %v7055_v5, %v7139_v44 }
 0x4a3   : > { %4701 = vmatprep.mubr.msk.f32.mxu1 %vm1545_vm0, %v9172_v31  ;;  %v1863_v5 = vrot.slane %v7047_v11, %v7132_v25  ;;  %v1910_v32 = vrot.slane %v7109_v10, %v7178_v23 }
 0x4a4   : > { %v7135_v8 = vadd.s32 %v1430_v50, %v1428_v3  ;;  %4702 = vmatmul.mubr.msk.f32.gmra.mrb[32].mxu1 %vm1544_vm1, %v9172_v31  ;;  %v7185_v50 = vsub.s32 %v1913_v7, %v6462_v4  ;;  %vm9170_vm1 = vcmask 720512   ;;  %v1896_v7 = vrot.slane %v7091_v24, %v7166_v48 }
 0x4a5   : > { %v1443_v21 = vpop.xlane.xlu0 %1442  ;;  %v1870_v11 = vsel %vm1869_vm2, %v1868_v56, %v1863_v5  ;;  %v1955_v24 = vadd.s32 4294967184, %v6608_v29  ;;  %v1962_v5 = vadd.s32 4294967176, %v6608_v29 }
 0x4a6   : > { %v1444_v17 = vcvt.f32.s32 %v1443_v21  ;;  %vm1547_vm3 = vcmp.eq.s32.totalorder %v6611_v34, %v7135_v8  ;;  %vm1546_vm4 = vcmp.eq.s32.totalorder %v6608_v29, %v7135_v8  ;;  %v1934_v21 = vadd.s32 4294967208, %v6608_v29 }
 0x4a7   : > { %4703 = vmatprep.mubr.msk.f32.mxu1 %vm1547_vm3, %v9172_v31  ;;  %v1877_v45 = vsel %vm1876_vm5, %v1875_v36, %v1870_v11  ;;  %v1924_v56 = vrot.slane %v7135_v8, %v7193_v13  ;;  %v7241_v36 = vsub.s32 %v1948_v28, %v6462_v4 }
 0x4a8   : > { %v7161_v39 = vadd.s32 %v1446_v47, %v1444_v17  ;;  %4704 = vmatmul.mubr.msk.f32.gmra.mrb[34].mxu1 %vm1546_vm4, %v9172_v31  ;;  %v1941_v17 = vadd.s32 4294967200, %v6608_v29 }
 0x4a9   : > { %v1459_v6 = vpop.xlane.xlu1 %1458 }
 0x4aa   : > { %v1460_v35 = vcvt.f32.s32 %v1459_v6  ;;  %vm1549_vm9 = vcmp.eq.s32.totalorder %v6611_v34, %v7161_v39  ;;  %vm1548_vm10 = vcmp.eq.s32.totalorder %v6608_v29, %v7161_v39  ;;  %v1903_v6 = vrot.slane %v7100_v38, %v7169_v53 }
 0x4ab   : > { %4705 = vmatprep.mubr.msk.f32.mxu1 %vm1549_vm9, %v9172_v31  ;;  %v1917_v38 = vrot.slane %v7118_v18, %v7185_v50  ;;  %v7234_v27 = vsub.s32 %v1941_v17, %v6462_v4  ;;  %v1931_v8 = vrot.slane %v7161_v39, %v7204_v42 }
 0x4ac   : > { %v7187_v3 = vadd.s32 %v1462_v15, %v1460_v35  ;;  %4706 = vmatmul.mubr.msk.f32.gmra.mrb[36].mxu1 %vm1548_vm10, %v9172_v31  ;;  %v1884_v15 = vsel %vm1883_vm6, %v1882_v16, %v1877_v45  ;;  %v7226_v35 = vsub.s32 %v1934_v21, %v6462_v4  ;;  %v7251_v21 = vsub.s32 %v1955_v24, %v6462_v4 }
 0x4ad   : > { %v1475_v14 = vpop.xlane.xlu0 %1474  ;;  %v1891_v20 = vsel %vm1890_vm7, %v1889_v22, %v1884_v15  ;;  %v7264_v45 = vsub.s32 %v1962_v5, %v6462_v4 }
 0x4ae   : > { %v1476_v47 = vcvt.f32.s32 %v1475_v14  ;;  %vm1551_vm15 = vcmp.eq.s32.totalorder %v6611_v34, %v7187_v3  ;;  %vm1550_vm0 = vcmp.eq.s32.totalorder %v6608_v29, %v7187_v3  ;;  %v1898_v10 = vsel %vm1897_vm8, %v1896_v7, %v1891_v20 }
 0x4af   : > { %4707 = vmatprep.mubr.msk.f32.mxu1 %vm1551_vm15, %v9172_v31  ;;  %v1905_v18 = vsel %vm1904_vm11, %v1903_v6, %v1898_v10  ;;  %vm1939_vm15 = vcmask 786112   ;;  %v1938_v22 = vrot.slane %v7187_v3, %v7226_v35  ;;  %9314 = vst [vmem:[#allocation32_spill] sm:$0xff] %v7264_v45 }
 0x4b0   : > { %v1479_v26 = vadd.s32 %v1478_v51, %v1476_v47  ;;  %4708 = vmatmul.mubr.msk.f32.gmra.mrb[38].mxu1 %vm1550_vm0, %v9172_v31  ;;  %v1912_v16 = vsel %vm1911_vm12, %v1910_v32, %v1905_v18  ;;  %vm1946_vm0 = vcmask 851712   ;;  %v9317_v18 = vmov 0.0  }
 0x4b1   : > { %v1491_v54 = vpop.xlane.xlu1 %1490  ;;  %v1919_v11 = vsel %vm9171_vm13, %v1917_v38, %v1912_v16 }
 0x4b2   : > { %v1492_v57 = vcvt.f32.s32 %v1491_v54  ;;  %vm1553_vm3 = vcmp.eq.s32.totalorder %v6611_v34, %v1479_v26  ;;  %vm1552_vm4 = vcmp.eq.s32.totalorder %v6608_v29, %v1479_v26  ;;  %v1945_v39 = vrot.slane %v1479_v26, %v7234_v27 }
 0x4b3   : > { %4709 = vmatprep.mubr.msk.f32.mxu1 %vm1553_vm3, %v9172_v31 }
 0x4b4   : > { %v1495_v51 = vadd.s32 %v1494_v12, %v1492_v57  ;;  %4710 = vmatmul.mubr.msk.f32.gmra.mrb[40].mxu1 %vm1552_vm4, %v9172_v31  ;;  %v1526_v12 = vshll.u32 %v1525_v41, 16  ;;  %v1926_v41 = vsel %vm9169_vm14, %v1924_v56, %v1919_v11  ;;  %vm9248_vm14 = vcmask 1048512  }
 0x4b5   : > { %v1507_v14 = vpop.xlane.xlu0 %1506  ;;  %v1933_v3 = vsel %vm9170_vm1, %v1931_v8, %v1926_v41 }
 0x4b6   : > { %v1508_v47 = vcvt.f32.s32 %v1507_v14  ;;  %vm1555_vm9 = vcmp.eq.s32.totalorder %v6611_v34, %v1495_v51  ;;  %vm1554_vm10 = vcmp.eq.s32.totalorder %v6608_v29, %v1495_v51  ;;  %v1952_v28 = vrot.slane %v1495_v51, %v7241_v36 }
 0x4b7   : > { %4711 = vmatprep.mubr.msk.f32.mxu1 %vm1555_vm9, %v9172_v31  ;;  %vm1953_vm9 = vcmask 917312   ;;  %v1940_v26 = vsel %vm1939_vm15, %v1938_v22, %v1933_v3 }
 0x4b8   : > { %v1511_v17 = vadd.s32 %v1510_v9, %v1508_v47  ;;  %4712 = vmatmul.mubr.msk.f32.gmra.mrb[42].mxu1 %vm1554_vm10, %v9172_v31  ;;  %vm9249_vm10 = vcmask 982912   ;;  %v1947_v6 = vsel %vm1946_vm0, %v1945_v39, %v1940_v26 }
 0x4b9   : > { %v1523_v7 = vpop.xlane.xlu1 %1522  ;;  %v1954_v57 = vsel %vm1953_vm9, %v1952_v28, %v1947_v6 }
 0x4ba   : > { %v1524_v54 = vcvt.f32.s32 %v1523_v7  ;;  %vm1557_vm3 = vcmp.eq.s32.totalorder %v6611_v34, %v1511_v17  ;;  %vm1556_vm4 = vcmp.eq.s32.totalorder %v6608_v29, %v1511_v17  ;;  %v1959_v9 = vrot.slane %v1511_v17, %v7251_v21 }
 0x4bb   : > { %4713 = vmatprep.mubr.msk.f32.mxu1 %vm1557_vm3, %v9172_v31 }
 0x4bc   : > { %v1527_v4 = vadd.s32 %v1526_v12, %v1524_v54  ;;  %4714 = vmatmul.mubr.msk.f32.gmra.mrb[44].mxu1 %vm1556_vm4, %v9172_v31  ;;  %v1961_v32 = vsel %vm9249_vm10, %v1959_v9, %v1954_v57 }
 0x4be   : > { %v1966_v15 = vrot.slane %v1527_v4, %v7264_v45  ;;  %vm1559_vm1 = vcmp.eq.s32.totalorder %v6611_v34, %v1527_v4  ;;  %vm1558_vm13 = vcmp.eq.s32.totalorder %v6608_v29, %v1527_v4 }
 0x4bf   : > { %4715 = vmatprep.mubr.msk.f32.mxu1 %vm1559_vm1, %v9172_v31 }
 0x4c0   : > { %4716 = vmatmul.mubr.msk.f32.gmra.mrb[46].mxu1 %vm1558_vm13, %v9172_v31  ;;  %v1968_v24 = vsel %vm9248_vm14, %v1966_v15, %v1961_v32 }
 0x4c1   : > { %1969 = vst [vmem:[%s7284_s21] sm:$0x1] %v1968_v24 }
 0x557   : > { %v5081_v20 = vpop.f32.mrb[16].mxu1 }
 0x558   : > { %v5082_v38 = vpop.f32.mrb[17].mxu1 }
 0x559   : > { %v7287_v51 = vadd.f32 %v5082_v38, %v5081_v20 }
 0x55b   : > { %9315 = vst [vmem:[#allocation33_spill] sm:$0xff] %v7287_v51  ;;  %v7291_v10 = vsub.f32 %v6397_v37, %v7287_v51  ;;  %v5084_v56 = vpop.f32.mrb[18].mxu1 }
 0x55c   : > { %v5085_v14 = vpop.f32.mrb[19].mxu1 }
 0x55d   : > { %v7293_v5 = vadd.f32 %v5085_v14, %v5084_v56  ;;  %2103 = vmatmul.mubr.f32.vlgmr.msra.gmra.mrb[48].mxu0 %v7291_v10 }
 0x55e   : > { %2108 = vmatprep.mubr.f32.mxu0 %v9317_v18 }
 0x55f   : > { %9316 = vst [vmem:[#allocation34_spill] sm:$0xff] %v7293_v5  ;;  %v5087_v47 = vpop.f32.mrb[20].mxu1  ;;  %v7299_v12 = vsub.f32 %v6401_v40, %v7293_v5 }
 0x560   : > { %v5088_v16 = vpop.f32.mrb[21].mxu1 }
 0x561   : > { %9318 = vst [vmem:[#allocation35_spill] sm:$0xff] %v7299_v12  ;;  %v7301_v8 = vadd.f32 %v5088_v16, %v5087_v47  ;;  %2109 = vmatmul.mubr.f32.gmra.mrb[50].mxu0 %v7299_v12  ;;  %v4740_v12 = vld [vmem:[%s9147_s5 + $0x1b8] sm:$0xff] }
 0x562   : > { %2114 = vmatprep.mubr.f32.mxu0 %v9317_v18 }
 0x563   : > { %9319 = vst [vmem:[#allocation36_spill] sm:$0xff] %v7301_v8  ;;  %v5090_v11 = vpop.f32.mrb[22].mxu1  ;;  %v7307_v22 = vsub.f32 %v6405_v43, %v7301_v8 }
 0x564   : > { %v5091_v17 = vpop.f32.mrb[23].mxu1 }
 0x565   : > { %9320 = vst [vmem:[#allocation37_spill] sm:$0xff] %v7307_v22  ;;  %v7309_v41 = vadd.f32 %v5091_v17, %v5090_v11  ;;  %2115 = vmatmul.mubr.f32.gmra.mrb[52].mxu0 %v7307_v22  ;;  %v4738_v22 = vld [vmem:[%s9147_s5 + $0x1a8] sm:$0xff] }
 0x566   : > { %2120 = vmatprep.mubr.f32.mxu0 %v9317_v18 }
 0x567   : > { %9321 = vst [vmem:[#allocation38_spill] sm:$0xff] %v7309_v41  ;;  %v5093_v39 = vpop.f32.mrb[24].mxu1  ;;  %v7315_v7 = vsub.f32 %v6409_v46, %v7309_v41 }
 0x568   : > { %v5094_v28 = vpop.f32.mrb[25].mxu1 }
 0x569   : > { %9322 = vst [vmem:[#allocation39_spill] sm:$0xff] %v7315_v7  ;;  %v7317_v54 = vadd.f32 %v5094_v28, %v5093_v39  ;;  %2121 = vmatmul.mubr.f32.gmra.mrb[54].mxu0 %v7315_v7 }
 0x56a   : > { %2126 = vmatprep.mubr.f32.mxu0 %v9317_v18 }
 0x56b   : > { %9323 = vst [vmem:[#allocation40_spill] sm:$0xff] %v7317_v54  ;;  %v5096_v3 = vpop.f32.mrb[26].mxu1  ;;  %v7323_v9 = vsub.f32 %v6413_v49, %v7317_v54 }
 0x56c   : > { %v5097_v26 = vpop.f32.mrb[27].mxu1 }
 0x56d   : > { %9324 = vst [vmem:[#allocation41_spill] sm:$0xff] %v7323_v9  ;;  %v7325_v4 = vadd.f32 %v5097_v26, %v5096_v3  ;;  %2127 = vmatmul.mubr.f32.gmra.mrb[56].mxu0 %v7323_v9 }
 0x56e   : > { %2132 = vmatprep.mubr.f32.mxu0 %v9317_v18 }
 0x56f   : > { %9325 = vst [vmem:[#allocation42_spill] sm:$0xff] %v7325_v4  ;;  %v5099_v6 = vpop.f32.mrb[28].mxu1  ;;  %v7331_v57 = vsub.f32 %v6417_v52, %v7325_v4 }
 0x570   : > { %v5100_v15 = vpop.f32.mrb[29].mxu1 }
 0x571   : > { %9326 = vst [vmem:[#allocation43_spill] sm:$0xff] %v7331_v57  ;;  %v7333_v32 = vadd.f32 %v5100_v15, %v5099_v6  ;;  %2133 = vmatmul.mubr.f32.gmra.mrb[58].mxu0 %v7331_v57 }
 0x572   : > { %2138 = vmatprep.mubr.f32.mxu0 %v9317_v18 }
 0x573   : > { %9327 = vst [vmem:[#allocation44_spill] sm:$0xff] %v7333_v32  ;;  %v5102_v24 = vpop.f32.mrb[30].mxu1  ;;  %v7339_v20 = vsub.f32 %v6421_v55, %v7333_v32 }
 0x574   : > { %v5103_v38 = vpop.f32.mrb[31].mxu1 }
 0x575   : > { %9328 = vst [vmem:[#allocation45_spill] sm:$0xff] %v7339_v20  ;;  %v7341_v56 = vadd.f32 %v5103_v38, %v5102_v24  ;;  %2139 = vmatmul.mubr.f32.gmra.mrb[60].mxu0 %v7339_v20 }
 0x576   : > { %2144 = vmatprep.mubr.f32.mxu0 %v9317_v18 }
 0x577   : > { %9329 = vst [vmem:[#allocation46_spill] sm:$0xff] %v7341_v56  ;;  %v5105_v14 = vpop.f32.mrb[32].mxu1  ;;  %v7347_v47 = vsub.f32 %v6425_v58, %v7341_v56 }
 0x578   : > { %v5106_v16 = vpop.f32.mrb[33].mxu1 }
 0x579   : > { %9330 = vst [vmem:[#allocation47_spill] sm:$0xff] %v7347_v47  ;;  %v7349_v11 = vadd.f32 %v5106_v16, %v5105_v14  ;;  %2145 = vmatmul.mubr.f32.gmra.mrb[62].mxu0 %v7347_v47 }
 0x57a   : > { %2150 = vmatprep.mubr.f32.mxu0 %v9317_v18 }
 0x57b   : > { %9331 = vst [vmem:[#allocation48_spill] sm:$0xff] %v7349_v11  ;;  %v5108_v17 = vpop.f32.mrb[34].mxu1  ;;  %v7355_v39 = vsub.f32 %v6429_v59, %v7349_v11 }
 0x57c   : > { %v5109_v28 = vpop.f32.mrb[35].mxu1 }
 0x57d   : > { %9332 = vst [vmem:[#allocation49_spill] sm:$0xff] %v7355_v39  ;;  %v7357_v3 = vadd.f32 %v5109_v28, %v5108_v17  ;;  %2151 = vmatmul.mubr.f32.gmra.mrb[64].mxu0 %v7355_v39 }
 0x57e   : > { %2156 = vmatprep.mubr.f32.mxu0 %v9317_v18 }
 0x57f   : > { %9333 = vst [vmem:[#allocation50_spill] sm:$0xff] %v7357_v3  ;;  %v5111_v26 = vpop.f32.mrb[36].mxu1  ;;  %v7363_v6 = vsub.f32 %v6433_v60, %v7357_v3 }
 0x580   : > { %v5112_v15 = vpop.f32.mrb[37].mxu1 }
 0x581   : > { %9334 = vst [vmem:[#allocation51_spill] sm:$0xff] %v7363_v6  ;;  %v7365_v24 = vadd.f32 %v5112_v15, %v5111_v26  ;;  %2157 = vmatmul.mubr.f32.gmra.mrb[66].mxu0 %v7363_v6 }
 0x582   : > { %2162 = vmatprep.mubr.f32.mxu0 %v9317_v18 }
 0x583   : > { %9335 = vst [vmem:[#allocation52_spill] sm:$0xff] %v7365_v24  ;;  %v5114_v38 = vpop.f32.mrb[38].mxu1  ;;  %v7371_v14 = vsub.f32 %v6437_v61, %v7365_v24 }
 0x584   : > { %v5115_v16 = vpop.f32.mrb[39].mxu1 }
 0x585   : > { %9336 = vst [vmem:[#allocation53_spill] sm:$0xff] %v7371_v14  ;;  %v7373_v17 = vadd.f32 %v5115_v16, %v5114_v38  ;;  %2163 = vmatmul.mubr.f32.gmra.mrb[68].mxu0 %v7371_v14 }
 0x586   : > { %2168 = vmatprep.mubr.f32.mxu0 %v9317_v18 }
 0x587   : > { %9337 = vst [vmem:[#allocation54_spill] sm:$0xff] %v7373_v17  ;;  %v5117_v28 = vpop.f32.mrb[40].mxu1  ;;  %v7379_v26 = vsub.f32 %v6441_v62, %v7373_v17 }
 0x588   : > { %v5118_v15 = vpop.f32.mrb[41].mxu1 }
 0x589   : > { %9338 = vst [vmem:[#allocation55_spill] sm:$0xff] %v7379_v26  ;;  %v7381_v31 = vadd.f32 %v5118_v15, %v5117_v28  ;;  %2169 = vmatmul.mubr.f32.gmra.mrb[70].mxu0 %v7379_v26 }
 0x58a   : > { %2174 = vmatprep.mubr.f32.mxu0 %v9317_v18 }
 0x58b   : > { %9339 = vst [vmem:[#allocation56_spill] sm:$0xff] %v7381_v31  ;;  %v5120_v24 = vpop.f32.mrb[42].mxu1  ;;  %v7387_v38 = vsub.f32 %v6445_v63, %v7381_v31 }
 0x58c   : > { %v5121_v16 = vpop.f32.mrb[43].mxu1 }
 0x58d   : > { %9340 = vst [vmem:[#allocation57_spill] sm:$0xff] %v7387_v38  ;;  %v7389_v61 = vadd.f32 %v5121_v16, %v5120_v24  ;;  %2175 = vmatmul.mubr.f32.gmra.mrb[72].mxu0 %v7387_v38 }
 0x58e   : > { %2180 = vmatprep.mubr.f32.mxu0 %v9317_v18 }
 0x58f   : > { %9341 = vst [vmem:[#allocation58_spill] sm:$0xff] %v7389_v61  ;;  %v5123_v17 = vpop.f32.mrb[44].mxu1  ;;  %v7395_v28 = vsub.f32 %v6449_v0, %v7389_v61 }
 0x590   : > { %v5124_v15 = vpop.f32.mrb[45].mxu1 }
 0x591   : > { %9342 = vst [vmem:[#allocation59_spill] sm:$0xff] %v7395_v28  ;;  %v7397_v62 = vadd.f32 %v5124_v15, %v5123_v17  ;;  %2181 = vmatmul.mubr.f32.gmra.mrb[74].mxu0 %v7395_v28  ;;  %v4781_v15 = vld [vmem:[%s9149_s7 + $0x2] sm:$0x3] }
 0x592   : > { %2186 = vmatprep.mubr.f32.mxu0 %v9317_v18 }
 0x593   : > { %9343 = vst [vmem:[#allocation60_spill] sm:$0xff] %v7397_v62  ;;  %v5126_v31 = vpop.f32.mrb[46].mxu1  ;;  %v7403_v24 = vsub.f32 %v6453_v1, %v7397_v62  ;;  %v9347_v62 = vld [vmem:[#allocation30_spill] sm:$0xff] }
 0x594   : > { %v5127_v16 = vpop.f32.mrb[47].mxu1  ;;  %v7419_v1 = vrot.slane %v4781_v15, %v9347_v62 }
 0x595   : > { %9344 = vst [vmem:[#allocation61_spill] sm:$0xff] %v7403_v24  ;;  %v7405_v63 = vadd.f32 %v5127_v16, %v5126_v31  ;;  %2187 = vmatmul.mubr.f32.gmra.mrb[76].mxu0 %v7403_v24  ;;  %v9348_v16 = vld [vmem:[#allocation31_spill] sm:$0xff] }
 0x596   : > { %2192 = vmatprep.mubr.f32.mxu0 %v9317_v18  ;;  %v7422_v61 = vrot.slane %v4781_v15, %v9348_v16 }
 0x597   : > { %9345 = vst [vmem:[#allocation62_spill] sm:$0xff] %v7405_v63  ;;  %v7411_v17 = vsub.f32 %v6457_v2, %v7405_v63 }
 0x599   : > { %9346 = vst [vmem:[#allocation63_spill] sm:$0xff] %v7411_v17  ;;  %2193 = vmatmul.mubr.f32.gmra.mrb[78].mxu0 %v7411_v17 }
 0x59a   : > { %3186 = vmatprep.mubr.f32.mxu0 %v9317_v18 }
 0x630   : > { %v2104_v31 = vpop.f32.mrb[48].mxu0 }
 0x631   : > { %v2199_v0 = vmul.f32 2.0, %v2104_v31  ;;  %v2106_v3 = vpop.f32.mrb[49].mxu0 }
 0x632   : > { %v2200_v60 = vmul.f32 2.0, %v2106_v3 }
 0x633   : > { %v7425_v63 = vsub.f32 %v7419_v1, %v2199_v0 }
 0x634   : > { %v7428_v2 = vsub.f32 %v7422_v61, %v2200_v60  ;;  %v2110_v11 = vpop.f32.mrb[50].mxu0 }
 0x635   : > { %v2201_v59 = vmul.f32 2.0, %v2110_v11  ;;  %v2112_v56 = vpop.f32.mrb[51].mxu0 }
 0x636   : > { %v2202_v58 = vmul.f32 2.0, %v2112_v56  ;;  %v2274_v32 = vmin.f32 %v7425_v63, %v7428_v2 }
 0x637   : > { %v7433_v55 = vsub.f32 %v7419_v1, %v2201_v59 }
 0x638   : > { %v7436_v15 = vsub.f32 %v7422_v61, %v2202_v58  ;;  %2275 = vmin.xlane.f32.xlu0 %v2274_v32  ;;  %v2116_v3 = vpop.f32.mrb[52].mxu0 }
 0x639   : > { %v2203_v0 = vmul.f32 2.0, %v2116_v3  ;;  %v2118_v31 = vpop.f32.mrb[53].mxu0 }
 0x63a   : > { %v2204_v4 = vmul.f32 2.0, %v2118_v31  ;;  %v2277_v60 = vmin.f32 %v7433_v55, %v7436_v15 }
 0x63b   : > { %v7441_v11 = vsub.f32 %v7419_v1, %v2203_v0 }
 0x63c   : > { %v7444_v56 = vsub.f32 %v7422_v61, %v2204_v4  ;;  %2278 = vmin.xlane.f32.xlu1 %v2277_v60  ;;  %v2122_v59 = vpop.f32.mrb[54].mxu0 }
 0x63d   : > { %v2205_v52 = vmul.f32 2.0, %v2122_v59  ;;  %v2124_v54 = vpop.f32.mrb[55].mxu0 }
 0x63e   : > { %v2206_v58 = vmul.f32 2.0, %v2124_v54  ;;  %v2280_v32 = vmin.f32 %v7441_v11, %v7444_v56 }
 0x63f   : > { %v7449_v3 = vsub.f32 %v7419_v1, %v2205_v52 }
 0x640   : > { %v7452_v31 = vsub.f32 %v7422_v61, %v2206_v58  ;;  %2281 = vmin.xlane.f32.xlu0 %v2280_v32  ;;  %v2128_v0 = vpop.f32.mrb[56].mxu0 }
 0x641   : > { %v2207_v49 = vmul.f32 2.0, %v2128_v0  ;;  %v2130_v41 = vpop.f32.mrb[57].mxu0 }
 0x642   : > { %v2208_v4 = vmul.f32 2.0, %v2130_v41  ;;  %v2283_v60 = vmin.f32 %v7449_v3, %v7452_v31 }
 0x643   : > { %v7457_v59 = vsub.f32 %v7419_v1, %v2207_v49 }
 0x644   : > { %v7460_v54 = vsub.f32 %v7422_v61, %v2208_v4  ;;  %2284 = vmin.xlane.f32.xlu1 %v2283_v60  ;;  %v2134_v52 = vpop.f32.mrb[58].mxu0 }
 0x645   : > { %v2209_v46 = vmul.f32 2.0, %v2134_v52  ;;  %v2136_v8 = vpop.f32.mrb[59].mxu0 }
 0x646   : > { %v2210_v58 = vmul.f32 2.0, %v2136_v8  ;;  %v2286_v32 = vmin.f32 %v7457_v59, %v7460_v54 }
 0x647   : > { %v7465_v0 = vsub.f32 %v7419_v1, %v2209_v46 }
 0x648   : > { %v7468_v41 = vsub.f32 %v7422_v61, %v2210_v58  ;;  %2287 = vmin.xlane.f32.xlu0 %v2286_v32  ;;  %v2140_v49 = vpop.f32.mrb[60].mxu0 }
 0x649   : > { %v2211_v43 = vmul.f32 2.0, %v2140_v49  ;;  %v2142_v51 = vpop.f32.mrb[61].mxu0 }
 0x64a   : > { %v2212_v4 = vmul.f32 2.0, %v2142_v51  ;;  %v2289_v60 = vmin.f32 %v7465_v0, %v7468_v41 }
 0x64b   : > { %v7473_v52 = vsub.f32 %v7419_v1, %v2211_v43 }
 0x64c   : > { %v7476_v8 = vsub.f32 %v7422_v61, %v2212_v4  ;;  %2290 = vmin.xlane.f32.xlu1 %v2289_v60  ;;  %v2146_v46 = vpop.f32.mrb[62].mxu0 }
 0x64d   : > { %v2213_v37 = vmul.f32 2.0, %v2146_v46  ;;  %v2148_v5 = vpop.f32.mrb[63].mxu0 }
 0x64e   : > { %v2214_v58 = vmul.f32 2.0, %v2148_v5  ;;  %v2292_v32 = vmin.f32 %v7473_v52, %v7476_v8 }
 0x64f   : > { %v7481_v49 = vsub.f32 %v7419_v1, %v2213_v37 }
 0x650   : > { %v7484_v51 = vsub.f32 %v7422_v61, %v2214_v58  ;;  %2293 = vmin.xlane.f32.xlu0 %v2292_v32  ;;  %v2152_v43 = vpop.f32.mrb[64].mxu0 }
 0x651   : > { %v2215_v40 = vmul.f32 2.0, %v2152_v43  ;;  %v2154_v16 = vpop.f32.mrb[65].mxu0 }
 0x652   : > { %v2216_v4 = vmul.f32 2.0, %v2154_v16  ;;  %v2295_v60 = vmin.f32 %v7481_v49, %v7484_v51 }
 0x653   : > { %v7489_v46 = vsub.f32 %v7419_v1, %v2215_v40 }
 0x654   : > { %v7492_v5 = vsub.f32 %v7422_v61, %v2216_v4  ;;  %2296 = vmin.xlane.f32.xlu1 %v2295_v60  ;;  %v2158_v37 = vpop.f32.mrb[66].mxu0 }
 0x655   : > { %v2217_v62 = vmul.f32 2.0, %v2158_v37  ;;  %v2160_v17 = vpop.f32.mrb[67].mxu0 }
 0x656   : > { %v2218_v58 = vmul.f32 2.0, %v2160_v17  ;;  %v2298_v32 = vmin.f32 %v7489_v46, %v7492_v5 }
 0x657   : > { %v7497_v43 = vsub.f32 %v7419_v1, %v2217_v62 }
 0x658   : > { %v7500_v16 = vsub.f32 %v7422_v61, %v2218_v58  ;;  %2299 = vmin.xlane.f32.xlu0 %v2298_v32  ;;  %v2164_v40 = vpop.f32.mrb[68].mxu0 }
 0x659   : > { %v2219_v24 = vmul.f32 2.0, %v2164_v40  ;;  %v2166_v28 = vpop.f32.mrb[69].mxu0 }
 0x65a   : > { %v2220_v4 = vmul.f32 2.0, %v2166_v28  ;;  %v2301_v60 = vmin.f32 %v7497_v43, %v7500_v16 }
 0x65b   : > { %v7505_v37 = vsub.f32 %v7419_v1, %v2219_v24 }
 0x65c   : > { %v7508_v17 = vsub.f32 %v7422_v61, %v2220_v4  ;;  %2302 = vmin.xlane.f32.xlu1 %v2301_v60  ;;  %v2170_v62 = vpop.f32.mrb[70].mxu0 }
 0x65d   : > { %v2221_v38 = vmul.f32 2.0, %v2170_v62  ;;  %v2172_v26 = vpop.f32.mrb[71].mxu0 }
 0x65e   : > { %v2222_v58 = vmul.f32 2.0, %v2172_v26  ;;  %v2304_v32 = vmin.f32 %v7505_v37, %v7508_v17 }
 0x65f   : > { %v7513_v40 = vsub.f32 %v7419_v1, %v2221_v38 }
 0x660   : > { %v7516_v28 = vsub.f32 %v7422_v61, %v2222_v58  ;;  %2305 = vmin.xlane.f32.xlu0 %v2304_v32  ;;  %v2176_v24 = vpop.f32.mrb[72].mxu0 }
 0x661   : > { %v2223_v14 = vmul.f32 2.0, %v2176_v24  ;;  %v2178_v6 = vpop.f32.mrb[73].mxu0 }
 0x662   : > { %v2224_v4 = vmul.f32 2.0, %v2178_v6  ;;  %v2307_v60 = vmin.f32 %v7513_v40, %v7516_v28 }
 0x663   : > { %v7521_v62 = vsub.f32 %v7419_v1, %v2223_v14 }
 0x664   : > { %v7524_v26 = vsub.f32 %v7422_v61, %v2224_v4  ;;  %2308 = vmin.xlane.f32.xlu1 %v2307_v60  ;;  %v2182_v38 = vpop.f32.mrb[74].mxu0 }
 0x665   : > { %v2225_v39 = vmul.f32 2.0, %v2182_v38  ;;  %v2184_v47 = vpop.f32.mrb[75].mxu0 }
 0x666   : > { %v2226_v58 = vmul.f32 2.0, %v2184_v47  ;;  %v2310_v32 = vmin.f32 %v7521_v62, %v7524_v26 }
 0x667   : > { %v7529_v24 = vsub.f32 %v7419_v1, %v2225_v39 }
 0x668   : > { %v7532_v6 = vsub.f32 %v7422_v61, %v2226_v58  ;;  %2311 = vmin.xlane.f32.xlu0 %v2310_v32  ;;  %v2188_v14 = vpop.f32.mrb[76].mxu0 }
 0x669   : > { %v2227_v20 = vmul.f32 2.0, %v2188_v14  ;;  %v2190_v57 = vpop.f32.mrb[77].mxu0 }
 0x66a   : > { %v2228_v4 = vmul.f32 2.0, %v2190_v57  ;;  %v2313_v60 = vmin.f32 %v7529_v24, %v7532_v6 }
 0x66b   : > { %v7537_v38 = vsub.f32 %v7419_v1, %v2227_v20 }
 0x66c   : > { %v7540_v47 = vsub.f32 %v7422_v61, %v2228_v4  ;;  %2314 = vmin.xlane.f32.xlu1 %v2313_v60  ;;  %v2194_v39 = vpop.f32.mrb[78].mxu0 }
 0x66d   : > { %v2229_v9 = vmul.f32 2.0, %v2194_v39  ;;  %v2196_v7 = vpop.f32.mrb[79].mxu0 }
 0x66e   : > { %v2230_v58 = vmul.f32 2.0, %v2196_v7  ;;  %v2316_v32 = vmin.f32 %v7537_v38, %v7540_v47 }
 0x66f   : > { %v7545_v14 = vsub.f32 %v7419_v1, %v2229_v9 }
 0x670   : > { %v7548_v57 = vsub.f32 %v7422_v61, %v2230_v58  ;;  %2317 = vmin.xlane.f32.xlu0 %v2316_v32 }
 0x672   : > { %v2319_v20 = vmin.f32 %v7545_v14, %v7548_v57 }
 0x674   : > { %2320 = vmin.xlane.f32.xlu1 %v2319_v20 }
 0x6c5   : > { %v2276_v4 = vpop.xlane.xlu0 %2275 }
 0x6c6   : > { %vm2322_vm13 = vcmp.eq.f32.partialorder %v7425_v63, %v2276_v4  ;;  %vm2323_vm1 = vcmp.eq.f32.partialorder %v7428_v2, %v2276_v4 }
 0x6c7   : > { %v2354_v7 = vsel %vm2322_vm13, %v6608_v29, 256  ;;  %v2355_v60 = vsel %vm2323_vm1, %v6611_v34, 256 }
 0x6c8   : > { %vm2386_vm3 = vcmp.lt.s32.totalorder %v2354_v7, %v2355_v60 }
 0x6c9   : > { %v2279_v1 = vpop.xlane.xlu1 %2278  ;;  %v7556_v9 = vsel %vm2386_vm3, %v2354_v7, %v2355_v60 }
 0x6ca   : > { %vm2324_vm4 = vcmp.eq.f32.partialorder %v7433_v55, %v2279_v1  ;;  %vm2325_vm14 = vcmp.eq.f32.partialorder %v7436_v15, %v2279_v1  ;;  %v2389_v61 = vshra.s32 %v7556_v9, 16 }
 0x6cb   : > { %v2356_v39 = vsel %vm2324_vm4, %v6608_v29, 256  ;;  %v2357_v63 = vsel %vm2325_vm14, %v6611_v34, 256 }
 0x6cc   : > { %vm2402_vm10 = vcmp.lt.s32.totalorder %v2356_v39, %v2357_v63  ;;  %v7563_v2 = vcvt.s32.f32 %v2389_v61 }
 0x6cd   : > { %v2282_v58 = vpop.xlane.xlu0 %2281  ;;  %v7565_v32 = vsel %vm2402_vm10, %v2356_v39, %v2357_v63 }
 0x6ce   : > { %vm2326_vm13 = vcmp.eq.f32.partialorder %v7441_v11, %v2282_v58  ;;  %vm2327_vm1 = vcmp.eq.f32.partialorder %v7444_v56, %v2282_v58  ;;  %2392 = vmin.xlane.f32.xlu0 %v7563_v2  ;;  %v2405_v55 = vshra.s32 %v7565_v32, 16 }
 0x6cf   : > { %v2358_v15 = vsel %vm2326_vm13, %v6608_v29, 256  ;;  %v2359_v20 = vsel %vm2327_vm1, %v6611_v34, 256 }
 0x6d0   : > { %vm2418_vm3 = vcmp.lt.s32.totalorder %v2358_v15, %v2359_v20  ;;  %v7573_v4 = vcvt.s32.f32 %v2405_v55 }
 0x6d1   : > { %v2285_v7 = vpop.xlane.xlu1 %2284  ;;  %v7575_v60 = vsel %vm2418_vm3, %v2358_v15, %v2359_v20 }
 0x6d2   : > { %vm2328_vm14 = vcmp.eq.f32.partialorder %v7449_v3, %v2285_v7  ;;  %vm2329_vm10 = vcmp.eq.f32.partialorder %v7452_v31, %v2285_v7  ;;  %2408 = vmin.xlane.f32.xlu1 %v7573_v4  ;;  %v2421_v11 = vshra.s32 %v7575_v60, 16 }
 0x6d3   : > { %v2360_v56 = vsel %vm2328_vm14, %v6608_v29, 256  ;;  %v2361_v1 = vsel %vm2329_vm10, %v6611_v34, 256 }
 0x6d4   : > { %vm2434_vm4 = vcmp.lt.s32.totalorder %v2360_v56, %v2361_v1  ;;  %v7583_v61 = vcvt.s32.f32 %v2421_v11 }
 0x6d5   : > { %v2288_v39 = vpop.xlane.xlu0 %2287  ;;  %v7585_v63 = vsel %vm2434_vm4, %v2360_v56, %v2361_v1 }
 0x6d6   : > { %vm2330_vm13 = vcmp.eq.f32.partialorder %v7457_v59, %v2288_v39  ;;  %vm2331_vm1 = vcmp.eq.f32.partialorder %v7460_v54, %v2288_v39  ;;  %2424 = vmin.xlane.f32.xlu0 %v7583_v61  ;;  %v2437_v3 = vshra.s32 %v7585_v63, 16 }
 0x6d7   : > { %v2362_v31 = vsel %vm2330_vm13, %v6608_v29, 256  ;;  %v2363_v58 = vsel %vm2331_vm1, %v6611_v34, 256 }
 0x6d8   : > { %vm2450_vm3 = vcmp.lt.s32.totalorder %v2362_v31, %v2363_v58  ;;  %v7593_v55 = vcvt.s32.f32 %v2437_v3 }
 0x6d9   : > { %v2291_v15 = vpop.xlane.xlu1 %2290  ;;  %v7595_v20 = vsel %vm2450_vm3, %v2362_v31, %v2363_v58 }
 0x6da   : > { %vm2332_vm14 = vcmp.eq.f32.partialorder %v7465_v0, %v2291_v15  ;;  %vm2333_vm10 = vcmp.eq.f32.partialorder %v7468_v41, %v2291_v15  ;;  %2440 = vmin.xlane.f32.xlu1 %v7593_v55  ;;  %v2453_v59 = vshra.s32 %v7595_v20, 16 }
 0x6db   : > { %v2364_v54 = vsel %vm2332_vm14, %v6608_v29, 256  ;;  %v2365_v7 = vsel %vm2333_vm10, %v6611_v34, 256 }
 0x6dc   : > { %vm2466_vm4 = vcmp.lt.s32.totalorder %v2364_v54, %v2365_v7  ;;  %v7603_v11 = vcvt.s32.f32 %v2453_v59 }
 0x6dd   : > { %v2294_v56 = vpop.xlane.xlu0 %2293  ;;  %v7605_v1 = vsel %vm2466_vm4, %v2364_v54, %v2365_v7 }
 0x6de   : > { %vm2334_vm13 = vcmp.eq.f32.partialorder %v7473_v52, %v2294_v56  ;;  %vm2335_vm1 = vcmp.eq.f32.partialorder %v7476_v8, %v2294_v56  ;;  %2456 = vmin.xlane.f32.xlu0 %v7603_v11  ;;  %v2469_v0 = vshra.s32 %v7605_v1, 16 }
 0x6df   : > { %v2366_v41 = vsel %vm2334_vm13, %v6608_v29, 256  ;;  %v2367_v39 = vsel %vm2335_vm1, %v6611_v34, 256 }
 0x6e0   : > { %vm2482_vm3 = vcmp.lt.s32.totalorder %v2366_v41, %v2367_v39  ;;  %v7613_v3 = vcvt.s32.f32 %v2469_v0 }
 0x6e1   : > { %v2297_v31 = vpop.xlane.xlu1 %2296  ;;  %v7615_v58 = vsel %vm2482_vm3, %v2366_v41, %v2367_v39 }
 0x6e2   : > { %vm2336_vm14 = vcmp.eq.f32.partialorder %v7481_v49, %v2297_v31  ;;  %vm2337_vm10 = vcmp.eq.f32.partialorder %v7484_v51, %v2297_v31  ;;  %2472 = vmin.xlane.f32.xlu1 %v7613_v3  ;;  %v2485_v52 = vshra.s32 %v7615_v58, 16 }
 0x6e3   : > { %v2368_v8 = vsel %vm2336_vm14, %v6608_v29, 256  ;;  %v2369_v15 = vsel %vm2337_vm10, %v6611_v34, 256 }
 0x6e4   : > { %vm2498_vm4 = vcmp.lt.s32.totalorder %v2368_v8, %v2369_v15  ;;  %v7623_v59 = vcvt.s32.f32 %v2485_v52 }
 0x6e5   : > { %v2300_v54 = vpop.xlane.xlu0 %2299  ;;  %v7625_v7 = vsel %vm2498_vm4, %v2368_v8, %v2369_v15 }
 0x6e6   : > { %vm2338_vm13 = vcmp.eq.f32.partialorder %v7489_v46, %v2300_v54  ;;  %vm2339_vm1 = vcmp.eq.f32.partialorder %v7492_v5, %v2300_v54  ;;  %2488 = vmin.xlane.f32.xlu0 %v7623_v59  ;;  %v2501_v49 = vshra.s32 %v7625_v7, 16 }
 0x6e7   : > { %v2370_v51 = vsel %vm2338_vm13, %v6608_v29, 256  ;;  %v2371_v56 = vsel %vm2339_vm1, %v6611_v34, 256 }
 0x6e8   : > { %vm2514_vm3 = vcmp.lt.s32.totalorder %v2370_v51, %v2371_v56  ;;  %v7633_v0 = vcvt.s32.f32 %v2501_v49 }
 0x6e9   : > { %v2303_v41 = vpop.xlane.xlu1 %2302  ;;  %v7635_v39 = vsel %vm2514_vm3, %v2370_v51, %v2371_v56 }
 0x6ea   : > { %vm2340_vm14 = vcmp.eq.f32.partialorder %v7497_v43, %v2303_v41  ;;  %vm2341_vm10 = vcmp.eq.f32.partialorder %v7500_v16, %v2303_v41  ;;  %2504 = vmin.xlane.f32.xlu1 %v7633_v0  ;;  %v2517_v46 = vshra.s32 %v7635_v39, 16 }
 0x6eb   : > { %v2372_v5 = vsel %vm2340_vm14, %v6608_v29, 256  ;;  %v2373_v31 = vsel %vm2341_vm10, %v6611_v34, 256 }
 0x6ec   : > { %vm2530_vm4 = vcmp.lt.s32.totalorder %v2372_v5, %v2373_v31  ;;  %v7643_v52 = vcvt.s32.f32 %v2517_v46 }
 0x6ed   : > { %v2306_v8 = vpop.xlane.xlu0 %2305  ;;  %v7645_v15 = vsel %vm2530_vm4, %v2372_v5, %v2373_v31 }
 0x6ee   : > { %vm2342_vm13 = vcmp.eq.f32.partialorder %v7505_v37, %v2306_v8  ;;  %vm2343_vm1 = vcmp.eq.f32.partialorder %v7508_v17, %v2306_v8  ;;  %2520 = vmin.xlane.f32.xlu0 %v7643_v52  ;;  %v2533_v43 = vshra.s32 %v7645_v15, 16 }
 0x6ef   : > { %v2374_v16 = vsel %vm2342_vm13, %v6608_v29, 256  ;;  %v2375_v54 = vsel %vm2343_vm1, %v6611_v34, 256 }
 0x6f0   : > { %vm2546_vm3 = vcmp.lt.s32.totalorder %v2374_v16, %v2375_v54  ;;  %v7653_v49 = vcvt.s32.f32 %v2533_v43 }
 0x6f1   : > { %v2309_v51 = vpop.xlane.xlu1 %2308  ;;  %v7655_v56 = vsel %vm2546_vm3, %v2374_v16, %v2375_v54 }
 0x6f2   : > { %vm2344_vm14 = vcmp.eq.f32.partialorder %v7513_v40, %v2309_v51  ;;  %vm2345_vm10 = vcmp.eq.f32.partialorder %v7516_v28, %v2309_v51  ;;  %2536 = vmin.xlane.f32.xlu1 %v7653_v49  ;;  %v2549_v37 = vshra.s32 %v7655_v56, 16 }
 0x6f3   : > { %v2376_v17 = vsel %vm2344_vm14, %v6608_v29, 256  ;;  %v2377_v41 = vsel %vm2345_vm10, %v6611_v34, 256 }
 0x6f4   : > { %vm2562_vm4 = vcmp.lt.s32.totalorder %v2376_v17, %v2377_v41  ;;  %v7663_v46 = vcvt.s32.f32 %v2549_v37 }
 0x6f5   : > { %v2312_v5 = vpop.xlane.xlu0 %2311  ;;  %v7665_v31 = vsel %vm2562_vm4, %v2376_v17, %v2377_v41 }
 0x6f6   : > { %vm2346_vm13 = vcmp.eq.f32.partialorder %v7521_v62, %v2312_v5  ;;  %vm2347_vm1 = vcmp.eq.f32.partialorder %v7524_v26, %v2312_v5  ;;  %2552 = vmin.xlane.f32.xlu0 %v7663_v46  ;;  %v2565_v40 = vshra.s32 %v7665_v31, 16 }
 0x6f7   : > { %v2378_v28 = vsel %vm2346_vm13, %v6608_v29, 256  ;;  %v2379_v8 = vsel %vm2347_vm1, %v6611_v34, 256 }
 0x6f8   : > { %vm2578_vm3 = vcmp.lt.s32.totalorder %v2378_v28, %v2379_v8  ;;  %v7673_v43 = vcvt.s32.f32 %v2565_v40 }
 0x6f9   : > { %v2315_v16 = vpop.xlane.xlu1 %2314  ;;  %v7675_v54 = vsel %vm2578_vm3, %v2378_v28, %v2379_v8 }
 0x6fa   : > { %vm2348_vm14 = vcmp.eq.f32.partialorder %v7529_v24, %v2315_v16  ;;  %vm2349_vm10 = vcmp.eq.f32.partialorder %v7532_v6, %v2315_v16  ;;  %2568 = vmin.xlane.f32.xlu1 %v7673_v43  ;;  %v2581_v62 = vshra.s32 %v7675_v54, 16 }
 0x6fb   : > { %v2380_v26 = vsel %vm2348_vm14, %v6608_v29, 256  ;;  %v2381_v51 = vsel %vm2349_vm10, %v6611_v34, 256 }
 0x6fc   : > { %vm2594_vm4 = vcmp.lt.s32.totalorder %v2380_v26, %v2381_v51  ;;  %v7683_v37 = vcvt.s32.f32 %v2581_v62 }
 0x6fd   : > { %v2318_v17 = vpop.xlane.xlu0 %2317  ;;  %v7685_v41 = vsel %vm2594_vm4, %v2380_v26, %v2381_v51 }
 0x6fe   : > { %vm2350_vm13 = vcmp.eq.f32.partialorder %v7537_v38, %v2318_v17  ;;  %vm2351_vm1 = vcmp.eq.f32.partialorder %v7540_v47, %v2318_v17  ;;  %2584 = vmin.xlane.f32.xlu0 %v7683_v37  ;;  %v2597_v24 = vshra.s32 %v7685_v41, 16  ;;  %v4734_v17 = vld [vmem:[%s9147_s5 + $0x188] sm:$0xff] }
 0x6ff   : > { %v2382_v6 = vsel %vm2350_vm13, %v6608_v29, 256  ;;  %v2383_v5 = vsel %vm2351_vm1, %v6611_v34, 256 }
 0x700   : > { %vm2610_vm3 = vcmp.lt.s32.totalorder %v2382_v6, %v2383_v5  ;;  %v7693_v40 = vcvt.s32.f32 %v2597_v24  ;;  %v4717_v24 = vld [vmem:[%s9147_s5 + $0x100] sm:$0xff] }
 0x701   : > { %v2321_v28 = vpop.xlane.xlu1 %2320  ;;  %v7695_v8 = vsel %vm2610_vm3, %v2382_v6, %v2383_v5  ;;  %v4718_v5 = vld [vmem:[%s9147_s5 + $0x108] sm:$0xff] }
 0x702   : > { %vm2352_vm14 = vcmp.eq.f32.partialorder %v7545_v14, %v2321_v28  ;;  %vm2353_vm10 = vcmp.eq.f32.partialorder %v7548_v57, %v2321_v28  ;;  %2600 = vmin.xlane.f32.xlu1 %v7693_v40  ;;  %v2613_v38 = vshra.s32 %v7695_v8, 16  ;;  %v4733_v57 = vld [vmem:[%s9147_s5 + $0x180] sm:$0xff]  ;;  %v4735_v28 = vld [vmem:[%s9147_s5 + $0x190] sm:$0xff] }
 0x703   : > { %v2384_v47 = vsel %vm2352_vm14, %v6608_v29, 256  ;;  %v2385_v16 = vsel %vm2353_vm10, %v6611_v34, 256  ;;  %v5737_v6 = vpack.c.bf16 %v4734_v17, %v4733_v57  ;;  %v4720_v57 = vld [vmem:[%s9147_s5 + $0x118] sm:$0xff]  ;;  %v4737_v17 = vld [vmem:[%s9147_s5 + $0x1a0] sm:$0xff] }
 0x704   : > { %vm2626_vm4 = vcmp.lt.s32.totalorder %v2384_v47, %v2385_v16  ;;  %v7703_v62 = vcvt.s32.f32 %v2613_v38  ;;  %v4736_v38 = vld [vmem:[%s9147_s5 + $0x198] sm:$0xff] }
 0x705   : > { %v7705_v26 = vsel %vm2626_vm4, %v2384_v47, %v2385_v16  ;;  %v5739_v47 = vpack.c.bf16 %v4718_v5, %v4717_v24  ;;  %v5741_v16 = vpack.c.bf16 %v4736_v38, %v4735_v28  ;;  %5738 = vmatprep.subr.bf16.mxu1 %v5737_v6  ;;  %v5745_v5 = vpack.c.bf16 %v4738_v22, %v4737_v17  ;;  %v4721_v28 = vld [vmem:[%s9147_s5 + $0x120] sm:$0xff]  ;;  %v4722_v38 = vld [vmem:[%s9147_s5 + $0x128] sm:$0xff]  ;;  %v4739_v6 = vld [vmem:[%s9147_s5 + $0x1b0] sm:$0xff] }
 0x706   : > { %2616 = vmin.xlane.f32.xlu0 %v7703_v62  ;;  %v2629_v51 = vshra.s32 %v7705_v26, 16  ;;  %v5749_v22 = vpack.c.bf16 %v4740_v12, %v4739_v6  ;;  %v4742_v17 = vld [vmem:[%s9147_s5 + $0x1c8] sm:$0xff]  ;;  %v4744_v6 = vld [vmem:[%s9147_s5 + $0x1d8] sm:$0xff] }
 0x707   : > { %5740 = vmatpush3.bf16.msra.mxu1 %v5739_v47  ;;  %v5747_v47 = vpack.c.bf16 %v4722_v38, %v4721_v28  ;;  %v4726_v28 = vld [vmem:[%s9147_s5 + $0x148] sm:$0xff]  ;;  %v4743_v38 = vld [vmem:[%s9147_s5 + $0x1d0] sm:$0xff] }
 0x708   : > { %v7709_v14 = vcvt.s32.f32 %v2629_v51  ;;  %v4719_v51 = vld [vmem:[%s9147_s5 + $0x110] sm:$0xff]  ;;  %5742 = vmatprep.subr.bf16.mxu1 %v5741_v16 }
 0x709   : > { %v5743_v24 = vpack.c.bf16 %v4720_v57, %v4719_v51  ;;  %v4723_v16 = vld [vmem:[%s9147_s5 + $0x130] sm:$0xff]  ;;  %v4724_v51 = vld [vmem:[%s9147_s5 + $0x138] sm:$0xff]  ;;  %v4741_v57 = vld [vmem:[%s9147_s5 + $0x1c0] sm:$0xff] }
 0x70a   : > { %2632 = vmin.xlane.f32.xlu1 %v7709_v14  ;;  %v5753_v12 = vpack.c.bf16 %v4742_v17, %v4741_v57  ;;  %v4745_v57 = vld [vmem:[%s9147_s5 + $0x1e0] sm:$0xff]  ;;  %v4746_v17 = vld [vmem:[%s9147_s5 + $0x1e8] sm:$0xff] }
 0x70b   : > { %5744 = vmatpush3.bf16.msra.mxu1 %v5743_v24  ;;  %v5751_v24 = vpack.c.bf16 %v4724_v51, %v4723_v16  ;;  %v4727_v16 = vld [vmem:[%s9147_s5 + $0x150] sm:$0xff]  ;;  %v4728_v51 = vld [vmem:[%s9147_s5 + $0x158] sm:$0xff] }
 0x70c   : > { %5746 = vmatprep.subr.bf16.mxu1 %v5745_v5  ;;  %v4725_v5 = vld [vmem:[%s9147_s5 + $0x140] sm:$0xff] }
 0x70f   : > { %5748 = vmatpush3.bf16.msra.mxu1 %v5747_v47  ;;  %v5755_v47 = vpack.c.bf16 %v4726_v28, %v4725_v5  ;;  %v4729_v5 = vld [vmem:[%s9147_s5 + $0x160] sm:$0xff]  ;;  %v4730_v28 = vld [vmem:[%s9147_s5 + $0x168] sm:$0xff] }
 0x710   : > { %5750 = vmatprep.subr.bf16.mxu1 %v5749_v22  ;;  %v5757_v22 = vpack.c.bf16 %v4744_v6, %v4743_v38  ;;  %v4747_v38 = vld [vmem:[%s9147_s5 + $0x1f0] sm:$0xff]  ;;  %v4748_v6 = vld [vmem:[%s9147_s5 + $0x1f8] sm:$0xff] }
 0x713   : > { %5752 = vmatpush3.bf16.msra.mxu1 %v5751_v24  ;;  %v5759_v24 = vpack.c.bf16 %v4728_v51, %v4727_v16  ;;  %v4731_v16 = vld [vmem:[%s9147_s5 + $0x170] sm:$0xff]  ;;  %v4732_v51 = vld [vmem:[%s9147_s5 + $0x178] sm:$0xff] }
 0x714   : > { %5754 = vmatprep.subr.bf16.mxu1 %v5753_v12  ;;  %v5761_v12 = vpack.c.bf16 %v4746_v17, %v4745_v57  ;;  %v5767_v57 = vpack.c.bf16 %v4732_v51, %v4731_v16  ;;  %v2388_v17 = vand.u32 65535, %v7556_v9 }
 0x717   : > { %5756 = vmatpush3.bf16.msra.mxu1 %v5755_v47  ;;  %v5763_v47 = vpack.c.bf16 %v4730_v28, %v4729_v5 }
 0x718   : > { %5758 = vmatprep.subr.bf16.mxu1 %v5757_v22  ;;  %v5765_v22 = vpack.c.bf16 %v4748_v6, %v4747_v38  ;;  %v2420_v6 = vand.u32 65535, %v7575_v60  ;;  %v2452_v60 = vand.u32 65535, %v7595_v20  ;;  %v2484_v20 = vand.u32 65535, %v7615_v58 }
 0x719   : > { %v2516_v58 = vand.u32 65535, %v7635_v39  ;;  %v2548_v39 = vand.u32 65535, %v7655_v56  ;;  %v2580_v56 = vand.u32 65535, %v7675_v54  ;;  %v2612_v54 = vand.u32 65535, %v7695_v8 }
 0x71b   : > { %5760 = vmatpush3.bf16.msra.mxu1 %v5759_v24  ;;  %v2390_v24 = vcvt.s32.f32 %v2388_v17  ;;  %v2454_v17 = vcvt.s32.f32 %v2452_v60 }
 0x71c   : > { %5762 = vmatprep.subr.bf16.mxu1 %v5761_v12  ;;  %v2404_v12 = vand.u32 65535, %v7565_v32  ;;  %v2436_v32 = vand.u32 65535, %v7585_v63  ;;  %v2468_v63 = vand.u32 65535, %v7605_v1  ;;  %v2500_v1 = vand.u32 65535, %v7625_v7 }
 0x71d   : > { %v2532_v7 = vand.u32 65535, %v7645_v15  ;;  %v2564_v15 = vand.u32 65535, %v7665_v31  ;;  %v2596_v31 = vand.u32 65535, %v7685_v41  ;;  %v2628_v41 = vand.u32 65535, %v7705_v26  ;;  %v4881_v26 = vld [vmem:[%s9148_s6 + $0x218] sm:$0xff] }
 0x71e   : > { %v2406_v38 = vcvt.s32.f32 %v2404_v12  ;;  %v2438_v51 = vcvt.s32.f32 %v2436_v32  ;;  %v2470_v12 = vcvt.s32.f32 %v2468_v63  ;;  %v2518_v32 = vcvt.s32.f32 %v2516_v58 }
 0x71f   : > { %5764 = vmatpush3.bf16.msra.mxu1 %v5763_v47  ;;  %v2566_v63 = vcvt.s32.f32 %v2564_v15 }
 0x720   : > { %5766 = vmatprep.subr.bf16.mxu1 %v5765_v22  ;;  %v2422_v22 = vcvt.s32.f32 %v2420_v6 }
 0x723   : > { %5768 = vmatpush3.bf16.msra.mxu1 %v5767_v57 }
 0x75b   : > { %v7809_v18 = vpop.xlane.xlu0 %2392 }
 0x75c   : > { %vm2394_vm13 = vcmp.eq.f32.partialorder %v7563_v2, %v7809_v18 }
 0x75d   : > { %v2395_v5 = vsel %vm2394_vm13, %v2390_v24, inf }
 0x75e   : > { %2396 = vmin.xlane.f32.xlu0 %v2395_v5 }
 0x75f   : > { %v7814_v28 = vpop.xlane.xlu1 %2408 }
 0x760   : > { %vm2410_vm1 = vcmp.eq.f32.partialorder %v7573_v4, %v7814_v28 }
 0x761   : > { %v2411_v47 = vsel %vm2410_vm1, %v2406_v38, inf  ;;  %v2486_v38 = vcvt.s32.f32 %v2484_v20 }
 0x762   : > { %2412 = vmin.xlane.f32.xlu1 %v2411_v47  ;;  %v2502_v47 = vcvt.s32.f32 %v2500_v1  ;;  %v2614_v1 = vcvt.s32.f32 %v2612_v54  ;;  %v4892_v54 = vld [vmem:[%s9148_s6 + $0x270] sm:$0xff] }
 0x763   : > { %v7819_v9 = vpop.xlane.xlu0 %2424 }
 0x764   : > { %vm2426_vm3 = vcmp.eq.f32.partialorder %v7583_v61, %v7819_v9 }
 0x765   : > { %v2427_v2 = vsel %vm2426_vm3, %v2422_v22, inf }
 0x766   : > { %2428 = vmin.xlane.f32.xlu0 %v2427_v2 }
 0x767   : > { %v7824_v16 = vpop.xlane.xlu1 %2440 }
 0x768   : > { %vm2442_vm14 = vcmp.eq.f32.partialorder %v7593_v55, %v7824_v16 }
 0x769   : > { %v2443_v4 = vsel %vm2442_vm14, %v2438_v51, inf  ;;  %v2534_v51 = vcvt.s32.f32 %v2532_v7 }
 0x76a   : > { %2444 = vmin.xlane.f32.xlu1 %v2443_v4  ;;  %v2550_v4 = vcvt.s32.f32 %v2548_v39  ;;  %v4884_v39 = vld [vmem:[%s9148_s6 + $0x230] sm:$0xff] }
 0x76b   : > { %v7829_v57 = vpop.xlane.xlu0 %2456 }
 0x76c   : > { %vm2458_vm10 = vcmp.eq.f32.partialorder %v7603_v11, %v7829_v57 }
 0x76d   : > { %v2459_v61 = vsel %vm2458_vm10, %v2454_v17, inf }
 0x76e   : > { %2460 = vmin.xlane.f32.xlu0 %v2459_v61 }
 0x76f   : > { %v7834_v24 = vpop.xlane.xlu1 %2472 }
 0x770   : > { %vm2474_vm4 = vcmp.eq.f32.partialorder %v7613_v3, %v7834_v24 }
 0x771   : > { %v2475_v55 = vsel %vm2474_vm4, %v2470_v12, inf  ;;  %v2582_v12 = vcvt.s32.f32 %v2580_v56  ;;  %v4888_v56 = vld [vmem:[%s9148_s6 + $0x250] sm:$0xff] }
 0x772   : > { %2476 = vmin.xlane.f32.xlu1 %v2475_v55  ;;  %v2598_v55 = vcvt.s32.f32 %v2596_v31 }
 0x773   : > { %v7839_v5 = vpop.xlane.xlu0 %2488 }
 0x774   : > { %vm2490_vm13 = vcmp.eq.f32.partialorder %v7623_v59, %v7839_v5 }
 0x775   : > { %v2491_v11 = vsel %vm2490_vm13, %v2486_v38, inf }
 0x776   : > { %2492 = vmin.xlane.f32.xlu0 %v2491_v11 }
 0x777   : > { %v7844_v6 = vpop.xlane.xlu1 %2504 }
 0x778   : > { %vm2506_vm1 = vcmp.eq.f32.partialorder %v7633_v0, %v7844_v6 }
 0x779   : > { %v2507_v3 = vsel %vm2506_vm1, %v2502_v47, inf  ;;  %v2630_v47 = vcvt.s32.f32 %v2628_v41 }
 0x77a   : > { %2508 = vmin.xlane.f32.xlu1 %v2507_v3  ;;  %v4880_v3 = vld [vmem:[%s9148_s6 + $0x210] sm:$0xff] }
 0x77b   : > { %v7849_v22 = vpop.xlane.xlu0 %2520 }
 0x77c   : > { %vm2522_vm3 = vcmp.eq.f32.partialorder %v7643_v52, %v7849_v22 }
 0x77d   : > { %v2523_v59 = vsel %vm2522_vm3, %v2518_v32, inf  ;;  %v4885_v32 = vld [vmem:[%s9148_s6 + $0x238] sm:$0xff] }
 0x77e   : > { %2524 = vmin.xlane.f32.xlu0 %v2523_v59 }
 0x77f   : > { %v7854_v2 = vpop.xlane.xlu1 %2536 }
 0x780   : > { %vm2538_vm14 = vcmp.eq.f32.partialorder %v7653_v49, %v7854_v2 }
 0x781   : > { %v2539_v0 = vsel %vm2538_vm14, %v2534_v51, inf  ;;  %v4882_v51 = vld [vmem:[%s9148_s6 + $0x220] sm:$0xff] }
 0x782   : > { %2540 = vmin.xlane.f32.xlu1 %v2539_v0  ;;  %v4887_v0 = vld [vmem:[%s9148_s6 + $0x248] sm:$0xff]  ;;  %v5775_v15 = vpack.c.bf16 %v4884_v39, %v4882_v51  ;;  %v4902_v39 = vld [vmem:[%s9148_s6 + $0x2c0] sm:$0xff] }
 0x783   : > { %v7859_v60 = vpop.xlane.xlu0 %2552 }
 0x784   : > { %vm2554_vm10 = vcmp.eq.f32.partialorder %v7663_v46, %v7859_v60 }
 0x785   : > { %v2555_v52 = vsel %vm2554_vm10, %v2550_v4, inf  ;;  %v4889_v4 = vld [vmem:[%s9148_s6 + $0x258] sm:$0xff] }
 0x786   : > { %2556 = vmin.xlane.f32.xlu0 %v2555_v52  ;;  %v5777_v52 = vpack.c.bf16 %v4889_v4, %v4887_v0  ;;  %v4904_v0 = vld [vmem:[%s9148_s6 + $0x2d0] sm:$0xff]  ;;  %v4907_v4 = vld [vmem:[%s9148_s6 + $0x2e8] sm:$0xff] }
 0x787   : > { %v7864_v17 = vpop.xlane.xlu1 %2568 }
 0x788   : > { %vm2570_vm4 = vcmp.eq.f32.partialorder %v7673_v43, %v7864_v17 }
 0x789   : > { %v2571_v49 = vsel %vm2570_vm4, %v2566_v63, inf  ;;  %v4886_v63 = vld [vmem:[%s9148_s6 + $0x240] sm:$0xff] }
 0x78a   : > { %2572 = vmin.xlane.f32.xlu1 %v2571_v49  ;;  %v4891_v49 = vld [vmem:[%s9148_s6 + $0x268] sm:$0xff]  ;;  %v5779_v31 = vpack.c.bf16 %v4888_v56, %v4886_v63  ;;  %v4906_v56 = vld [vmem:[%s9148_s6 + $0x2e0] sm:$0xff] }
 0x78b   : > { %v7869_v61 = vpop.xlane.xlu0 %2584 }
 0x78c   : > { %vm2586_vm13 = vcmp.eq.f32.partialorder %v7683_v37, %v7869_v61 }
 0x78d   : > { %v2587_v46 = vsel %vm2586_vm13, %v2582_v12, inf  ;;  %v4893_v12 = vld [vmem:[%s9148_s6 + $0x278] sm:$0xff] }
 0x78e   : > { %2588 = vmin.xlane.f32.xlu0 %v2587_v46  ;;  %v5781_v46 = vpack.c.bf16 %v4893_v12, %v4891_v49  ;;  %v4908_v49 = vld [vmem:[%s9148_s6 + $0x2f0] sm:$0xff] }
 0x78f   : > { %v7874_v20 = vpop.xlane.xlu1 %2600  ;;  %v5799_v12 = vpack.c.bf16 %v4908_v49, %v4906_v56 }
 0x790   : > { %vm2602_vm1 = vcmp.eq.f32.partialorder %v7693_v40, %v7874_v20  ;;  %v4879_v40 = vld [vmem:[%s9148_s6 + $0x208] sm:$0xff] }
 0x791   : > { %v2603_v43 = vsel %vm2602_vm1, %v2598_v55, inf  ;;  %v5769_v58 = vpack.c.bf16 %v4881_v26, %v4879_v40  ;;  %v4890_v55 = vld [vmem:[%s9148_s6 + $0x260] sm:$0xff]  ;;  %v4899_v40 = vld [vmem:[%s9148_s6 + $0x2a8] sm:$0xff]  ;;  %v4901_v26 = vld [vmem:[%s9148_s6 + $0x2b8] sm:$0xff] }
 0x792   : > { %2604 = vmin.xlane.f32.xlu1 %v2603_v43  ;;  %v4895_v43 = vld [vmem:[%s9148_s6 + $0x288] sm:$0xff]  ;;  %v5783_v41 = vpack.c.bf16 %v4892_v54, %v4890_v55  ;;  %v2415_v54 = vcvt.f32.s32 %v7814_v28 }
 0x793   : > { %v7879_v38 = vpop.xlane.xlu0 %2616  ;;  %5770 = vmatprep.subr.bf16.mxu0 %v5769_v58  ;;  %v5789_v58 = vpack.c.bf16 %v4901_v26, %v4899_v40  ;;  %v9349_v40 = vmov 1.0  }
 0x794   : > { %vm2618_vm3 = vcmp.eq.f32.partialorder %v7703_v62, %v7879_v38  ;;  %v4878_v62 = vld [vmem:[%s9148_s6 + $0x200] sm:$0xff] }
 0x795   : > { %v2619_v37 = vsel %vm2618_vm3, %v2614_v1, inf  ;;  %v5771_v7 = vpack.c.bf16 %v4880_v3, %v4878_v62  ;;  %v4897_v1 = vld [vmem:[%s9148_s6 + $0x298] sm:$0xff]  ;;  %v4898_v3 = vld [vmem:[%s9148_s6 + $0x2a0] sm:$0xff] }
 0x796   : > { %2620 = vmin.xlane.f32.xlu0 %v2619_v37  ;;  %v5785_v37 = vpack.c.bf16 %v4897_v1, %v4895_v43 }
 0x797   : > { %v7884_v11 = vpop.xlane.xlu1 %2632  ;;  %5772 = vmatpush1.bf16.msra.mxu0 %v5771_v7  ;;  %v4905_v7 = vld [vmem:[%s9148_s6 + $0x2d8] sm:$0xff] }
 0x798   : > { %vm2634_vm14 = vcmp.eq.f32.partialorder %v7709_v14, %v7884_v11  ;;  %v4883_v14 = vld [vmem:[%s9148_s6 + $0x228] sm:$0xff] }
 0x799   : > { %v2635_v8 = vsel %vm2634_vm14, %v2630_v47, inf  ;;  %v5773_v59 = vpack.c.bf16 %v4885_v32, %v4883_v14  ;;  %v4894_v47 = vld [vmem:[%s9148_s6 + $0x280] sm:$0xff]  ;;  %v4900_v14 = vld [vmem:[%s9148_s6 + $0x2b0] sm:$0xff]  ;;  %v4903_v32 = vld [vmem:[%s9148_s6 + $0x2c8] sm:$0xff] }
 0x79a   : > { %2636 = vmin.xlane.f32.xlu1 %v2635_v8  ;;  %v4896_v8 = vld [vmem:[%s9148_s6 + $0x290] sm:$0xff]  ;;  %v5793_v51 = vpack.c.bf16 %v4905_v7, %v4903_v32 }
 0x79b   : > { %5774 = vmatprep.subr.bf16.mxu0 %v5773_v59  ;;  %v5787_v62 = vpack.c.bf16 %v4896_v8, %v4894_v47  ;;  %v5791_v59 = vpack.c.bf16 %v4900_v14, %v4898_v3  ;;  %v2416_v47 = vshll.u32 %v2415_v54, 16 }
 0x79c   : > { %5776 = vmatpush1.bf16.msra.mxu0 %v5775_v15  ;;  %v4909_v15 = vld [vmem:[%s9148_s6 + $0x2f8] sm:$0xff] }
 0x79d   : > { %5778 = vmatprep.subr.bf16.mxu0 %v5777_v52  ;;  %v5795_v52 = vpack.c.bf16 %v4904_v0, %v4902_v39  ;;  %v5797_v63 = vpack.c.bf16 %v4909_v15, %v4907_v4 }
 0x7a0   : > { %5780 = vmatpush1.bf16.msra.mxu0 %v5779_v31  ;;  %v2399_v31 = vcvt.f32.s32 %v7809_v18 }
 0x7a1   : > { %5782 = vmatprep.subr.bf16.mxu0 %v5781_v46 }
 0x7a2   : > { %v2400_v55 = vshll.u32 %v2399_v31, 16 }
 0x7a4   : > { %5784 = vmatpush1.bf16.msra.mxu0 %v5783_v41  ;;  %v2431_v41 = vcvt.f32.s32 %v7819_v9 }
 0x7a5   : > { %5786 = vmatprep.subr.bf16.mxu0 %v5785_v37 }
 0x7a6   : > { %v2432_v18 = vshll.u32 %v2431_v41, 16 }
 0x7a8   : > { %5788 = vmatpush1.bf16.msra.mxu0 %v5787_v62  ;;  %v2447_v62 = vcvt.f32.s32 %v7824_v16  ;;  %v2463_v16 = vcvt.f32.s32 %v7829_v57 }
 0x7a9   : > { %5790 = vmatprep.subr.bf16.mxu0 %v5789_v58 }
 0x7aa   : > { %v2448_v7 = vshll.u32 %v2447_v62, 16  ;;  %v2464_v15 = vshll.u32 %v2463_v16, 16 }
 0x7ac   : > { %5792 = vmatpush1.bf16.msra.mxu0 %v5791_v59 }
 0x7ad   : > { %5794 = vmatprep.subr.bf16.mxu0 %v5793_v51 }
 0x7b0   : > { %5796 = vmatpush1.bf16.msra.mxu0 %v5795_v52  ;;  %v2479_v52 = vcvt.f32.s32 %v7834_v24 }
 0x7b1   : > { %5798 = vmatprep.subr.bf16.mxu0 %v5797_v63 }
 0x7b2   : > { %v2480_v31 = vshll.u32 %v2479_v52, 16 }
 0x7b4   : > { %5800 = vmatpush1.bf16.msra.mxu0 %v5799_v12 }
 0x7eb   : > { %v2397_v46 = vpop.xlane.xlu0 %2396 }
 0x7ec   : > { %v2398_v43 = vcvt.f32.s32 %v2397_v46  ;;  %v2495_v46 = vcvt.f32.s32 %v7839_v5 }
 0x7ee   : > { %v2401_v1 = vadd.s32 %v2400_v55, %v2398_v43  ;;  %v2496_v41 = vshll.u32 %v2495_v46, 16 }
 0x7ef   : > { %v2413_v37 = vpop.xlane.xlu1 %2412 }
 0x7f0   : > { %vm2642_vm10 = vcmp.eq.s32.totalorder %v6608_v29, %v2401_v1  ;;  %v2414_v8 = vcvt.f32.s32 %v2413_v37  ;;  %vm2643_vm4 = vcmp.eq.s32.totalorder %v6611_v34, %v2401_v1  ;;  %v2977_v28 = vrot.slane %v2401_v1, %v7132_v25 }
 0x7f1   : > { %4814 = vmatprep.mubr.msk.f32.mxu1 %vm2643_vm4, %v9349_v40  ;;  %v2511_v37 = vcvt.f32.s32 %v7844_v6 }
 0x7f2   : > { %v2417_v26 = vadd.s32 %v2416_v47, %v2414_v8  ;;  %4815 = vmatmul.mubr.msk.f32.vlgmr.msra.gmra.mrb[48].mxu1 %vm2642_vm10, %v9349_v40 }
 0x7f3   : > { %v2429_v58 = vpop.xlane.xlu0 %2428  ;;  %v2512_v62 = vshll.u32 %v2511_v37, 16 }
 0x7f4   : > { %v2981_v9 = vrot.slane %v2417_v26, %v7139_v44  ;;  %v2430_v3 = vcvt.f32.s32 %v2429_v58  ;;  %vm2645_vm13 = vcmp.eq.s32.totalorder %v6611_v34, %v2417_v26  ;;  %vm2644_vm1 = vcmp.eq.s32.totalorder %v6608_v29, %v2417_v26 }
 0x7f5   : > { %4816 = vmatprep.mubr.msk.f32.mxu1 %vm2645_vm13, %v9349_v40 }
 0x7f6   : > { %v2982_v14 = vsel %vm1869_vm2, %v2981_v9, %v2977_v28  ;;  %v2433_v32 = vadd.s32 %v2432_v18, %v2430_v3  ;;  %4817 = vmatmul.mubr.msk.f32.gmra.mrb[50].mxu1 %vm2644_vm1, %v9349_v40  ;;  %v2527_v28 = vcvt.f32.s32 %v7849_v22 }
 0x7f7   : > { %v2445_v59 = vpop.xlane.xlu1 %2444 }
 0x7f8   : > { %v2986_v51 = vrot.slane %v2433_v32, %v7149_v33  ;;  %v2446_v39 = vcvt.f32.s32 %v2445_v59  ;;  %vm2647_vm3 = vcmp.eq.s32.totalorder %v6611_v34, %v2433_v32  ;;  %vm2646_vm14 = vcmp.eq.s32.totalorder %v6608_v29, %v2433_v32 }
 0x7f9   : > { %4818 = vmatprep.mubr.msk.f32.mxu1 %vm2647_vm3, %v9349_v40  ;;  %v2528_v32 = vshll.u32 %v2527_v28, 16 }
 0x7fa   : > { %v2987_v0 = vsel %vm1876_vm5, %v2986_v51, %v2982_v14  ;;  %v2449_v4 = vadd.s32 %v2448_v7, %v2446_v39  ;;  %4819 = vmatmul.mubr.msk.f32.gmra.mrb[52].mxu1 %vm2646_vm14, %v9349_v40  ;;  %v2543_v7 = vcvt.f32.s32 %v7854_v2 }
 0x7fb   : > { %v2461_v63 = vpop.xlane.xlu0 %2460 }
 0x7fc   : > { %v2991_v57 = vrot.slane %v2449_v4, %v7152_v30  ;;  %v2462_v56 = vcvt.f32.s32 %v2461_v63  ;;  %vm2649_vm10 = vcmp.eq.s32.totalorder %v6611_v34, %v2449_v4  ;;  %vm2648_vm4 = vcmp.eq.s32.totalorder %v6608_v29, %v2449_v4 }
 0x7fd   : > { %4820 = vmatprep.mubr.msk.f32.mxu1 %vm2649_vm10, %v9349_v40  ;;  %v2559_v4 = vcvt.f32.s32 %v7859_v60 }
 0x7fe   : > { %v2992_v49 = vsel %vm1883_vm6, %v2991_v57, %v2987_v0  ;;  %v2465_v12 = vadd.s32 %v2464_v15, %v2462_v56  ;;  %4821 = vmatmul.mubr.msk.f32.gmra.mrb[54].mxu1 %vm2648_vm4, %v9349_v40  ;;  %v2544_v0 = vshll.u32 %v2543_v7, 16  ;;  %v2639_v7 = vcvt.f32.s32 %v7884_v11 }
 0x7ff   : > { %v2477_v55 = vpop.xlane.xlu1 %2476  ;;  %v2560_v56 = vshll.u32 %v2559_v4, 16 }
 0x800   : > { %v2996_v24 = vrot.slane %v2465_v12, %v7158_v19  ;;  %v2478_v54 = vcvt.f32.s32 %v2477_v55  ;;  %vm2651_vm13 = vcmp.eq.s32.totalorder %v6611_v34, %v2465_v12  ;;  %vm2650_vm1 = vcmp.eq.s32.totalorder %v6608_v29, %v2465_v12 }
 0x801   : > { %4822 = vmatprep.mubr.msk.f32.mxu1 %vm2651_vm13, %v9349_v40 }
 0x802   : > { %v2997_v43 = vsel %vm1890_vm7, %v2996_v24, %v2992_v49  ;;  %v2481_v1 = vadd.s32 %v2480_v31, %v2478_v54  ;;  %4823 = vmatmul.mubr.msk.f32.gmra.mrb[56].mxu1 %vm2650_vm1, %v9349_v40  ;;  %v2575_v49 = vcvt.f32.s32 %v7864_v17  ;;  %v2591_v54 = vcvt.f32.s32 %v7869_v61 }
 0x803   : > { %v2493_v47 = vpop.xlane.xlu0 %2492 }
 0x804   : > { %v3001_v5 = vrot.slane %v2481_v1, %v7166_v48  ;;  %v2494_v8 = vcvt.f32.s32 %v2493_v47  ;;  %vm2653_vm3 = vcmp.eq.s32.totalorder %v6611_v34, %v2481_v1  ;;  %vm2652_vm14 = vcmp.eq.s32.totalorder %v6608_v29, %v2481_v1 }
 0x805   : > { %4824 = vmatprep.mubr.msk.f32.mxu1 %vm2653_vm3, %v9349_v40  ;;  %v2576_v24 = vshll.u32 %v2575_v49, 16  ;;  %v2592_v47 = vshll.u32 %v2591_v54, 16  ;;  %v9359_v54 = vld [vmem:[#allocation35_spill] sm:$0xff] }
 0x806   : > { %v3002_v26 = vsel %vm1897_vm8, %v3001_v5, %v2997_v43  ;;  %v2497_v18 = vadd.s32 %v2496_v41, %v2494_v8  ;;  %4825 = vmatmul.mubr.msk.f32.gmra.mrb[58].mxu1 %vm2652_vm14, %v9349_v40  ;;  %v2607_v5 = vcvt.f32.s32 %v7874_v20 }
 0x807   : > { %v2509_v58 = vpop.xlane.xlu1 %2508 }
 0x808   : > { %v3006_v6 = vrot.slane %v2497_v18, %v7169_v53  ;;  %v2510_v9 = vcvt.f32.s32 %v2509_v58  ;;  %vm2655_vm10 = vcmp.eq.s32.totalorder %v6611_v34, %v2497_v18  ;;  %vm2654_vm4 = vcmp.eq.s32.totalorder %v6608_v29, %v2497_v18 }
 0x809   : > { %4826 = vmatprep.mubr.msk.f32.mxu1 %vm2655_vm10, %v9349_v40  ;;  %vm9350_vm10 = vcmask 589312   ;;  %v2608_v28 = vshll.u32 %v2607_v5, 16  ;;  %v2623_v58 = vcvt.f32.s32 %v7879_v38 }
 0x80a   : > { %v3007_v3 = vsel %vm1904_vm11, %v3006_v6, %v3002_v26  ;;  %v2513_v14 = vadd.s32 %v2512_v62, %v2510_v9  ;;  %4827 = vmatmul.mubr.msk.f32.gmra.mrb[60].mxu1 %vm2654_vm4, %v9349_v40 }
 0x80b   : > { %v2525_v16 = vpop.xlane.xlu0 %2524 }
 0x80c   : > { %v3011_v22 = vrot.slane %v2513_v14, %v7178_v23  ;;  %v2526_v59 = vcvt.f32.s32 %v2525_v16  ;;  %vm2657_vm13 = vcmp.eq.s32.totalorder %v6611_v34, %v2513_v14  ;;  %vm2656_vm1 = vcmp.eq.s32.totalorder %v6608_v29, %v2513_v14 }
 0x80d   : > { %4828 = vmatprep.mubr.msk.f32.mxu1 %vm2657_vm13, %v9349_v40 }
 0x80e   : > { %v3012_v51 = vsel %vm1911_vm12, %v3011_v22, %v3007_v3  ;;  %v2529_v39 = vadd.s32 %v2528_v32, %v2526_v59  ;;  %4829 = vmatmul.mubr.msk.f32.gmra.mrb[62].mxu1 %vm2656_vm1, %v9349_v40  ;;  %vm9351_vm1 = vcmask 654912   ;;  %v2624_v32 = vshll.u32 %v2623_v58, 16 }
 0x80f   : > { %v2541_v15 = vpop.xlane.xlu1 %2540 }
 0x810   : > { %v3016_v2 = vrot.slane %v2529_v39, %v7185_v50  ;;  %v2542_v52 = vcvt.f32.s32 %v2541_v15  ;;  %vm2659_vm3 = vcmp.eq.s32.totalorder %v6611_v34, %v2529_v39  ;;  %vm2658_vm14 = vcmp.eq.s32.totalorder %v6608_v29, %v2529_v39 }
 0x811   : > { %4830 = vmatprep.mubr.msk.f32.mxu1 %vm2659_vm3, %v9349_v40 }
 0x812   : > { %v3017_v63 = vsel %vm9350_vm10, %v3016_v2, %v3012_v51  ;;  %v2545_v57 = vadd.s32 %v2544_v0, %v2542_v52  ;;  %4831 = vmatmul.mubr.msk.f32.gmra.mrb[64].mxu1 %vm2658_vm14, %v9349_v40  ;;  %vm9352_vm10 = vcmask 720512   ;;  %v2640_v0 = vshll.u32 %v2639_v7, 16 }
 0x813   : > { %v2557_v12 = vpop.xlane.xlu0 %2556 }
 0x814   : > { %v3021_v60 = vrot.slane %v2545_v57, %v7193_v13  ;;  %v2558_v31 = vcvt.f32.s32 %v2557_v12  ;;  %vm2661_vm4 = vcmp.eq.s32.totalorder %v6611_v34, %v2545_v57  ;;  %vm2660_vm13 = vcmp.eq.s32.totalorder %v6608_v29, %v2545_v57 }
 0x815   : > { %4832 = vmatprep.mubr.msk.f32.mxu1 %vm2661_vm4, %v9349_v40 }
 0x816   : > { %v3022_v46 = vsel %vm9351_vm1, %v3021_v60, %v3017_v63  ;;  %v2561_v55 = vadd.s32 %v2560_v56, %v2558_v31  ;;  %4833 = vmatmul.mubr.msk.f32.gmra.mrb[66].mxu1 %vm2660_vm13, %v9349_v40 }
 0x817   : > { %v2573_v43 = vpop.xlane.xlu1 %2572 }
 0x818   : > { %v3026_v17 = vrot.slane %v2561_v55, %v7204_v42  ;;  %v2574_v1 = vcvt.f32.s32 %v2573_v43  ;;  %vm2663_vm3 = vcmp.eq.s32.totalorder %v6611_v34, %v2561_v55  ;;  %vm2662_vm14 = vcmp.eq.s32.totalorder %v6608_v29, %v2561_v55 }
 0x819   : > { %4834 = vmatprep.mubr.msk.f32.mxu1 %vm2663_vm3, %v9349_v40 }
 0x81a   : > { %v3027_v41 = vsel %vm9352_vm10, %v3026_v17, %v3022_v46  ;;  %v2577_v37 = vadd.s32 %v2576_v24, %v2574_v1  ;;  %4835 = vmatmul.mubr.msk.f32.gmra.mrb[68].mxu1 %vm2662_vm14, %v9349_v40  ;;  %v9358_v24 = vmov 0.0  }
 0x81b   : > { %v2589_v8 = vpop.xlane.xlu0 %2588 }
 0x81c   : > { %v3031_v61 = vrot.slane %v2577_v37, %v7226_v35  ;;  %v2590_v26 = vcvt.f32.s32 %v2589_v8  ;;  %vm2665_vm4 = vcmp.eq.s32.totalorder %v6611_v34, %v2577_v37  ;;  %vm2664_vm13 = vcmp.eq.s32.totalorder %v6608_v29, %v2577_v37  ;;  %v9362_v8 = vld [vmem:[#allocation37_spill] sm:$0xff] }
 0x81d   : > { %4836 = vmatprep.mubr.msk.f32.mxu1 %vm2665_vm4, %v9349_v40 }
 0x81e   : > { %v3032_v18 = vsel %vm1939_vm15, %v3031_v61, %v3027_v41  ;;  %v2593_v62 = vadd.s32 %v2592_v47, %v2590_v26  ;;  %4837 = vmatmul.mubr.msk.f32.gmra.mrb[70].mxu1 %vm2664_vm13, %v9349_v40 }
 0x81f   : > { %v2605_v6 = vpop.xlane.xlu1 %2604 }
 0x820   : > { %v3036_v20 = vrot.slane %v2593_v62, %v7234_v27  ;;  %v2606_v9 = vcvt.f32.s32 %v2605_v6  ;;  %vm2667_vm1 = vcmp.eq.s32.totalorder %v6611_v34, %v2593_v62  ;;  %vm2666_vm3 = vcmp.eq.s32.totalorder %v6608_v29, %v2593_v62 }
 0x821   : > { %4838 = vmatprep.mubr.msk.f32.mxu1 %vm2667_vm1, %v9349_v40 }
 0x822   : > { %v3037_v3 = vsel %vm1946_vm0, %v3036_v20, %v3032_v18  ;;  %v2609_v14 = vadd.s32 %v2608_v28, %v2606_v9  ;;  %4839 = vmatmul.mubr.msk.f32.gmra.mrb[72].mxu1 %vm2666_vm3, %v9349_v40  ;;  %v9365_v20 = vld [vmem:[#allocation39_spill] sm:$0xff] }
 0x823   : > { %v2621_v16 = vpop.xlane.xlu0 %2620 }
 0x824   : > { %v3041_v38 = vrot.slane %v2609_v14, %v7241_v36  ;;  %v2622_v22 = vcvt.f32.s32 %v2621_v16  ;;  %vm2669_vm14 = vcmp.eq.s32.totalorder %v6611_v34, %v2609_v14  ;;  %vm2668_vm10 = vcmp.eq.s32.totalorder %v6608_v29, %v2609_v14 }
 0x825   : > { %4840 = vmatprep.mubr.msk.f32.mxu1 %vm2669_vm14, %v9349_v40  ;;  %vm9353_vm14 = vcmask 982912  }
 0x826   : > { %v3042_v59 = vsel %vm1953_vm9, %v3041_v38, %v3037_v3  ;;  %v2625_v51 = vadd.s32 %v2624_v32, %v2622_v22  ;;  %4841 = vmatmul.mubr.msk.f32.gmra.mrb[74].mxu1 %vm2668_vm10, %v9349_v40  ;;  %vm9354_vm10 = vcmask 1048512   ;;  %v9368_v22 = vld [vmem:[#allocation41_spill] sm:$0xff] }
 0x827   : > { %v2637_v39 = vpop.xlane.xlu1 %2636 }
 0x828   : > { %v2638_v4 = vcvt.f32.s32 %v2637_v39  ;;  %vm2671_vm4 = vcmp.eq.s32.totalorder %v6611_v34, %v2625_v51  ;;  %vm2670_vm13 = vcmp.eq.s32.totalorder %v6608_v29, %v2625_v51  ;;  %v3046_v11 = vrot.slane %v2625_v51, %v7251_v21 }
 0x829   : > { %4842 = vmatprep.mubr.msk.f32.mxu1 %vm2671_vm4, %v9349_v40 }
 0x82a   : > { %v2641_v15 = vadd.s32 %v2640_v0, %v2638_v4  ;;  %4843 = vmatmul.mubr.msk.f32.gmra.mrb[76].mxu1 %vm2670_vm13, %v9349_v40  ;;  %v3047_v52 = vsel %vm9353_vm14, %v3046_v11, %v3042_v59 }
 0x82c   : > { %v3051_v2 = vrot.slane %v2641_v15, %v7264_v45  ;;  %vm2673_vm1 = vcmp.eq.s32.totalorder %v6611_v34, %v2641_v15  ;;  %vm2672_vm3 = vcmp.eq.s32.totalorder %v6608_v29, %v2641_v15 }
 0x82d   : > { %4844 = vmatprep.mubr.msk.f32.mxu1 %vm2673_vm1, %v9349_v40 }
 0x82e   : > { %4845 = vmatmul.mubr.msk.f32.gmra.mrb[78].mxu1 %vm2672_vm3, %v9349_v40  ;;  %v3052_v63 = vsel %vm9354_vm10, %v3051_v2, %v3047_v52  ;;  %v9371_v2 = vld [vmem:[#allocation43_spill] sm:$0xff] }
 0x82f   : > { %3053 = vst [vmem:[%s7284_s21 + $0x1] sm:$0x1] %v3052_v63 }
 0x8c5   : > { %v5161_v57 = vpop.f32.mrb[48].mxu1 }
 0x8c6   : > { %v5162_v56 = vpop.f32.mrb[49].mxu1 }
 0x8c7   : > { %v8096_v49 = vadd.f32 %v5162_v56, %v5161_v57 }
 0x8c9   : > { %9355 = vst [vmem:[#allocation64_spill] sm:$0xff] %v8096_v49  ;;  %v8100_v12 = vsub.f32 %v7291_v10, %v8096_v49  ;;  %v5164_v60 = vpop.f32.mrb[50].mxu1  ;;  %v2883_v46 = vsub.f32 %v8096_v49, %v7291_v10  ;;  %v4869_v49 = vld [vmem:[%s9147_s5 + $0x2b8] sm:$0xff] }
 0x8ca   : > { %v5165_v31 = vpop.f32.mrb[51].mxu1 }
 0x8cb   : > { %9356 = vst [vmem:[#allocation65_spill] sm:$0xff] %v8100_v12  ;;  %v8104_v55 = vadd.f32 %v5165_v31, %v5164_v60  ;;  %3187 = vmatmul.mubr.f32.vlgmr.msra.gmra.mrb[80].mxu0 %v8100_v12  ;;  %v2899_v37 = vmul.f32 %v2883_v46, %v2883_v46  ;;  %v4867_v12 = vld [vmem:[%s9147_s5 + $0x2a8] sm:$0xff] }
 0x8cc   : > { %3192 = vmatprep.mubr.f32.mxu0 %v9358_v24 }
 0x8cd   : > { %9357 = vst [vmem:[#allocation66_spill] sm:$0xff] %v8104_v55  ;;  %v2884_v43 = vsub.f32 %v8104_v55, %v9359_v54  ;;  %v5167_v17 = vpop.f32.mrb[52].mxu1  ;;  %v8112_v1 = vsub.f32 %v9359_v54, %v8104_v55  ;;  %v9374_v54 = vld [vmem:[#allocation45_spill] sm:$0xff] }
 0x8ce   : > { %v5168_v41 = vpop.f32.mrb[53].mxu1 }
 0x8cf   : > { %9360 = vst [vmem:[#allocation35_spill] sm:$0xff] %v8112_v1  ;;  %v2900_v47 = vmul.f32 %v2884_v43, %v2884_v43  ;;  %v8114_v5 = vadd.f32 %v5168_v41, %v5167_v17  ;;  %3193 = vmatmul.mubr.f32.gmra.mrb[82].mxu0 %v8112_v1 }
 0x8d0   : > { %3198 = vmatprep.mubr.f32.mxu0 %v9358_v24 }
 0x8d1   : > { %9361 = vst [vmem:[#allocation67_spill] sm:$0xff] %v8114_v5  ;;  %v2915_v10 = vadd.f32 %v2900_v47, %v2899_v37  ;;  %v2885_v61 = vsub.f32 %v8114_v5, %v9362_v8  ;;  %v5170_v26 = vpop.f32.mrb[54].mxu1  ;;  %v8122_v18 = vsub.f32 %v9362_v8, %v8114_v5 }
 0x8d2   : > { %v5171_v62 = vpop.f32.mrb[55].mxu1 }
 0x8d3   : > { %9363 = vst [vmem:[#allocation37_spill] sm:$0xff] %v8122_v18  ;;  %v2901_v28 = vmul.f32 %v2885_v61, %v2885_v61  ;;  %v8124_v58 = vadd.f32 %v5171_v62, %v5170_v26  ;;  %3199 = vmatmul.mubr.f32.gmra.mrb[84].mxu0 %v8122_v18  ;;  %v9377_v61 = vld [vmem:[#allocation47_spill] sm:$0xff] }
 0x8d4   : > { %3204 = vmatprep.mubr.f32.mxu0 %v9358_v24 }
 0x8d5   : > { %9364 = vst [vmem:[#allocation68_spill] sm:$0xff] %v8124_v58  ;;  %v2916_v6 = vadd.f32 %v2915_v10, %v2901_v28  ;;  %v2886_v9 = vsub.f32 %v8124_v58, %v9365_v20  ;;  %v5173_v3 = vpop.f32.mrb[56].mxu1  ;;  %v8132_v14 = vsub.f32 %v9365_v20, %v8124_v58 }
 0x8d6   : > { %v5174_v32 = vpop.f32.mrb[57].mxu1 }
 0x8d7   : > { %9366 = vst [vmem:[#allocation39_spill] sm:$0xff] %v8132_v14  ;;  %v2902_v7 = vmul.f32 %v2886_v9, %v2886_v9  ;;  %v8134_v16 = vadd.f32 %v5174_v32, %v5173_v3  ;;  %3205 = vmatmul.mubr.f32.gmra.mrb[86].mxu0 %v8132_v14  ;;  %v9380_v32 = vld [vmem:[#allocation49_spill] sm:$0xff] }
 0x8d8   : > { %3210 = vmatprep.mubr.f32.mxu0 %v9358_v24 }
 0x8d9   : > { %9367 = vst [vmem:[#allocation69_spill] sm:$0xff] %v8134_v16  ;;  %v2917_v38 = vadd.f32 %v2916_v6, %v2902_v7  ;;  %v2887_v59 = vsub.f32 %v8134_v16, %v9368_v22  ;;  %v5176_v51 = vpop.f32.mrb[58].mxu1  ;;  %v8142_v39 = vsub.f32 %v9368_v22, %v8134_v16 }
 0x8da   : > { %v5177_v0 = vpop.f32.mrb[59].mxu1 }
 0x8db   : > { %9369 = vst [vmem:[#allocation41_spill] sm:$0xff] %v8142_v39  ;;  %v2903_v4 = vmul.f32 %v2887_v59, %v2887_v59  ;;  %v8144_v11 = vadd.f32 %v5177_v0, %v5176_v51  ;;  %3211 = vmatmul.mubr.f32.gmra.mrb[88].mxu0 %v8142_v39 }
 0x8dc   : > { %3216 = vmatprep.mubr.f32.mxu0 %v9358_v24 }
 0x8dd   : > { %9370 = vst [vmem:[#allocation70_spill] sm:$0xff] %v8144_v11  ;;  %v2918_v15 = vadd.f32 %v2917_v38, %v2903_v4  ;;  %v2888_v52 = vsub.f32 %v8144_v11, %v9371_v2  ;;  %v5179_v63 = vpop.f32.mrb[60].mxu1  ;;  %v8152_v57 = vsub.f32 %v9371_v2, %v8144_v11 }
 0x8de   : > { %v5180_v56 = vpop.f32.mrb[61].mxu1 }
 0x8df   : > { %9372 = vst [vmem:[#allocation43_spill] sm:$0xff] %v8152_v57  ;;  %v2904_v60 = vmul.f32 %v2888_v52, %v2888_v52  ;;  %v8154_v31 = vadd.f32 %v5180_v56, %v5179_v63  ;;  %3217 = vmatmul.mubr.f32.gmra.mrb[90].mxu0 %v8152_v57 }
 0x8e0   : > { %3222 = vmatprep.mubr.f32.mxu0 %v9358_v24 }
 0x8e1   : > { %9373 = vst [vmem:[#allocation71_spill] sm:$0xff] %v8154_v31  ;;  %v2919_v46 = vadd.f32 %v2918_v15, %v2904_v60  ;;  %v2889_v43 = vsub.f32 %v8154_v31, %v9374_v54  ;;  %v5182_v17 = vpop.f32.mrb[62].mxu1  ;;  %v8162_v41 = vsub.f32 %v9374_v54, %v8154_v31  ;;  %v9383_v15 = vld [vmem:[#allocation51_spill] sm:$0xff] }
 0x8e2   : > { %v5183_v37 = vpop.f32.mrb[63].mxu1 }
 0x8e3   : > { %9375 = vst [vmem:[#allocation45_spill] sm:$0xff] %v8162_v41  ;;  %v2905_v47 = vmul.f32 %v2889_v43, %v2889_v43  ;;  %v8164_v10 = vadd.f32 %v5183_v37, %v5182_v17  ;;  %3223 = vmatmul.mubr.f32.gmra.mrb[92].mxu0 %v8162_v41  ;;  %v9386_v43 = vld [vmem:[#allocation53_spill] sm:$0xff] }
 0x8e4   : > { %3228 = vmatprep.mubr.f32.mxu0 %v9358_v24 }
 0x8e5   : > { %9376 = vst [vmem:[#allocation72_spill] sm:$0xff] %v8164_v10  ;;  %v2920_v8 = vadd.f32 %v2919_v46, %v2905_v47  ;;  %v2890_v26 = vsub.f32 %v8164_v10, %v9377_v61  ;;  %v5185_v62 = vpop.f32.mrb[64].mxu1  ;;  %v8172_v28 = vsub.f32 %v9377_v61, %v8164_v10 }
 0x8e6   : > { %v5186_v6 = vpop.f32.mrb[65].mxu1 }
 0x8e7   : > { %9378 = vst [vmem:[#allocation47_spill] sm:$0xff] %v8172_v28  ;;  %v2906_v20 = vmul.f32 %v2890_v26, %v2890_v26  ;;  %v8174_v9 = vadd.f32 %v5186_v6, %v5185_v62  ;;  %3229 = vmatmul.mubr.f32.gmra.mrb[94].mxu0 %v8172_v28  ;;  %v9389_v6 = vld [vmem:[#allocation55_spill] sm:$0xff] }
 0x8e8   : > { %3234 = vmatprep.mubr.f32.mxu0 %v9358_v24 }
 0x8e9   : > { %9379 = vst [vmem:[#allocation73_spill] sm:$0xff] %v8174_v9  ;;  %v2921_v3 = vadd.f32 %v2920_v8, %v2906_v20  ;;  %v2891_v7 = vsub.f32 %v8174_v9, %v9380_v32  ;;  %v5188_v38 = vpop.f32.mrb[66].mxu1  ;;  %v8182_v22 = vsub.f32 %v9380_v32, %v8174_v9 }
 0x8ea   : > { %v5189_v59 = vpop.f32.mrb[67].mxu1 }
 0x8eb   : > { %9381 = vst [vmem:[#allocation49_spill] sm:$0xff] %v8182_v22  ;;  %v2907_v51 = vmul.f32 %v2891_v7, %v2891_v7  ;;  %v8184_v0 = vadd.f32 %v5189_v59, %v5188_v38  ;;  %3235 = vmatmul.mubr.f32.gmra.mrb[96].mxu0 %v8182_v22 }
 0x8ec   : > { %3240 = vmatprep.mubr.f32.mxu0 %v9358_v24 }
 0x8ed   : > { %9382 = vst [vmem:[#allocation74_spill] sm:$0xff] %v8184_v0  ;;  %v2922_v4 = vadd.f32 %v2921_v3, %v2907_v51  ;;  %v2892_v2 = vsub.f32 %v8184_v0, %v9383_v15  ;;  %v5191_v52 = vpop.f32.mrb[68].mxu1  ;;  %v8192_v63 = vsub.f32 %v9383_v15, %v8184_v0 }
 0x8ee   : > { %v5192_v56 = vpop.f32.mrb[69].mxu1 }
 0x8ef   : > { %9384 = vst [vmem:[#allocation51_spill] sm:$0xff] %v8192_v63  ;;  %v2908_v60 = vmul.f32 %v2892_v2, %v2892_v2  ;;  %v8194_v46 = vadd.f32 %v5192_v56, %v5191_v52  ;;  %3241 = vmatmul.mubr.f32.gmra.mrb[98].mxu0 %v8192_v63 }
 0x8f0   : > { %3246 = vmatprep.mubr.f32.mxu0 %v9358_v24 }
 0x8f1   : > { %9385 = vst [vmem:[#allocation75_spill] sm:$0xff] %v8194_v46  ;;  %v2923_v54 = vadd.f32 %v2922_v4, %v2908_v60  ;;  %v2893_v17 = vsub.f32 %v8194_v46, %v9386_v43  ;;  %v5194_v37 = vpop.f32.mrb[70].mxu1  ;;  %v8202_v47 = vsub.f32 %v9386_v43, %v8194_v46  ;;  %v9392_v4 = vld [vmem:[#allocation57_spill] sm:$0xff] }
 0x8f2   : > { %v5195_v8 = vpop.f32.mrb[71].mxu1 }
 0x8f3   : > { %9387 = vst [vmem:[#allocation53_spill] sm:$0xff] %v8202_v47  ;;  %v2909_v61 = vmul.f32 %v2893_v17, %v2893_v17  ;;  %v8204_v26 = vadd.f32 %v5195_v8, %v5194_v37  ;;  %3247 = vmatmul.mubr.f32.gmra.mrb[100].mxu0 %v8202_v47  ;;  %v9395_v17 = vld [vmem:[#allocation59_spill] sm:$0xff] }
 0x8f4   : > { %3252 = vmatprep.mubr.f32.mxu0 %v9358_v24 }
 0x8f5   : > { %9388 = vst [vmem:[#allocation76_spill] sm:$0xff] %v8204_v26  ;;  %v2924_v62 = vadd.f32 %v2923_v54, %v2909_v61  ;;  %v2894_v20 = vsub.f32 %v8204_v26, %v9389_v6  ;;  %v5197_v3 = vpop.f32.mrb[72].mxu1  ;;  %v8212_v32 = vsub.f32 %v9389_v6, %v8204_v26 }
 0x8f6   : > { %v5198_v7 = vpop.f32.mrb[73].mxu1 }
 0x8f7   : > { %9390 = vst [vmem:[#allocation55_spill] sm:$0xff] %v8212_v32  ;;  %v2910_v38 = vmul.f32 %v2894_v20, %v2894_v20  ;;  %v8214_v59 = vadd.f32 %v5198_v7, %v5197_v3  ;;  %3253 = vmatmul.mubr.f32.gmra.mrb[102].mxu0 %v8212_v32  ;;  %v9398_v7 = vld [vmem:[#allocation61_spill] sm:$0xff] }
 0x8f8   : > { %3258 = vmatprep.mubr.f32.mxu0 %v9358_v24 }
 0x8f9   : > { %9391 = vst [vmem:[#allocation77_spill] sm:$0xff] %v8214_v59  ;;  %v2925_v51 = vadd.f32 %v2924_v62, %v2910_v38  ;;  %v2895_v15 = vsub.f32 %v8214_v59, %v9392_v4  ;;  %v5200_v2 = vpop.f32.mrb[74].mxu1  ;;  %v8222_v52 = vsub.f32 %v9392_v4, %v8214_v59 }
 0x8fa   : > { %v5201_v56 = vpop.f32.mrb[75].mxu1 }
 0x8fb   : > { %9393 = vst [vmem:[#allocation57_spill] sm:$0xff] %v8222_v52  ;;  %v2911_v60 = vmul.f32 %v2895_v15, %v2895_v15  ;;  %v8224_v54 = vadd.f32 %v5201_v56, %v5200_v2  ;;  %3259 = vmatmul.mubr.f32.gmra.mrb[104].mxu0 %v8222_v52 }
 0x8fc   : > { %3264 = vmatprep.mubr.f32.mxu0 %v9358_v24 }
 0x8fd   : > { %9394 = vst [vmem:[#allocation78_spill] sm:$0xff] %v8224_v54  ;;  %v2926_v43 = vadd.f32 %v2925_v51, %v2911_v60  ;;  %v2896_v37 = vsub.f32 %v8224_v54, %v9395_v17  ;;  %v5203_v8 = vpop.f32.mrb[76].mxu1  ;;  %v8232_v61 = vsub.f32 %v9395_v17, %v8224_v54  ;;  %v9401_v60 = vld [vmem:[#allocation63_spill] sm:$0xff] }
 0x8fe   : > { %v5204_v62 = vpop.f32.mrb[77].mxu1 }
 0x8ff   : > { %9396 = vst [vmem:[#allocation59_spill] sm:$0xff] %v8232_v61  ;;  %v2912_v6 = vmul.f32 %v2896_v37, %v2896_v37  ;;  %v8234_v20 = vadd.f32 %v5204_v62, %v5203_v8  ;;  %3265 = vmatmul.mubr.f32.gmra.mrb[106].mxu0 %v8232_v61 }
 0x900   : > { %3270 = vmatprep.mubr.f32.mxu0 %v9358_v24 }
 0x901   : > { %9397 = vst [vmem:[#allocation79_spill] sm:$0xff] %v8234_v20  ;;  %v2927_v3 = vadd.f32 %v2926_v43, %v2912_v6  ;;  %v2897_v38 = vsub.f32 %v8234_v20, %v9398_v7  ;;  %v5206_v51 = vpop.f32.mrb[78].mxu1  ;;  %v8242_v4 = vsub.f32 %v9398_v7, %v8234_v20  ;;  %v4910_v6 = vld [vmem:[%s9149_s7 + $0x4] sm:$0x3]  ;;  %v9403_v7 = vld [vmem:[#allocation30_spill] sm:$0xff] }
 0x902   : > { %v5207_v15 = vpop.f32.mrb[79].mxu1 }
 0x903   : > { %9399 = vst [vmem:[#allocation61_spill] sm:$0xff] %v8242_v4  ;;  %v2913_v2 = vmul.f32 %v2897_v38, %v2897_v38  ;;  %v8244_v56 = vadd.f32 %v5207_v15, %v5206_v51  ;;  %3271 = vmatmul.mubr.f32.gmra.mrb[108].mxu0 %v8242_v4  ;;  %v8261_v38 = vrot.slane %v4910_v6, %v9403_v7  ;;  %v9404_v51 = vld [vmem:[#allocation31_spill] sm:$0xff] }
 0x904   : > { %3276 = vmatprep.mubr.f32.mxu0 %v9358_v24  ;;  %v8264_v15 = vrot.slane %v4910_v6, %v9404_v51 }
 0x905   : > { %9400 = vst [vmem:[#allocation80_spill] sm:$0xff] %v8244_v56  ;;  %v2898_v17 = vsub.f32 %v8244_v56, %v9401_v60  ;;  %v8252_v43 = vsub.f32 %v9401_v60, %v8244_v56  ;;  %v2928_v37 = vadd.f32 %v2927_v3, %v2913_v2 }
 0x907   : > { %9402 = vst [vmem:[#allocation63_spill] sm:$0xff] %v8252_v43  ;;  %v2914_v8 = vmul.f32 %v2898_v17, %v2898_v17  ;;  %3277 = vmatmul.mubr.f32.gmra.mrb[110].mxu0 %v8252_v43 }
 0x909   : > { %v8255_v62 = vadd.f32 %v2928_v37, %v2914_v8 }
 0x99e   : > { %v3188_v24 = vpop.f32.mrb[80].mxu0 }
 0x99f   : > { %v3283_v4 = vmul.f32 2.0, %v3188_v24  ;;  %v3190_v60 = vpop.f32.mrb[81].mxu0 }
 0x9a0   : > { %v3284_v56 = vmul.f32 2.0, %v3190_v60 }
 0x9a1   : > { %v8267_v3 = vsub.f32 %v8261_v38, %v3283_v4 }
 0x9a2   : > { %v8270_v2 = vsub.f32 %v8264_v15, %v3284_v56  ;;  %v3194_v17 = vpop.f32.mrb[82].mxu0 }
 0x9a3   : > { %v3285_v37 = vmul.f32 2.0, %v3194_v17  ;;  %v3196_v8 = vpop.f32.mrb[83].mxu0 }
 0x9a4   : > { %v3286_v43 = vmul.f32 2.0, %v3196_v8  ;;  %v3358_v7 = vmin.f32 %v8267_v3, %v8270_v2 }
 0x9a5   : > { %v8275_v20 = vsub.f32 %v8261_v38, %v3285_v37 }
 0x9a6   : > { %v8278_v6 = vsub.f32 %v8264_v15, %v3286_v43  ;;  %3359 = vmin.xlane.f32.xlu0 %v3358_v7  ;;  %v3200_v24 = vpop.f32.mrb[84].mxu0 }
 0x9a7   : > { %v3287_v4 = vmul.f32 2.0, %v3200_v24  ;;  %v3202_v51 = vpop.f32.mrb[85].mxu0 }
 0x9a8   : > { %v3288_v60 = vmul.f32 2.0, %v3202_v51  ;;  %v3361_v56 = vmin.f32 %v8275_v20, %v8278_v6 }
 0x9a9   : > { %v8283_v17 = vsub.f32 %v8261_v38, %v3287_v4 }
 0x9aa   : > { %v8286_v8 = vsub.f32 %v8264_v15, %v3288_v60  ;;  %3362 = vmin.xlane.f32.xlu1 %v3361_v56  ;;  %v3206_v37 = vpop.f32.mrb[86].mxu0 }
 0x9ab   : > { %v3289_v61 = vmul.f32 2.0, %v3206_v37  ;;  %v3208_v54 = vpop.f32.mrb[87].mxu0 }
 0x9ac   : > { %v3290_v43 = vmul.f32 2.0, %v3208_v54  ;;  %v3364_v7 = vmin.f32 %v8283_v17, %v8286_v8 }
 0x9ad   : > { %v8291_v24 = vsub.f32 %v8261_v38, %v3289_v61 }
 0x9ae   : > { %v8294_v51 = vsub.f32 %v8264_v15, %v3290_v43  ;;  %3365 = vmin.xlane.f32.xlu0 %v3364_v7  ;;  %v3212_v4 = vpop.f32.mrb[88].mxu0 }
 0x9af   : > { %v3291_v52 = vmul.f32 2.0, %v3212_v4  ;;  %v3214_v59 = vpop.f32.mrb[89].mxu0 }
 0x9b0   : > { %v3292_v60 = vmul.f32 2.0, %v3214_v59  ;;  %v3367_v56 = vmin.f32 %v8291_v24, %v8294_v51 }
 0x9b1   : > { %v8299_v37 = vsub.f32 %v8261_v38, %v3291_v52 }
 0x9b2   : > { %v8302_v54 = vsub.f32 %v8264_v15, %v3292_v60  ;;  %3368 = vmin.xlane.f32.xlu1 %v3367_v56  ;;  %v3218_v61 = vpop.f32.mrb[90].mxu0 }
 0x9b3   : > { %v3293_v32 = vmul.f32 2.0, %v3218_v61  ;;  %v3220_v26 = vpop.f32.mrb[91].mxu0 }
 0x9b4   : > { %v3294_v43 = vmul.f32 2.0, %v3220_v26  ;;  %v3370_v7 = vmin.f32 %v8299_v37, %v8302_v54 }
 0x9b5   : > { %v8307_v4 = vsub.f32 %v8261_v38, %v3293_v32 }
 0x9b6   : > { %v8310_v59 = vsub.f32 %v8264_v15, %v3294_v43  ;;  %3371 = vmin.xlane.f32.xlu0 %v3370_v7  ;;  %v3224_v52 = vpop.f32.mrb[92].mxu0 }
 0x9b7   : > { %v3295_v47 = vmul.f32 2.0, %v3224_v52  ;;  %v3226_v46 = vpop.f32.mrb[93].mxu0 }
 0x9b8   : > { %v3296_v60 = vmul.f32 2.0, %v3226_v46  ;;  %v3373_v56 = vmin.f32 %v8307_v4, %v8310_v59 }
 0x9b9   : > { %v8315_v61 = vsub.f32 %v8261_v38, %v3295_v47 }
 0x9ba   : > { %v8318_v26 = vsub.f32 %v8264_v15, %v3296_v60  ;;  %3374 = vmin.xlane.f32.xlu1 %v3373_v56  ;;  %v3230_v32 = vpop.f32.mrb[94].mxu0 }
 0x9bb   : > { %v3297_v63 = vmul.f32 2.0, %v3230_v32  ;;  %v3232_v0 = vpop.f32.mrb[95].mxu0 }
 0x9bc   : > { %v3298_v43 = vmul.f32 2.0, %v3232_v0  ;;  %v3376_v7 = vmin.f32 %v8315_v61, %v8318_v26 }
 0x9bd   : > { %v8323_v52 = vsub.f32 %v8261_v38, %v3297_v63 }
 0x9be   : > { %v8326_v46 = vsub.f32 %v8264_v15, %v3298_v43  ;;  %3377 = vmin.xlane.f32.xlu0 %v3376_v7  ;;  %v3236_v47 = vpop.f32.mrb[96].mxu0 }
 0x9bf   : > { %v3299_v22 = vmul.f32 2.0, %v3236_v47  ;;  %v3238_v9 = vpop.f32.mrb[97].mxu0 }
 0x9c0   : > { %v3300_v60 = vmul.f32 2.0, %v3238_v9  ;;  %v3379_v56 = vmin.f32 %v8323_v52, %v8326_v46 }
 0x9c1   : > { %v8331_v32 = vsub.f32 %v8261_v38, %v3299_v22 }
 0x9c2   : > { %v8334_v0 = vsub.f32 %v8264_v15, %v3300_v60  ;;  %3380 = vmin.xlane.f32.xlu1 %v3379_v56  ;;  %v3242_v63 = vpop.f32.mrb[98].mxu0 }
 0x9c3   : > { %v3301_v28 = vmul.f32 2.0, %v3242_v63  ;;  %v3244_v10 = vpop.f32.mrb[99].mxu0 }
 0x9c4   : > { %v3302_v43 = vmul.f32 2.0, %v3244_v10  ;;  %v3382_v7 = vmin.f32 %v8331_v32, %v8334_v0 }
 0x9c5   : > { %v8339_v47 = vsub.f32 %v8261_v38, %v3301_v28 }
 0x9c6   : > { %v8342_v9 = vsub.f32 %v8264_v15, %v3302_v43  ;;  %3383 = vmin.xlane.f32.xlu0 %v3382_v7  ;;  %v3248_v22 = vpop.f32.mrb[100].mxu0 }
 0x9c7   : > { %v3303_v41 = vmul.f32 2.0, %v3248_v22  ;;  %v3250_v31 = vpop.f32.mrb[101].mxu0 }
 0x9c8   : > { %v3304_v60 = vmul.f32 2.0, %v3250_v31  ;;  %v3385_v56 = vmin.f32 %v8339_v47, %v8342_v9 }
 0x9c9   : > { %v8347_v63 = vsub.f32 %v8261_v38, %v3303_v41 }
 0x9ca   : > { %v8350_v10 = vsub.f32 %v8264_v15, %v3304_v60  ;;  %3386 = vmin.xlane.f32.xlu1 %v3385_v56  ;;  %v3254_v28 = vpop.f32.mrb[102].mxu0 }
 0x9cb   : > { %v3305_v57 = vmul.f32 2.0, %v3254_v28  ;;  %v3256_v11 = vpop.f32.mrb[103].mxu0 }
 0x9cc   : > { %v3306_v43 = vmul.f32 2.0, %v3256_v11  ;;  %v3388_v7 = vmin.f32 %v8347_v63, %v8350_v10 }
 0x9cd   : > { %v8355_v22 = vsub.f32 %v8261_v38, %v3305_v57 }
 0x9ce   : > { %v8358_v31 = vsub.f32 %v8264_v15, %v3306_v43  ;;  %3389 = vmin.xlane.f32.xlu0 %v3388_v7  ;;  %v3260_v41 = vpop.f32.mrb[104].mxu0 }
 0x9cf   : > { %v3307_v39 = vmul.f32 2.0, %v3260_v41  ;;  %v3262_v16 = vpop.f32.mrb[105].mxu0 }
 0x9d0   : > { %v3308_v60 = vmul.f32 2.0, %v3262_v16  ;;  %v3391_v56 = vmin.f32 %v8355_v22, %v8358_v31 }
 0x9d1   : > { %v8363_v28 = vsub.f32 %v8261_v38, %v3307_v39 }
 0x9d2   : > { %v8366_v11 = vsub.f32 %v8264_v15, %v3308_v60  ;;  %3392 = vmin.xlane.f32.xlu1 %v3391_v56  ;;  %v3266_v57 = vpop.f32.mrb[106].mxu0 }
 0x9d3   : > { %v3309_v14 = vmul.f32 2.0, %v3266_v57  ;;  %v3268_v58 = vpop.f32.mrb[107].mxu0 }
 0x9d4   : > { %v3310_v43 = vmul.f32 2.0, %v3268_v58  ;;  %v3394_v7 = vmin.f32 %v8363_v28, %v8366_v11 }
 0x9d5   : > { %v8371_v41 = vsub.f32 %v8261_v38, %v3309_v14 }
 0x9d6   : > { %v8374_v16 = vsub.f32 %v8264_v15, %v3310_v43  ;;  %3395 = vmin.xlane.f32.xlu0 %v3394_v7  ;;  %v3272_v39 = vpop.f32.mrb[108].mxu0 }
 0x9d7   : > { %v3311_v18 = vmul.f32 2.0, %v3272_v39  ;;  %v3274_v5 = vpop.f32.mrb[109].mxu0 }
 0x9d8   : > { %v3312_v60 = vmul.f32 2.0, %v3274_v5  ;;  %v3397_v56 = vmin.f32 %v8371_v41, %v8374_v16 }
 0x9d9   : > { %v8379_v57 = vsub.f32 %v8261_v38, %v3311_v18 }
 0x9da   : > { %v8382_v58 = vsub.f32 %v8264_v15, %v3312_v60  ;;  %3398 = vmin.xlane.f32.xlu1 %v3397_v56  ;;  %v3278_v14 = vpop.f32.mrb[110].mxu0 }
 0x9db   : > { %v3313_v1 = vmul.f32 2.0, %v3278_v14  ;;  %v3280_v55 = vpop.f32.mrb[111].mxu0 }
 0x9dc   : > { %v3314_v43 = vmul.f32 2.0, %v3280_v55  ;;  %v3400_v7 = vmin.f32 %v8379_v57, %v8382_v58 }
 0x9dd   : > { %v8387_v39 = vsub.f32 %v8261_v38, %v3313_v1 }
 0x9de   : > { %v8390_v5 = vsub.f32 %v8264_v15, %v3314_v43  ;;  %3401 = vmin.xlane.f32.xlu0 %v3400_v7 }
 0x9e0   : > { %v3403_v18 = vmin.f32 %v8387_v39, %v8390_v5 }
 0x9e2   : > { %3404 = vmin.xlane.f32.xlu1 %v3403_v18 }
 0xa33   : > { %v3360_v60 = vpop.xlane.xlu0 %3359 }
 0xa34   : > { %vm3406_vm4 = vcmp.eq.f32.partialorder %v8267_v3, %v3360_v60  ;;  %vm3407_vm13 = vcmp.eq.f32.partialorder %v8270_v2, %v3360_v60 }
 0xa35   : > { %v3438_v55 = vsel %vm3406_vm4, %v6608_v29, 256  ;;  %v3439_v56 = vsel %vm3407_vm13, %v6611_v34, 256 }
 0xa36   : > { %vm3470_vm1 = vcmp.lt.s32.totalorder %v3438_v55, %v3439_v56 }
 0xa37   : > { %v8398_v1 = vsel %vm3470_vm1, %v3438_v55, %v3439_v56  ;;  %v3363_v38 = vpop.xlane.xlu1 %3362 }
 0xa38   : > { %vm3408_vm3 = vcmp.eq.f32.partialorder %v8275_v20, %v3363_v38  ;;  %vm3409_vm14 = vcmp.eq.f32.partialorder %v8278_v6, %v3363_v38  ;;  %v3473_v15 = vshra.s32 %v8398_v1, 16 }
 0xa39   : > { %v3440_v14 = vsel %vm3408_vm3, %v6608_v29, 256  ;;  %v3441_v3 = vsel %vm3409_vm14, %v6611_v34, 256 }
 0xa3a   : > { %vm3486_vm10 = vcmp.lt.s32.totalorder %v3440_v14, %v3441_v3  ;;  %v8405_v2 = vcvt.s32.f32 %v3473_v15 }
 0xa3b   : > { %v8407_v43 = vsel %vm3486_vm10, %v3440_v14, %v3441_v3  ;;  %v3366_v7 = vpop.xlane.xlu0 %3365 }
 0xa3c   : > { %vm3410_vm4 = vcmp.eq.f32.partialorder %v8283_v17, %v3366_v7  ;;  %vm3411_vm13 = vcmp.eq.f32.partialorder %v8286_v8, %v3366_v7  ;;  %3476 = vmin.xlane.f32.xlu0 %v8405_v2  ;;  %v3489_v20 = vshra.s32 %v8407_v43, 16 }
 0xa3d   : > { %v3442_v6 = vsel %vm3410_vm4, %v6608_v29, 256  ;;  %v3443_v18 = vsel %vm3411_vm13, %v6611_v34, 256 }
 0xa3e   : > { %vm3502_vm1 = vcmp.lt.s32.totalorder %v3442_v6, %v3443_v18  ;;  %v8415_v60 = vcvt.s32.f32 %v3489_v20 }
 0xa3f   : > { %v8417_v55 = vsel %vm3502_vm1, %v3442_v6, %v3443_v18  ;;  %v3369_v56 = vpop.xlane.xlu1 %3368 }
 0xa40   : > { %vm3412_vm3 = vcmp.eq.f32.partialorder %v8291_v24, %v3369_v56  ;;  %vm3413_vm14 = vcmp.eq.f32.partialorder %v8294_v51, %v3369_v56  ;;  %3492 = vmin.xlane.f32.xlu1 %v8415_v60  ;;  %v3505_v17 = vshra.s32 %v8417_v55, 16 }
 0xa41   : > { %v3444_v8 = vsel %vm3412_vm3, %v6608_v29, 256  ;;  %v3445_v38 = vsel %vm3413_vm14, %v6611_v34, 256 }
 0xa42   : > { %vm3518_vm10 = vcmp.lt.s32.totalorder %v3444_v8, %v3445_v38  ;;  %v8425_v15 = vcvt.s32.f32 %v3505_v17 }
 0xa43   : > { %v8427_v14 = vsel %vm3518_vm10, %v3444_v8, %v3445_v38  ;;  %v3372_v3 = vpop.xlane.xlu0 %3371 }
 0xa44   : > { %vm3414_vm4 = vcmp.eq.f32.partialorder %v8299_v37, %v3372_v3  ;;  %vm3415_vm13 = vcmp.eq.f32.partialorder %v8302_v54, %v3372_v3  ;;  %3508 = vmin.xlane.f32.xlu0 %v8425_v15  ;;  %v3521_v24 = vshra.s32 %v8427_v14, 16 }
 0xa45   : > { %v3446_v51 = vsel %vm3414_vm4, %v6608_v29, 256  ;;  %v3447_v7 = vsel %vm3415_vm13, %v6611_v34, 256 }
 0xa46   : > { %vm3534_vm1 = vcmp.lt.s32.totalorder %v3446_v51, %v3447_v7  ;;  %v8435_v20 = vcvt.s32.f32 %v3521_v24 }
 0xa47   : > { %v8437_v6 = vsel %vm3534_vm1, %v3446_v51, %v3447_v7  ;;  %v3375_v18 = vpop.xlane.xlu1 %3374 }
 0xa48   : > { %vm3416_vm3 = vcmp.eq.f32.partialorder %v8307_v4, %v3375_v18  ;;  %vm3417_vm14 = vcmp.eq.f32.partialorder %v8310_v59, %v3375_v18  ;;  %3524 = vmin.xlane.f32.xlu1 %v8435_v20  ;;  %v3537_v37 = vshra.s32 %v8437_v6, 16 }
 0xa49   : > { %v3448_v54 = vsel %vm3416_vm3, %v6608_v29, 256  ;;  %v3449_v56 = vsel %vm3417_vm14, %v6611_v34, 256 }
 0xa4a   : > { %vm3550_vm10 = vcmp.lt.s32.totalorder %v3448_v54, %v3449_v56  ;;  %v8445_v17 = vcvt.s32.f32 %v3537_v37 }
 0xa4b   : > { %v8447_v8 = vsel %vm3550_vm10, %v3448_v54, %v3449_v56  ;;  %v3378_v38 = vpop.xlane.xlu0 %3377 }
 0xa4c   : > { %vm3418_vm4 = vcmp.eq.f32.partialorder %v8315_v61, %v3378_v38  ;;  %vm3419_vm13 = vcmp.eq.f32.partialorder %v8318_v26, %v3378_v38  ;;  %3540 = vmin.xlane.f32.xlu0 %v8445_v17  ;;  %v3553_v4 = vshra.s32 %v8447_v8, 16 }
 0xa4d   : > { %v3450_v59 = vsel %vm3418_vm4, %v6608_v29, 256  ;;  %v3451_v3 = vsel %vm3419_vm13, %v6611_v34, 256 }
 0xa4e   : > { %vm3566_vm1 = vcmp.lt.s32.totalorder %v3450_v59, %v3451_v3  ;;  %v8455_v24 = vcvt.s32.f32 %v3553_v4 }
 0xa4f   : > { %v8457_v51 = vsel %vm3566_vm1, %v3450_v59, %v3451_v3  ;;  %v3381_v7 = vpop.xlane.xlu1 %3380 }
 0xa50   : > { %vm3420_vm3 = vcmp.eq.f32.partialorder %v8323_v52, %v3381_v7  ;;  %vm3421_vm14 = vcmp.eq.f32.partialorder %v8326_v46, %v3381_v7  ;;  %3556 = vmin.xlane.f32.xlu1 %v8455_v24  ;;  %v3569_v61 = vshra.s32 %v8457_v51, 16 }
 0xa51   : > { %v3452_v26 = vsel %vm3420_vm3, %v6608_v29, 256  ;;  %v3453_v18 = vsel %vm3421_vm14, %v6611_v34, 256 }
 0xa52   : > { %vm3582_vm10 = vcmp.lt.s32.totalorder %v3452_v26, %v3453_v18  ;;  %v8465_v37 = vcvt.s32.f32 %v3569_v61 }
 0xa53   : > { %v8467_v54 = vsel %vm3582_vm10, %v3452_v26, %v3453_v18  ;;  %v3384_v56 = vpop.xlane.xlu0 %3383 }
 0xa54   : > { %vm3422_vm4 = vcmp.eq.f32.partialorder %v8331_v32, %v3384_v56  ;;  %vm3423_vm13 = vcmp.eq.f32.partialorder %v8334_v0, %v3384_v56  ;;  %3572 = vmin.xlane.f32.xlu0 %v8465_v37  ;;  %v3585_v52 = vshra.s32 %v8467_v54, 16 }
 0xa55   : > { %v3454_v46 = vsel %vm3422_vm4, %v6608_v29, 256  ;;  %v3455_v38 = vsel %vm3423_vm13, %v6611_v34, 256 }
 0xa56   : > { %vm3598_vm1 = vcmp.lt.s32.totalorder %v3454_v46, %v3455_v38  ;;  %v8475_v4 = vcvt.s32.f32 %v3585_v52 }
 0xa57   : > { %v8477_v59 = vsel %vm3598_vm1, %v3454_v46, %v3455_v38  ;;  %v3387_v3 = vpop.xlane.xlu1 %3386 }
 0xa58   : > { %vm3424_vm3 = vcmp.eq.f32.partialorder %v8339_v47, %v3387_v3  ;;  %vm3425_vm14 = vcmp.eq.f32.partialorder %v8342_v9, %v3387_v3  ;;  %3588 = vmin.xlane.f32.xlu1 %v8475_v4  ;;  %v3601_v32 = vshra.s32 %v8477_v59, 16 }
 0xa59   : > { %v3456_v0 = vsel %vm3424_vm3, %v6608_v29, 256  ;;  %v3457_v7 = vsel %vm3425_vm14, %v6611_v34, 256 }
 0xa5a   : > { %vm3614_vm10 = vcmp.lt.s32.totalorder %v3456_v0, %v3457_v7  ;;  %v8485_v61 = vcvt.s32.f32 %v3601_v32 }
 0xa5b   : > { %v8487_v26 = vsel %vm3614_vm10, %v3456_v0, %v3457_v7  ;;  %v3390_v18 = vpop.xlane.xlu0 %3389 }
 0xa5c   : > { %vm3426_vm4 = vcmp.eq.f32.partialorder %v8347_v63, %v3390_v18  ;;  %vm3427_vm13 = vcmp.eq.f32.partialorder %v8350_v10, %v3390_v18  ;;  %3604 = vmin.xlane.f32.xlu0 %v8485_v61  ;;  %v3617_v47 = vshra.s32 %v8487_v26, 16 }
 0xa5d   : > { %v3458_v9 = vsel %vm3426_vm4, %v6608_v29, 256  ;;  %v3459_v56 = vsel %vm3427_vm13, %v6611_v34, 256 }
 0xa5e   : > { %vm3630_vm1 = vcmp.lt.s32.totalorder %v3458_v9, %v3459_v56  ;;  %v8495_v52 = vcvt.s32.f32 %v3617_v47 }
 0xa5f   : > { %v8497_v46 = vsel %vm3630_vm1, %v3458_v9, %v3459_v56  ;;  %v3393_v38 = vpop.xlane.xlu1 %3392 }
 0xa60   : > { %vm3428_vm3 = vcmp.eq.f32.partialorder %v8355_v22, %v3393_v38  ;;  %vm3429_vm14 = vcmp.eq.f32.partialorder %v8358_v31, %v3393_v38  ;;  %3620 = vmin.xlane.f32.xlu1 %v8495_v52  ;;  %v3633_v63 = vshra.s32 %v8497_v46, 16 }
 0xa61   : > { %v3460_v10 = vsel %vm3428_vm3, %v6608_v29, 256  ;;  %v3461_v3 = vsel %vm3429_vm14, %v6611_v34, 256 }
 0xa62   : > { %vm3646_vm10 = vcmp.lt.s32.totalorder %v3460_v10, %v3461_v3  ;;  %v8505_v32 = vcvt.s32.f32 %v3633_v63 }
 0xa63   : > { %v8507_v0 = vsel %vm3646_vm10, %v3460_v10, %v3461_v3  ;;  %v3396_v7 = vpop.xlane.xlu0 %3395 }
 0xa64   : > { %vm3430_vm4 = vcmp.eq.f32.partialorder %v8363_v28, %v3396_v7  ;;  %vm3431_vm13 = vcmp.eq.f32.partialorder %v8366_v11, %v3396_v7  ;;  %3636 = vmin.xlane.f32.xlu0 %v8505_v32  ;;  %v3649_v22 = vshra.s32 %v8507_v0, 16 }
 0xa65   : > { %v3462_v31 = vsel %vm3430_vm4, %v6608_v29, 256  ;;  %v3463_v18 = vsel %vm3431_vm13, %v6611_v34, 256 }
 0xa66   : > { %vm3662_vm1 = vcmp.lt.s32.totalorder %v3462_v31, %v3463_v18  ;;  %v8515_v47 = vcvt.s32.f32 %v3649_v22 }
 0xa67   : > { %v8517_v9 = vsel %vm3662_vm1, %v3462_v31, %v3463_v18  ;;  %v3399_v56 = vpop.xlane.xlu1 %3398 }
 0xa68   : > { %vm3432_vm3 = vcmp.eq.f32.partialorder %v8371_v41, %v3399_v56  ;;  %vm3433_vm14 = vcmp.eq.f32.partialorder %v8374_v16, %v3399_v56  ;;  %3652 = vmin.xlane.f32.xlu1 %v8515_v47  ;;  %v3665_v28 = vshra.s32 %v8517_v9, 16 }
 0xa69   : > { %v3464_v11 = vsel %vm3432_vm3, %v6608_v29, 256  ;;  %v3465_v38 = vsel %vm3433_vm14, %v6611_v34, 256 }
 0xa6a   : > { %vm3678_vm10 = vcmp.lt.s32.totalorder %v3464_v11, %v3465_v38  ;;  %v8525_v63 = vcvt.s32.f32 %v3665_v28 }
 0xa6b   : > { %v8527_v10 = vsel %vm3678_vm10, %v3464_v11, %v3465_v38  ;;  %v3402_v3 = vpop.xlane.xlu0 %3401 }
 0xa6c   : > { %vm3434_vm4 = vcmp.eq.f32.partialorder %v8379_v57, %v3402_v3  ;;  %vm3435_vm13 = vcmp.eq.f32.partialorder %v8382_v58, %v3402_v3  ;;  %3668 = vmin.xlane.f32.xlu0 %v8525_v63  ;;  %v3681_v41 = vshra.s32 %v8527_v10, 16  ;;  %v4863_v3 = vld [vmem:[%s9147_s5 + $0x288] sm:$0xff] }
 0xa6d   : > { %v3466_v16 = vsel %vm3434_vm4, %v6608_v29, 256  ;;  %v3467_v7 = vsel %vm3435_vm13, %v6611_v34, 256 }
 0xa6e   : > { %vm3694_vm1 = vcmp.lt.s32.totalorder %v3466_v16, %v3467_v7  ;;  %v8535_v22 = vcvt.s32.f32 %v3681_v41  ;;  %v4846_v41 = vld [vmem:[%s9147_s5 + $0x200] sm:$0xff] }
 0xa6f   : > { %v8537_v31 = vsel %vm3694_vm1, %v3466_v16, %v3467_v7  ;;  %v3405_v18 = vpop.xlane.xlu1 %3404  ;;  %v4847_v7 = vld [vmem:[%s9147_s5 + $0x208] sm:$0xff] }
 0xa70   : > { %vm3436_vm3 = vcmp.eq.f32.partialorder %v8387_v39, %v3405_v18  ;;  %vm3437_vm14 = vcmp.eq.f32.partialorder %v8390_v5, %v3405_v18  ;;  %3684 = vmin.xlane.f32.xlu1 %v8535_v22  ;;  %v3697_v57 = vshra.s32 %v8537_v31, 16  ;;  %v4862_v5 = vld [vmem:[%s9147_s5 + $0x280] sm:$0xff]  ;;  %v4864_v18 = vld [vmem:[%s9147_s5 + $0x290] sm:$0xff] }
 0xa71   : > { %v3468_v58 = vsel %vm3436_vm3, %v6608_v29, 256  ;;  %v3469_v56 = vsel %vm3437_vm14, %v6611_v34, 256  ;;  %v5801_v16 = vpack.c.bf16 %v4863_v3, %v4862_v5  ;;  %v4849_v5 = vld [vmem:[%s9147_s5 + $0x218] sm:$0xff]  ;;  %v4866_v3 = vld [vmem:[%s9147_s5 + $0x2a0] sm:$0xff] }
 0xa72   : > { %vm3710_vm10 = vcmp.lt.s32.totalorder %v3468_v58, %v3469_v56  ;;  %v8545_v28 = vcvt.s32.f32 %v3697_v57  ;;  %v4865_v57 = vld [vmem:[%s9147_s5 + $0x298] sm:$0xff] }
 0xa73   : > { %v8547_v11 = vsel %vm3710_vm10, %v3468_v58, %v3469_v56  ;;  %v5803_v58 = vpack.c.bf16 %v4847_v7, %v4846_v41  ;;  %v5805_v56 = vpack.c.bf16 %v4865_v57, %v4864_v18  ;;  %5802 = vmatprep.subr.bf16.mxu1 %v5801_v16  ;;  %v5809_v7 = vpack.c.bf16 %v4867_v12, %v4866_v3  ;;  %v4850_v18 = vld [vmem:[%s9147_s5 + $0x220] sm:$0xff]  ;;  %v4851_v57 = vld [vmem:[%s9147_s5 + $0x228] sm:$0xff]  ;;  %v4868_v16 = vld [vmem:[%s9147_s5 + $0x2b0] sm:$0xff] }
 0xa74   : > { %3700 = vmin.xlane.f32.xlu0 %v8545_v28  ;;  %v3713_v38 = vshra.s32 %v8547_v11, 16  ;;  %v5813_v12 = vpack.c.bf16 %v4869_v49, %v4868_v16  ;;  %v4871_v3 = vld [vmem:[%s9147_s5 + $0x2c8] sm:$0xff]  ;;  %v4873_v16 = vld [vmem:[%s9147_s5 + $0x2d8] sm:$0xff] }
 0xa75   : > { %5804 = vmatpush3.bf16.msra.mxu1 %v5803_v58  ;;  %v5811_v58 = vpack.c.bf16 %v4851_v57, %v4850_v18  ;;  %v4855_v18 = vld [vmem:[%s9147_s5 + $0x248] sm:$0xff]  ;;  %v4872_v57 = vld [vmem:[%s9147_s5 + $0x2d0] sm:$0xff] }
 0xa76   : > { %v8551_v39 = vcvt.s32.f32 %v3713_v38  ;;  %v4848_v38 = vld [vmem:[%s9147_s5 + $0x210] sm:$0xff]  ;;  %5806 = vmatprep.subr.bf16.mxu1 %v5805_v56 }
 0xa77   : > { %v5807_v41 = vpack.c.bf16 %v4849_v5, %v4848_v38  ;;  %v4852_v56 = vld [vmem:[%s9147_s5 + $0x230] sm:$0xff]  ;;  %v4853_v38 = vld [vmem:[%s9147_s5 + $0x238] sm:$0xff]  ;;  %v4870_v5 = vld [vmem:[%s9147_s5 + $0x2c0] sm:$0xff] }
 0xa78   : > { %3716 = vmin.xlane.f32.xlu1 %v8551_v39  ;;  %v5817_v49 = vpack.c.bf16 %v4871_v3, %v4870_v5  ;;  %v4874_v5 = vld [vmem:[%s9147_s5 + $0x2e0] sm:$0xff]  ;;  %v4875_v3 = vld [vmem:[%s9147_s5 + $0x2e8] sm:$0xff] }
 0xa79   : > { %5808 = vmatpush3.bf16.msra.mxu1 %v5807_v41  ;;  %v5815_v41 = vpack.c.bf16 %v4853_v38, %v4852_v56  ;;  %v4856_v56 = vld [vmem:[%s9147_s5 + $0x250] sm:$0xff]  ;;  %v4857_v38 = vld [vmem:[%s9147_s5 + $0x258] sm:$0xff] }
 0xa7a   : > { %5810 = vmatprep.subr.bf16.mxu1 %v5809_v7  ;;  %v4854_v7 = vld [vmem:[%s9147_s5 + $0x240] sm:$0xff] }
 0xa7d   : > { %5812 = vmatpush3.bf16.msra.mxu1 %v5811_v58  ;;  %v5819_v58 = vpack.c.bf16 %v4855_v18, %v4854_v7  ;;  %v4858_v7 = vld [vmem:[%s9147_s5 + $0x260] sm:$0xff]  ;;  %v4859_v18 = vld [vmem:[%s9147_s5 + $0x268] sm:$0xff] }
 0xa7e   : > { %5814 = vmatprep.subr.bf16.mxu1 %v5813_v12  ;;  %v5821_v12 = vpack.c.bf16 %v4873_v16, %v4872_v57  ;;  %v4876_v57 = vld [vmem:[%s9147_s5 + $0x2f0] sm:$0xff]  ;;  %v4877_v16 = vld [vmem:[%s9147_s5 + $0x2f8] sm:$0xff] }
 0xa81   : > { %5816 = vmatpush3.bf16.msra.mxu1 %v5815_v41  ;;  %v5823_v41 = vpack.c.bf16 %v4857_v38, %v4856_v56  ;;  %v4860_v56 = vld [vmem:[%s9147_s5 + $0x270] sm:$0xff]  ;;  %v4861_v38 = vld [vmem:[%s9147_s5 + $0x278] sm:$0xff] }
 0xa82   : > { %5818 = vmatprep.subr.bf16.mxu1 %v5817_v49  ;;  %v5825_v49 = vpack.c.bf16 %v4875_v3, %v4874_v5  ;;  %v5831_v5 = vpack.c.bf16 %v4861_v38, %v4860_v56  ;;  %v3472_v3 = vand.u32 65535, %v8398_v1 }
 0xa85   : > { %5820 = vmatpush3.bf16.msra.mxu1 %v5819_v58  ;;  %v5827_v58 = vpack.c.bf16 %v4859_v18, %v4858_v7 }
 0xa86   : > { %5822 = vmatprep.subr.bf16.mxu1 %v5821_v12  ;;  %v5829_v12 = vpack.c.bf16 %v4877_v16, %v4876_v57  ;;  %v3504_v16 = vand.u32 65535, %v8417_v55  ;;  %v3536_v55 = vand.u32 65535, %v8437_v6  ;;  %v3568_v6 = vand.u32 65535, %v8457_v51 }
 0xa89   : > { %5824 = vmatpush3.bf16.msra.mxu1 %v5823_v41  ;;  %v3474_v41 = vcvt.s32.f32 %v3472_v3  ;;  %v3538_v3 = vcvt.s32.f32 %v3536_v55  ;;  %v9410_v55 = vld [vmem:[#allocation36_spill] sm:$0xff] }
 0xa8a   : > { %5826 = vmatprep.subr.bf16.mxu1 %v5825_v49  ;;  %v3488_v49 = vand.u32 65535, %v8407_v43  ;;  %v3520_v43 = vand.u32 65535, %v8427_v14  ;;  %v3552_v14 = vand.u32 65535, %v8447_v8  ;;  %v3584_v8 = vand.u32 65535, %v8467_v54 }
 0xa8c   : > { %v3490_v57 = vcvt.s32.f32 %v3488_v49  ;;  %v3522_v38 = vcvt.s32.f32 %v3520_v43  ;;  %v3554_v49 = vcvt.s32.f32 %v3552_v14  ;;  %v9407_v43 = vld [vmem:[#allocation14_spill] sm:$0xff]  ;;  %v3600_v14 = vand.u32 65535, %v8477_v59 }
 0xa8d   : > { %5828 = vmatpush3.bf16.msra.mxu1 %v5827_v58 }
 0xa8e   : > { %5830 = vmatprep.subr.bf16.mxu1 %v5829_v12  ;;  %v3506_v12 = vcvt.s32.f32 %v3504_v16  ;;  %v9405_v16 = vld [vmem:[#allocation15_spill] sm:$0xff] }
 0xa91   : > { %5832 = vmatpush3.bf16.msra.mxu1 %v5831_v5 }
 0xac9   : > { %v8651_v45 = vpop.xlane.xlu0 %3476 }
 0xaca   : > { %vm3478_vm4 = vcmp.eq.f32.partialorder %v8405_v2, %v8651_v45 }
 0xacb   : > { %v3479_v7 = vsel %vm3478_vm4, %v3474_v41, inf }
 0xacc   : > { %3480 = vmin.xlane.f32.xlu0 %v3479_v7 }
 0xacd   : > { %v8656_v18 = vpop.xlane.xlu1 %3492 }
 0xace   : > { %vm3494_vm13 = vcmp.eq.f32.partialorder %v8415_v60, %v8656_v18 }
 0xacf   : > { %v3495_v58 = vsel %vm3494_vm13, %v3490_v57, inf  ;;  %v3570_v57 = vcvt.s32.f32 %v3568_v6 }
 0xad0   : > { %3496 = vmin.xlane.f32.xlu1 %v3495_v58  ;;  %v9406_v58 = vld [vmem:[#allocation34_spill] sm:$0xff] }
 0xad1   : > { %v8661_v1 = vpop.xlane.xlu0 %3508 }
 0xad2   : > { %vm3510_vm1 = vcmp.eq.f32.partialorder %v8425_v15, %v8661_v1 }
 0xad3   : > { %v3511_v2 = vsel %vm3510_vm1, %v3506_v12, inf }
 0xad4   : > { %3512 = vmin.xlane.f32.xlu0 %v3511_v2  ;;  %v9408_v2 = vld [vmem:[#allocation33_spill] sm:$0xff] }
 0xad5   : > { %v8666_v56 = vpop.xlane.xlu1 %3524  ;;  %v1769_v51 = vsub.f32 %v9408_v2, %v9407_v43  ;;  %v9414_v43 = vld [vmem:[#allocation40_spill] sm:$0xff]  ;;  %v9416_v2 = vld [vmem:[#allocation42_spill] sm:$0xff] }
 0xad6   : > { %vm3526_vm3 = vcmp.eq.f32.partialorder %v8435_v20, %v8666_v56 }
 0xad7   : > { %v3527_v60 = vsel %vm3526_vm3, %v3522_v38, inf  ;;  %v9409_v38 = vld [vmem:[#allocation16_spill] sm:$0xff] }
 0xad8   : > { %3528 = vmin.xlane.f32.xlu1 %v3527_v60 }
 0xad9   : > { %v8671_v5 = vpop.xlane.xlu0 %3540 }
 0xada   : > { %vm3542_vm14 = vcmp.eq.f32.partialorder %v8445_v17, %v8671_v5  ;;  %v1770_v17 = vsub.f32 %v9406_v58, %v9405_v16  ;;  %v9413_v16 = vld [vmem:[#allocation18_spill] sm:$0xff] }
 0xadb   : > { %v3543_v15 = vsel %vm3542_vm14, %v3538_v3, inf  ;;  %v3586_v3 = vcvt.s32.f32 %v3584_v8  ;;  %v1773_v58 = vsub.f32 %v9414_v43, %v9413_v16  ;;  %v3616_v8 = vand.u32 65535, %v8487_v26  ;;  %v9420_v43 = vld [vmem:[#allocation46_spill] sm:$0xff] }
 0xadc   : > { %3544 = vmin.xlane.f32.xlu0 %v3543_v15  ;;  %v1786_v54 = vmul.f32 %v1770_v17, %v1770_v17  ;;  %v9411_v15 = vld [vmem:[#allocation17_spill] sm:$0xff]  ;;  %v3632_v26 = vand.u32 65535, %v8497_v46  ;;  %v3648_v46 = vand.u32 65535, %v8507_v0  ;;  %v3664_v0 = vand.u32 65535, %v8517_v9 }
 0xadd   : > { %v8676_v41 = vpop.xlane.xlu1 %3556  ;;  %v3680_v9 = vand.u32 65535, %v8527_v10  ;;  %v3696_v10 = vand.u32 65535, %v8537_v31 }
 0xade   : > { %vm3558_vm10 = vcmp.eq.f32.partialorder %v8455_v24, %v8676_v41  ;;  %v1771_v24 = vsub.f32 %v9410_v55, %v9409_v38  ;;  %v3602_v38 = vcvt.s32.f32 %v3600_v14  ;;  %v9415_v55 = vld [vmem:[#allocation19_spill] sm:$0xff]  ;;  %v3618_v14 = vcvt.s32.f32 %v3616_v8 }
 0xadf   : > { %v3559_v20 = vsel %vm3558_vm10, %v3554_v49, inf  ;;  %v9412_v49 = vld [vmem:[#allocation38_spill] sm:$0xff]  ;;  %v3634_v8 = vcvt.s32.f32 %v3632_v26  ;;  %v3650_v26 = vcvt.s32.f32 %v3648_v46  ;;  %v3666_v46 = vcvt.s32.f32 %v3664_v0 }
 0xae0   : > { %3560 = vmin.xlane.f32.xlu1 %v3559_v20  ;;  %v1772_v6 = vsub.f32 %v9412_v49, %v9411_v15  ;;  %v1785_v20 = vmul.f32 %v1769_v51, %v1769_v51  ;;  %v1774_v15 = vsub.f32 %v9416_v2, %v9415_v55  ;;  %v9418_v49 = vld [vmem:[#allocation44_spill] sm:$0xff]  ;;  %v3682_v0 = vcvt.s32.f32 %v3680_v9 }
 0xae1   : > { %v8681_v7 = vpop.xlane.xlu0 %3572 }
 0xae2   : > { %vm3574_vm4 = vcmp.eq.f32.partialorder %v8465_v37, %v8681_v7  ;;  %v1801_v59 = vadd.f32 %v1786_v54, %v1785_v20  ;;  %v1788_v17 = vmul.f32 %v1772_v6, %v1772_v6  ;;  %v1790_v6 = vmul.f32 %v1774_v15, %v1774_v15  ;;  %v9419_v20 = vld [vmem:[#allocation21_spill] sm:$0xff] }
 0xae3   : > { %v3575_v12 = vsel %vm3574_vm4, %v3570_v57, inf  ;;  %v1787_v57 = vmul.f32 %v1771_v24, %v1771_v24  ;;  %v1789_v24 = vmul.f32 %v1773_v58, %v1773_v58  ;;  %v1776_v55 = vsub.f32 %v9420_v43, %v9419_v20 }
 0xae4   : > { %3576 = vmin.xlane.f32.xlu0 %v3575_v12 }
 0xae5   : > { %v8692_v60 = vpop.xlane.xlu1 %3588  ;;  %v1802_v51 = vadd.f32 %v1801_v59, %v1787_v57  ;;  %v9422_v59 = vld [vmem:[#allocation48_spill] sm:$0xff]  ;;  %v1792_v15 = vmul.f32 %v1776_v55, %v1776_v55 }
 0xae6   : > { %vm3590_vm13 = vcmp.eq.f32.partialorder %v8475_v4, %v8692_v60 }
 0xae7   : > { %v3591_v37 = vsel %vm3590_vm13, %v3586_v3, inf  ;;  %v9417_v3 = vld [vmem:[#allocation20_spill] sm:$0xff]  ;;  %v1803_v54 = vadd.f32 %v1802_v51, %v1788_v17  ;;  %v9423_v51 = vld [vmem:[#allocation23_spill] sm:$0xff] }
 0xae8   : > { %3592 = vmin.xlane.f32.xlu1 %v3591_v37  ;;  %v1775_v16 = vsub.f32 %v9418_v49, %v9417_v3  ;;  %v9424_v49 = vld [vmem:[#allocation50_spill] sm:$0xff] }
 0xae9   : > { %v8701_v12 = vpop.xlane.xlu0 %3604  ;;  %v1804_v57 = vadd.f32 %v1803_v54, %v1789_v24  ;;  %v1778_v20 = vsub.f32 %v9424_v49, %v9423_v51  ;;  %v9426_v54 = vld [vmem:[#allocation52_spill] sm:$0xff] }
 0xaea   : > { %vm3606_vm1 = vcmp.eq.f32.partialorder %v8485_v61, %v8701_v12  ;;  %v1791_v58 = vmul.f32 %v1775_v16, %v1775_v16 }
 0xaeb   : > { %v3607_v4 = vsel %vm3606_vm1, %v3602_v38, inf  ;;  %v9421_v38 = vld [vmem:[#allocation22_spill] sm:$0xff]  ;;  %v1805_v17 = vadd.f32 %v1804_v57, %v1790_v6  ;;  %v1794_v55 = vmul.f32 %v1778_v20, %v1778_v20  ;;  %v9427_v57 = vld [vmem:[#allocation25_spill] sm:$0xff] }
 0xaec   : > { %3608 = vmin.xlane.f32.xlu0 %v3607_v4  ;;  %v1777_v3 = vsub.f32 %v9422_v59, %v9421_v38  ;;  %v9428_v59 = vld [vmem:[#allocation54_spill] sm:$0xff] }
 0xaed   : > { %v8710_v37 = vpop.xlane.xlu1 %3620  ;;  %v1806_v24 = vadd.f32 %v1805_v17, %v1791_v58  ;;  %v1780_v51 = vsub.f32 %v9428_v59, %v9427_v57  ;;  %v9430_v17 = vld [vmem:[#allocation56_spill] sm:$0xff] }
 0xaee   : > { %vm3622_vm3 = vcmp.eq.f32.partialorder %v8495_v52, %v8710_v37  ;;  %v1793_v16 = vmul.f32 %v1777_v3, %v1777_v3 }
 0xaef   : > { %v3623_v61 = vsel %vm3622_vm3, %v3618_v14, inf  ;;  %v9425_v14 = vld [vmem:[#allocation24_spill] sm:$0xff]  ;;  %v1807_v6 = vadd.f32 %v1806_v24, %v1792_v15  ;;  %v1796_v20 = vmul.f32 %v1780_v51, %v1780_v51  ;;  %v9431_v24 = vld [vmem:[#allocation27_spill] sm:$0xff] }
 0xaf0   : > { %3624 = vmin.xlane.f32.xlu1 %v3623_v61  ;;  %v1779_v38 = vsub.f32 %v9426_v54, %v9425_v14  ;;  %v9432_v54 = vld [vmem:[#allocation58_spill] sm:$0xff] }
 0xaf1   : > { %v8719_v4 = vpop.xlane.xlu0 %3636  ;;  %v1808_v58 = vadd.f32 %v1807_v6, %v1793_v16  ;;  %v1782_v57 = vsub.f32 %v9432_v54, %v9431_v24  ;;  %v9434_v6 = vld [vmem:[#allocation60_spill] sm:$0xff] }
 0xaf2   : > { %vm3638_vm14 = vcmp.eq.f32.partialorder %v8505_v32, %v8719_v4  ;;  %v1795_v3 = vmul.f32 %v1779_v38, %v1779_v38 }
 0xaf3   : > { %v3639_v52 = vsel %vm3638_vm14, %v3634_v8, inf  ;;  %v9429_v8 = vld [vmem:[#allocation26_spill] sm:$0xff]  ;;  %v1809_v15 = vadd.f32 %v1808_v58, %v1794_v55  ;;  %v1798_v51 = vmul.f32 %v1782_v57, %v1782_v57  ;;  %v9435_v58 = vld [vmem:[#allocation29_spill] sm:$0xff] }
 0xaf4   : > { %3640 = vmin.xlane.f32.xlu0 %v3639_v52  ;;  %v1781_v14 = vsub.f32 %v9430_v17, %v9429_v8  ;;  %v9436_v17 = vld [vmem:[#allocation62_spill] sm:$0xff] }
 0xaf5   : > { %v8728_v61 = vpop.xlane.xlu1 %3652  ;;  %v1810_v16 = vadd.f32 %v1809_v15, %v1795_v3  ;;  %v1784_v24 = vsub.f32 %v9436_v17, %v9435_v58  ;;  %v3698_v15 = vcvt.s32.f32 %v3696_v10 }
 0xaf6   : > { %vm3654_vm10 = vcmp.eq.f32.partialorder %v8515_v47, %v8728_v61  ;;  %v1797_v38 = vmul.f32 %v1781_v14, %v1781_v14 }
 0xaf7   : > { %v3655_v32 = vsel %vm3654_vm10, %v3650_v26, inf  ;;  %v9433_v26 = vld [vmem:[#allocation28_spill] sm:$0xff]  ;;  %v1811_v55 = vadd.f32 %v1810_v16, %v1796_v20 }
 0xaf8   : > { %3656 = vmin.xlane.f32.xlu1 %v3655_v32  ;;  %v1783_v8 = vsub.f32 %v9434_v6, %v9433_v26  ;;  %v1800_v26 = vmul.f32 %v1784_v24, %v1784_v24 }
 0xaf9   : > { %v8737_v52 = vpop.xlane.xlu0 %3668  ;;  %v1812_v3 = vadd.f32 %v1811_v55, %v1797_v38  ;;  %v4122_v55 = vld [vmem:[%s9150_s8] sm:$0xff] }
 0xafa   : > { %vm3670_vm4 = vcmp.eq.f32.partialorder %v8525_v63, %v8737_v52  ;;  %v1799_v14 = vmul.f32 %v1783_v8, %v1783_v8 }
 0xafb   : > { %v3671_v47 = vsel %vm3670_vm4, %v3666_v46, inf  ;;  %v1813_v9 = vadd.f32 %v1812_v3, %v1798_v51  ;;  %v4124_v51 = vld [vmem:[%s9150_s8 + $0x10] sm:$0xff]  ;;  %v4126_v3 = vld [vmem:[%s9150_s8 + $0x20] sm:$0xff] }
 0xafc   : > { %3672 = vmin.xlane.f32.xlu0 %v3671_v47  ;;  %v3712_v47 = vand.u32 65535, %v8547_v11  ;;  %v3483_v11 = vcvt.f32.s32 %v8651_v45  ;;  %v4125_v45 = vld [vmem:[%s9150_s8 + $0x18] sm:$0xff] }
 0xafd   : > { %v8746_v32 = vpop.xlane.xlu1 %3684  ;;  %v1814_v20 = vadd.f32 %v1813_v9, %v1799_v14  ;;  %v4127_v14 = vld [vmem:[%s9150_s8 + $0x28] sm:$0xff] }
 0xafe   : > { %vm3686_vm13 = vcmp.eq.f32.partialorder %v8535_v22, %v8746_v32  ;;  %v3714_v22 = vcvt.s32.f32 %v3712_v47  ;;  %v5841_v9 = vpack.c.bf16 %v4127_v14, %v4126_v3  ;;  %v4133_v3 = vld [vmem:[%s9150_s8 + $0x58] sm:$0xff] }
 0xaff   : > { %v3687_v63 = vsel %vm3686_vm13, %v3682_v0, inf  ;;  %v1815_v16 = vadd.f32 %v1814_v20, %v1800_v26  ;;  %v3484_v0 = vshll.u32 %v3483_v11, 16 }
 0xb00   : > { %3688 = vmin.xlane.f32.xlu1 %v3687_v63  ;;  %v5837_v63 = vpack.c.bf16 %v4125_v45, %v4124_v51 }
 0xb01   : > { %v8753_v46 = vpop.xlane.xlu0 %3700 }
 0xb02   : > { %vm3702_vm1 = vcmp.eq.f32.partialorder %v8545_v28, %v8753_v46  ;;  %v3499_v28 = vcvt.f32.s32 %v8656_v18  ;;  %v3515_v18 = vcvt.f32.s32 %v8661_v1 }
 0xb03   : > { %v3703_v31 = vsel %vm3702_vm1, %v3698_v15, inf }
 0xb04   : > { %3704 = vmin.xlane.f32.xlu0 %v3703_v31  ;;  %v3500_v15 = vshll.u32 %v3499_v28, 16  ;;  %v3516_v26 = vshll.u32 %v3515_v18, 16  ;;  %v3531_v31 = vcvt.f32.s32 %v8666_v56 }
 0xb05   : > { %v8758_v57 = vpop.xlane.xlu1 %3716 }
 0xb06   : > { %vm3718_vm3 = vcmp.eq.f32.partialorder %v8551_v39, %v8758_v57  ;;  %v4123_v39 = vld [vmem:[%s9150_s8 + $0x8] sm:$0xff]  ;;  %v3532_v28 = vshll.u32 %v3531_v31, 16 }
 0xb07   : > { %v3719_v38 = vsel %vm3718_vm3, %v3714_v22, inf  ;;  %v5833_v58 = vpack.c.bf16 %v4123_v39, %v4122_v55  ;;  %v4131_v39 = vld [vmem:[%s9150_s8 + $0x48] sm:$0xff] }
 0xb08   : > { %1816 = vadd.xlane.f32.xlu0 %v1815_v16  ;;  %3720 = vmin.xlane.f32.xlu1 %v3719_v38  ;;  %v4128_v16 = vld [vmem:[%s9150_s8 + $0x30] sm:$0xff]  ;;  %v4129_v38 = vld [vmem:[%s9150_s8 + $0x38] sm:$0xff] }
 0xb09   : > { %5834 = vmatprep.subr.bf16.mxu0 %v5833_v58 }
 0xb0a   : > { %5836 = vmatpush3.bf16.msra.mxu0 %v5833_v58 }
 0xb0b   : > { %5838 = vmatprep.subr.bf16.mxu0 %v5837_v63 }
 0xb0c   : > { %2930 = vadd.xlane.f32.xlu1 %v8255_v62 }
 0xb0e   : > { %5840 = vmatpush3.bf16.msra.mxu0 %v5837_v63 }
 0xb0f   : > { %5842 = vmatprep.subr.bf16.mxu0 %v5841_v9 }
 0xb12   : > { %5844 = vmatpush3.bf16.msra.mxu0 %v5841_v9 }
 0xb59   : > { %v3481_v8 = vpop.xlane.xlu0 %3480 }
 0xb5a   : > { %v3482_v10 = vcvt.f32.s32 %v3481_v8 }
 0xb5c   : > { %v3485_v62 = vadd.s32 %v3484_v0, %v3482_v10  ;;  %v5845_v0 = vpack.c.bf16 %v4129_v38, %v4128_v16  ;;  %v3547_v10 = vcvt.f32.s32 %v8671_v5 }
 0xb5d   : > { %v3497_v24 = vpop.xlane.xlu1 %3496 }
 0xb5e   : > { %vm3726_vm14 = vcmp.eq.s32.totalorder %v6608_v29, %v3485_v62  ;;  %v3498_v47 = vcvt.f32.s32 %v3497_v24  ;;  %vm3727_vm10 = vcmp.eq.s32.totalorder %v6611_v34, %v3485_v62  ;;  %v4045_v20 = vrot.slane %v3485_v62, %v7132_v25  ;;  %5846 = vmatprep.subr.bf16.mxu0 %v5845_v0 }
 0xb5f   : > { %4943 = vmatprep.mubr.msk.f32.mxu1 %vm3727_vm10, %v9349_v40  ;;  %v3548_v18 = vshll.u32 %v3547_v10, 16  ;;  %v3563_v24 = vcvt.f32.s32 %v8676_v41  ;;  %5848 = vmatpush3.bf16.msra.mxu0 %v5845_v0 }
 0xb60   : > { %v3501_v1 = vadd.s32 %v3500_v15, %v3498_v47  ;;  %4944 = vmatmul.mubr.msk.f32.vlgmr.msra.gmra.mrb[80].mxu1 %vm3726_vm14, %v9349_v40 }
 0xb61   : > { %v3513_v22 = vpop.xlane.xlu0 %3512  ;;  %v3564_v9 = vshll.u32 %v3563_v24, 16 }
 0xb62   : > { %v4049_v11 = vrot.slane %v3501_v1, %v7139_v44  ;;  %v3514_v8 = vcvt.f32.s32 %v3513_v22  ;;  %vm3729_vm4 = vcmp.eq.s32.totalorder %v6611_v34, %v3501_v1  ;;  %vm3728_vm13 = vcmp.eq.s32.totalorder %v6608_v29, %v3501_v1  ;;  %v4130_v44 = vld [vmem:[%s9150_s8 + $0x40] sm:$0xff] }
 0xb63   : > { %4945 = vmatprep.mubr.msk.f32.mxu1 %vm3729_vm4, %v9349_v40  ;;  %v5849_v45 = vpack.c.bf16 %v4131_v39, %v4130_v44 }
 0xb64   : > { %v4050_v25 = vsel %vm1869_vm2, %v4049_v11, %v4045_v20  ;;  %v3517_v56 = vadd.s32 %v3516_v26, %v3514_v8  ;;  %4946 = vmatmul.mubr.msk.f32.gmra.mrb[82].mxu1 %vm3728_vm13, %v9349_v40  ;;  %v3579_v26 = vcvt.f32.s32 %v8681_v7  ;;  %v3595_v7 = vcvt.f32.s32 %v8692_v60 }
 0xb65   : > { %v3529_v55 = vpop.xlane.xlu1 %3528  ;;  %5850 = vmatprep.subr.bf16.mxu0 %v5849_v45 }
 0xb66   : > { %v4054_v51 = vrot.slane %v3517_v56, %v7149_v33  ;;  %v3530_v62 = vcvt.f32.s32 %v3529_v55  ;;  %vm3731_vm2 = vcmp.eq.s32.totalorder %v6611_v34, %v3517_v56  ;;  %vm3730_vm1 = vcmp.eq.s32.totalorder %v6608_v29, %v3517_v56  ;;  %v4132_v33 = vld [vmem:[%s9150_s8 + $0x50] sm:$0xff]  ;;  %5852 = vmatpush3.bf16.msra.mxu0 %v5849_v45 }
 0xb67   : > { %4947 = vmatprep.mubr.msk.f32.mxu1 %vm3731_vm2, %v9349_v40  ;;  %v5853_v1 = vpack.c.bf16 %v4133_v3, %v4132_v33  ;;  %v3580_v38 = vshll.u32 %v3579_v26, 16  ;;  %v3596_v0 = vshll.u32 %v3595_v7, 16 }
 0xb68   : > { %v4055_v5 = vsel %vm1876_vm5, %v4054_v51, %v4050_v25  ;;  %v3533_v58 = vadd.s32 %v3532_v28, %v3530_v62  ;;  %4948 = vmatmul.mubr.msk.f32.gmra.mrb[84].mxu1 %vm3730_vm1, %v9349_v40  ;;  %v3611_v28 = vcvt.f32.s32 %v8701_v12  ;;  %v3627_v51 = vcvt.f32.s32 %v8710_v37 }
 0xb69   : > { %v3545_v63 = vpop.xlane.xlu0 %3544  ;;  %5854 = vmatprep.subr.bf16.mxu0 %v5853_v1 }
 0xb6a   : > { %v4059_v14 = vrot.slane %v3533_v58, %v7152_v30  ;;  %v3546_v15 = vcvt.f32.s32 %v3545_v63  ;;  %vm3733_vm5 = vcmp.eq.s32.totalorder %v6611_v34, %v3533_v58  ;;  %vm3732_vm3 = vcmp.eq.s32.totalorder %v6608_v29, %v3533_v58  ;;  %5856 = vmatpush3.bf16.msra.mxu0 %v5853_v1 }
 0xb6b   : > { %4949 = vmatprep.mubr.msk.f32.mxu1 %vm3733_vm5, %v9349_v40  ;;  %v3612_v39 = vshll.u32 %v3611_v28, 16  ;;  %v3628_v45 = vshll.u32 %v3627_v51, 16  ;;  %vm9437_vm5 = vcmask 589312   ;;  %v3723_v28 = vcvt.f32.s32 %v8758_v57 }
 0xb6c   : > { %v4060_v41 = vsel %vm1883_vm6, %v4059_v14, %v4055_v5  ;;  %v3549_v47 = vadd.s32 %v3548_v18, %v3546_v15  ;;  %4950 = vmatmul.mubr.msk.f32.gmra.mrb[86].mxu1 %vm3732_vm3, %v9349_v40  ;;  %v3643_v18 = vcvt.f32.s32 %v8719_v4  ;;  %v3659_v14 = vcvt.f32.s32 %v8728_v61 }
 0xb6d   : > { %v3561_v31 = vpop.xlane.xlu1 %3560 }
 0xb6e   : > { %v4064_v30 = vrot.slane %v3549_v47, %v7158_v19  ;;  %v3562_v20 = vcvt.f32.s32 %v3561_v31  ;;  %vm3735_vm14 = vcmp.eq.s32.totalorder %v6611_v34, %v3549_v47  ;;  %vm3734_vm10 = vcmp.eq.s32.totalorder %v6608_v29, %v3549_v47 }
 0xb6f   : > { %4951 = vmatprep.mubr.msk.f32.mxu1 %vm3735_vm14, %v9349_v40  ;;  %v3644_v3 = vshll.u32 %v3643_v18, 16  ;;  %vm9438_vm14 = vcmask 654912   ;;  %v3660_v1 = vshll.u32 %v3659_v14, 16 }
 0xb70   : > { %v4065_v22 = vsel %vm1890_vm7, %v4064_v30, %v4060_v41  ;;  %v3565_v16 = vadd.s32 %v3564_v9, %v3562_v20  ;;  %4952 = vmatmul.mubr.msk.f32.gmra.mrb[88].mxu1 %vm3734_vm10, %v9349_v40  ;;  %v3675_v9 = vcvt.f32.s32 %v8737_v52 }
 0xb71   : > { %v3577_v11 = vpop.xlane.xlu0 %3576 }
 0xb72   : > { %v4069_v19 = vrot.slane %v3565_v16, %v7166_v48  ;;  %v3578_v8 = vcvt.f32.s32 %v3577_v11  ;;  %vm3737_vm6 = vcmp.eq.s32.totalorder %v6611_v34, %v3565_v16  ;;  %vm3736_vm4 = vcmp.eq.s32.totalorder %v6608_v29, %v3565_v16 }
 0xb73   : > { %4953 = vmatprep.mubr.msk.f32.mxu1 %vm3737_vm6, %v9349_v40  ;;  %v3676_v20 = vshll.u32 %v3675_v9, 16  ;;  %v4307_v9 = vld [vmem:[%s9152_s10 + $0x8] sm:$0xff] }
 0xb74   : > { %v4070_v25 = vsel %vm1897_vm8, %v4069_v19, %v4065_v22  ;;  %v3581_v56 = vadd.s32 %v3580_v38, %v3578_v8  ;;  %4954 = vmatmul.mubr.msk.f32.gmra.mrb[90].mxu1 %vm3736_vm4, %v9349_v40  ;;  %vm9439_vm4 = vcmask 720512   ;;  %v3691_v22 = vcvt.f32.s32 %v8746_v32 }
 0xb75   : > { %v3593_v60 = vpop.xlane.xlu1 %3592  ;;  %v3707_v19 = vcvt.f32.s32 %v8753_v46 }
 0xb76   : > { %v4074_v10 = vrot.slane %v3581_v56, %v7169_v53  ;;  %v3594_v48 = vcvt.f32.s32 %v3593_v60  ;;  %vm3739_vm7 = vcmp.eq.s32.totalorder %v6611_v34, %v3581_v56  ;;  %vm3738_vm13 = vcmp.eq.s32.totalorder %v6608_v29, %v3581_v56 }
 0xb77   : > { %4955 = vmatprep.mubr.msk.f32.mxu1 %vm3739_vm7, %v9349_v40  ;;  %v3692_v11 = vshll.u32 %v3691_v22, 16 }
 0xb78   : > { %v4075_v55 = vsel %vm1904_vm11, %v4074_v10, %v4070_v25  ;;  %v3597_v44 = vadd.s32 %v3596_v0, %v3594_v48  ;;  %4956 = vmatmul.mubr.msk.f32.gmra.mrb[92].mxu1 %vm3738_vm13, %v9349_v40  ;;  %v3708_v0 = vshll.u32 %v3707_v19, 16  ;;  %v9444_v19 = vld [vmem:[#allocation64_spill] sm:$0xff] }
 0xb79   : > { %v3609_v62 = vpop.xlane.xlu0 %3608 }
 0xb7a   : > { %v4079_v12 = vrot.slane %v3597_v44, %v7178_v23  ;;  %v3610_v5 = vcvt.f32.s32 %v3609_v62  ;;  %vm3741_vm8 = vcmp.eq.s32.totalorder %v6611_v34, %v3597_v44  ;;  %vm3740_vm2 = vcmp.eq.s32.totalorder %v6608_v29, %v3597_v44 }
 0xb7b   : > { %4957 = vmatprep.mubr.msk.f32.mxu1 %vm3741_vm8, %v9349_v40 }
 0xb7c   : > { %v4080_v53 = vsel %vm1911_vm12, %v4079_v12, %v4075_v55  ;;  %v3613_v58 = vadd.s32 %v3612_v39, %v3610_v5  ;;  %4958 = vmatmul.mubr.msk.f32.gmra.mrb[94].mxu1 %vm3740_vm2, %v9349_v40  ;;  %v3724_v39 = vshll.u32 %v3723_v28, 16 }
 0xb7d   : > { %v3625_v24 = vpop.xlane.xlu1 %3624 }
 0xb7e   : > { %v4084_v37 = vrot.slane %v3613_v58, %v7185_v50  ;;  %v3626_v63 = vcvt.f32.s32 %v3625_v24  ;;  %vm3743_vm11 = vcmp.eq.s32.totalorder %v6611_v34, %v3613_v58  ;;  %vm3742_vm1 = vcmp.eq.s32.totalorder %v6608_v29, %v3613_v58  ;;  %v9440_v58 = vld [vmem:[#allocation32_spill] sm:$0xff] }
 0xb7f   : > { %4959 = vmatprep.mubr.msk.f32.mxu1 %vm3743_vm11, %v9349_v40 }
 0xb80   : > { %v4085_v23 = vsel %vm9437_vm5, %v4084_v37, %v4080_v53  ;;  %v3629_v33 = vadd.s32 %v3628_v45, %v3626_v63  ;;  %4960 = vmatmul.mubr.msk.f32.gmra.mrb[96].mxu1 %vm3742_vm1, %v9349_v40  ;;  %vm9441_vm5 = vcmask 982912  }
 0xb81   : > { %v3641_v15 = vpop.xlane.xlu0 %3640 }
 0xb82   : > { %v4089_v4 = vrot.slane %v3629_v33, %v7193_v13  ;;  %v3642_v41 = vcvt.f32.s32 %v3641_v15  ;;  %vm3745_vm12 = vcmp.eq.s32.totalorder %v6611_v34, %v3629_v33  ;;  %vm3744_vm3 = vcmp.eq.s32.totalorder %v6608_v29, %v3629_v33 }
 0xb83   : > { %4961 = vmatprep.mubr.msk.f32.mxu1 %vm3745_vm12, %v9349_v40 }
 0xb84   : > { %v4090_v50 = vsel %vm9438_vm14, %v4089_v4, %v4085_v23  ;;  %v3645_v47 = vadd.s32 %v3644_v3, %v3642_v41  ;;  %4962 = vmatmul.mubr.msk.f32.gmra.mrb[98].mxu1 %vm3744_vm3, %v9349_v40  ;;  %vm9442_vm3 = vcmask 1048512   ;;  %v4134_v4 = vld [vmem:[%s9150_s8 + $0x60] sm:$0xff]  ;;  %v4136_v41 = vld [vmem:[%s9150_s8 + $0x70] sm:$0xff] }
 0xb85   : > { %v3657_v26 = vpop.xlane.xlu1 %3656 }
 0xb86   : > { %v4094_v61 = vrot.slane %v3645_v47, %v7204_v42  ;;  %v3658_v31 = vcvt.f32.s32 %v3657_v26  ;;  %vm3747_vm10 = vcmp.eq.s32.totalorder %v6611_v34, %v3645_v47  ;;  %vm3746_vm6 = vcmp.eq.s32.totalorder %v6608_v29, %v3645_v47  ;;  %v4308_v26 = vld [vmem:[%s9152_s10 + $0x10] sm:$0xff] }
 0xb87   : > { %4963 = vmatprep.mubr.msk.f32.mxu1 %vm3747_vm10, %v9349_v40 }
 0xb88   : > { %v4095_v13 = vsel %vm9439_vm4, %v4094_v61, %v4090_v50  ;;  %v3661_v30 = vadd.s32 %v3660_v1, %v3658_v31  ;;  %4964 = vmatmul.mubr.msk.f32.gmra.mrb[100].mxu1 %vm3746_vm6, %v9349_v40  ;;  %v4137_v50 = vld [vmem:[%s9150_s8 + $0x78] sm:$0xff]  ;;  %v4306_v1 = vld [vmem:[%s9152_s10] sm:$0xff] }
 0xb89   : > { %v3673_v16 = vpop.xlane.xlu0 %3672  ;;  %v5861_v47 = vpack.c.bf16 %v4137_v50, %v4136_v41  ;;  %v5865_v61 = vpack.c.bf16 %v4307_v9, %v4306_v1  ;;  %v4309_v31 = vld [vmem:[%s9152_s10 + $0x18] sm:$0xff]  ;;  %v9456_v1 = vld [vmem:[#allocation69_spill] sm:$0xff] }
 0xb8a   : > { %v4099_v52 = vrot.slane %v3661_v30, %v7226_v35  ;;  %v3674_v38 = vcvt.f32.s32 %v3673_v16  ;;  %vm3749_vm7 = vcmp.eq.s32.totalorder %v6611_v34, %v3661_v30  ;;  %vm3748_vm13 = vcmp.eq.s32.totalorder %v6608_v29, %v3661_v30  ;;  %v4310_v30 = vld [vmem:[%s9152_s10 + $0x20] sm:$0xff]  ;;  %v4312_v16 = vld [vmem:[%s9152_s10 + $0x30] sm:$0xff] }
 0xb8b   : > { %4965 = vmatprep.mubr.msk.f32.mxu1 %vm3749_vm7, %v9349_v40  ;;  %5866 = vmatprep.subr.bf16.mxu1 %v5865_v61 }
 0xb8c   : > { %v4100_v42 = vsel %vm1939_vm15, %v4099_v52, %v4095_v13  ;;  %v3677_v7 = vadd.s32 %v3676_v20, %v3674_v38  ;;  %4966 = vmatmul.mubr.msk.f32.gmra.mrb[102].mxu1 %vm3748_vm13, %v9349_v40  ;;  %v5869_v13 = vpack.c.bf16 %v4309_v31, %v4308_v26  ;;  %v4311_v20 = vld [vmem:[%s9152_s10 + $0x28] sm:$0xff]  ;;  %v4313_v52 = vld [vmem:[%s9152_s10 + $0x38] sm:$0xff]  ;;  %v9457_v31 = vld [vmem:[#allocation41_spill] sm:$0xff] }
 0xb8d   : > { %v3689_v8 = vpop.xlane.xlu1 %3688  ;;  %5868 = vmatpush3.bf16.msra.mxu1 %v5865_v61  ;;  %v5873_v22 = vpack.c.bf16 %v4311_v20, %v4310_v30  ;;  %v5877_v38 = vpack.c.bf16 %v4313_v52, %v4312_v16  ;;  %v9458_v52 = vld [vmem:[#allocation70_spill] sm:$0xff] }
 0xb8e   : > { %v4104_v32 = vrot.slane %v3677_v7, %v7234_v27  ;;  %v3690_v25 = vcvt.f32.s32 %v3689_v8  ;;  %vm3751_vm8 = vcmp.eq.s32.totalorder %v6611_v34, %v3677_v7  ;;  %vm3750_vm2 = vcmp.eq.s32.totalorder %v6608_v29, %v3677_v7  ;;  %5870 = vmatprep.subr.bf16.mxu1 %v5869_v13 }
 0xb8f   : > { %4967 = vmatprep.mubr.msk.f32.mxu1 %vm3751_vm8, %v9349_v40 }
 0xb90   : > { %v4105_v35 = vsel %vm1946_vm0, %v4104_v32, %v4100_v42  ;;  %v3693_v56 = vadd.s32 %v3692_v11, %v3690_v25  ;;  %4968 = vmatmul.mubr.msk.f32.gmra.mrb[104].mxu1 %vm3750_vm2, %v9349_v40  ;;  %v9443_v11 = vld [vmem:[#allocation33_spill] sm:$0xff] }
 0xb91   : > { %v3705_v60 = vpop.xlane.xlu0 %3704  ;;  %5872 = vmatpush3.bf16.msra.mxu1 %v5869_v13  ;;  %v2958_v8 = vadd.f32 %v9444_v19, %v9443_v11  ;;  %v9459_v11 = vld [vmem:[#allocation43_spill] sm:$0xff] }
 0xb92   : > { %v4109_v46 = vrot.slane %v3693_v56, %v7241_v36  ;;  %v3706_v10 = vcvt.f32.s32 %v3705_v60  ;;  %vm3753_vm15 = vcmp.eq.s32.totalorder %v6611_v34, %v3693_v56  ;;  %vm3752_vm11 = vcmp.eq.s32.totalorder %v6608_v29, %v3693_v56  ;;  %5874 = vmatprep.subr.bf16.mxu1 %v5873_v22  ;;  %v9446_v60 = vld [vmem:[#allocation34_spill] sm:$0xff] }
 0xb93   : > { %4969 = vmatprep.mubr.msk.f32.mxu1 %vm3753_vm15, %v9349_v40 }
 0xb94   : > { %v4110_v27 = vsel %vm1953_vm9, %v4109_v46, %v4105_v35  ;;  %v3709_v48 = vadd.s32 %v3708_v0, %v3706_v10  ;;  %4970 = vmatmul.mubr.msk.f32.gmra.mrb[106].mxu1 %vm3752_vm11, %v9349_v40  ;;  %v9445_v0 = vld [vmem:[#allocation65_spill] sm:$0xff]  ;;  %v9447_v46 = vld [vmem:[#allocation66_spill] sm:$0xff] }
 0xb95   : > { %v1817_v55 = vpop.xlane.xlu0 %1816  ;;  %v3721_v44 = vpop.xlane.xlu1 %3720  ;;  %5876 = vmatpush3.bf16.msra.mxu1 %v5873_v22  ;;  %v2959_v10 = vadd.f32 %v9447_v46, %v9446_v60 }
 0xb96   : > { %v1818_v51 = vrot.slane %v1817_v55, 4  ;;  %v3722_v57 = vcvt.f32.s32 %v3721_v44  ;;  %vm3755_vm0 = vcmp.eq.s32.totalorder %v6611_v34, %v3709_v48  ;;  %v4114_v36 = vrot.slane %v3709_v48, %v7251_v21  ;;  %5878 = vmatprep.subr.bf16.mxu1 %v5877_v38 }
 0xb97   : > { %4971 = vmatprep.mubr.msk.f32.mxu1 %vm3755_vm0, %v9349_v40  ;;  %vm3754_vm1 = vcmp.eq.s32.totalorder %v6608_v29, %v3709_v48  ;;  %v9448_v48 = vld [vmem:[#allocation35_spill] sm:$0xff] }
 0xb98   : > { %v1819_v62 = vadd.f32 %v1818_v51, %v1817_v55  ;;  %v3725_v12 = vadd.s32 %v3724_v39, %v3722_v57  ;;  %4972 = vmatmul.mubr.msk.f32.gmra.mrb[108].mxu1 %vm3754_vm1, %v9349_v40  ;;  %v4115_v24 = vsel %vm9441_vm5, %v4114_v36, %v4110_v27 }
 0xb99   : > { %v2931_v5 = vpop.xlane.xlu1 %2930  ;;  %5880 = vmatpush3.bf16.msra.mxu1 %v5877_v38  ;;  %v2963_v38 = vadd.f32 %v9458_v52, %v9416_v2 }
 0xb9a   : > { %v1820_v53 = vrot.slane %v1819_v62, 2  ;;  %v4119_v45 = vrot.slane %v3725_v12, %v9440_v58  ;;  %v2932_v18 = vrot.slane %v2931_v5, 4  ;;  %vm3757_vm9 = vcmp.eq.s32.totalorder %v6611_v34, %v3725_v12 }
 0xb9b   : > { %4973 = vmatprep.mubr.msk.f32.mxu1 %vm3757_vm9, %v9349_v40  ;;  %vm3756_vm12 = vcmp.eq.s32.totalorder %v6608_v29, %v3725_v12  ;;  %v4135_v29 = vld [vmem:[%s9150_s8 + $0x68] sm:$0xff]  ;;  %v9450_v12 = vld [vmem:[#allocation67_spill] sm:$0xff] }
 0xb9c   : > { %v2933_v21 = vadd.f32 %v2932_v18, %v2931_v5  ;;  %4974 = vmatmul.mubr.msk.f32.gmra.mrb[110].mxu1 %vm3756_vm12, %v9349_v40  ;;  %v1821_v37 = vadd.f32 %v1820_v53, %v1819_v62  ;;  %v4120_v63 = vsel %vm9442_vm3, %v4119_v45, %v4115_v24  ;;  %v5857_v40 = vpack.c.bf16 %v4135_v29, %v4134_v4  ;;  %v9449_v62 = vld [vmem:[#allocation36_spill] sm:$0xff]  ;;  %v9451_v45 = vld [vmem:[#allocation37_spill] sm:$0xff] }
 0xb9d   : > { %4121 = vst [vmem:[%s7284_s21 + $0x2] sm:$0x1] %v4120_v63  ;;  %v2960_v5 = vadd.f32 %v9450_v12, %v9449_v62  ;;  %v9464_v62 = vld [vmem:[#allocation47_spill] sm:$0xff] }
 0xb9e   : > { %v2934_v23 = vrot.slane %v2933_v21, 2  ;;  %v1822_v33 = vrot.slane %v1821_v37, 1  ;;  %5858 = vmatprep.subr.bf16.mxu0 %v5857_v40 }
 0xb9f   : > { %5860 = vmatpush3.bf16.msra.mxu0 %v5857_v40 }
 0xba0   : > { %v2935_v3 = vadd.f32 %v2934_v23, %v2933_v21  ;;  %v1823_v14 = vadd.f32 %v1822_v33, %v1821_v37  ;;  %5862 = vmatprep.subr.bf16.mxu0 %v5861_v47  ;;  %v9452_v23 = vld [vmem:[#allocation38_spill] sm:$0xff]  ;;  %v9453_v33 = vld [vmem:[#allocation68_spill] sm:$0xff] }
 0xba2   : > { %5897 = vpush %v1823_v14  ;;  %v2936_v15 = vrot.slane %v2935_v3, 1 }
 0xba3   : > { %5864 = vmatpush3.bf16.msra.mxu0 %v5861_v47  ;;  %v9455_v47 = vld [vmem:[#allocation40_spill] sm:$0xff] }
 0xba4   : > { %v2937_v34 = vadd.f32 %v2936_v15, %v2935_v3  ;;  %v2961_v3 = vadd.f32 %v9453_v33, %v9452_v23  ;;  %v2962_v9 = vadd.f32 %v9456_v1, %v9455_v47  ;;  %v9467_v23 = vld [vmem:[#allocation49_spill] sm:$0xff] }
 0xba6   : > { %5899 = vpush %v2937_v34  ;;  %v9454_v34 = vld [vmem:[#allocation39_spill] sm:$0xff] }
 0xbd3   : > { %s5898_s25 = spop %5897 }
 0xbd4   : > { %s1825_s28 = smul.f32 2.0, %s5898_s25 }
 0xbd7   : > { %s5900_s16 = spop %5899 }
 0xbd8   : > { %s2939_s27 = smul.f32 2.0, %s5900_s16 }
 0xc33   : > { %v5241_v42 = vpop.f32.mrb[80].mxu1 }
 0xc34   : > { %v5242_v7 = vpop.f32.mrb[81].mxu1 }
 0xc35   : > { %v5243_v32 = vadd.f32 %v5242_v7, %v5241_v42 }
 0xc37   : > { %v4026_v25 = vadd.f32 %v5243_v32, %v2958_v8  ;;  %v5244_v35 = vpop.f32.mrb[82].mxu1  ;;  %v3967_v28 = vsub.f32 %v5243_v32, %v9445_v0  ;;  %v9461_v0 = vld [vmem:[#allocation71_spill] sm:$0xff] }
 0xc38   : > { %v5245_v56 = vpop.f32.mrb[83].mxu1 }
 0xc39   : > { %v5246_v27 = vadd.f32 %v5245_v56, %v5244_v35  ;;  %5497 = vmatprep.mubr.f32.mxu0 %v4026_v25  ;;  %v3983_v57 = vmul.f32 %v3967_v28, %v3967_v28  ;;  %v9460_v56 = vld [vmem:[#allocation44_spill] sm:$0xff] }
 0xc3a   : > { %v2964_v28 = vadd.f32 %v9461_v0, %v9460_v56 }
 0xc3b   : > { %v3968_v55 = vsub.f32 %v5246_v27, %v9448_v48  ;;  %v4027_v44 = vadd.f32 %v5246_v27, %v2959_v10  ;;  %v5247_v39 = vpop.f32.mrb[84].mxu1  ;;  %v9462_v10 = vld [vmem:[#allocation45_spill] sm:$0xff] }
 0xc3c   : > { %v5248_v51 = vpop.f32.mrb[85].mxu1 }
 0xc3d   : > { %v3984_v36 = vmul.f32 %v3968_v55, %v3968_v55  ;;  %v5249_v53 = vadd.f32 %v5248_v51, %v5247_v39  ;;  %5498 = vmatmul.mubr.f32.vlgmr.msra.gmra.mrb[112].mxu0 %v4027_v44  ;;  %v9463_v39 = vld [vmem:[#allocation72_spill] sm:$0xff] }
 0xc3e   : > { %v2965_v51 = vadd.f32 %v9463_v39, %v9420_v43 }
 0xc3f   : > { %v3999_v58 = vadd.f32 %v3984_v36, %v3983_v57  ;;  %v3969_v18 = vsub.f32 %v5249_v53, %v9451_v45  ;;  %v4028_v24 = vadd.f32 %v5249_v53, %v2960_v5  ;;  %v5250_v21 = vpop.f32.mrb[86].mxu1 }
 0xc40   : > { %v5251_v37 = vpop.f32.mrb[87].mxu1 }
 0xc41   : > { %v3985_v63 = vmul.f32 %v3969_v18, %v3969_v18  ;;  %v5252_v14 = vadd.f32 %v5251_v37, %v5250_v21  ;;  %5500 = vmatprep.mubr.f32.mxu0 %v4028_v24  ;;  %v9465_v18 = vld [vmem:[#allocation48_spill] sm:$0xff]  ;;  %v9466_v24 = vld [vmem:[#allocation73_spill] sm:$0xff] }
 0xc42   : > { %v2966_v21 = vadd.f32 %v9466_v24, %v9465_v18 }
 0xc43   : > { %v4000_v15 = vadd.f32 %v3999_v58, %v3985_v63  ;;  %v3970_v4 = vsub.f32 %v5252_v14, %v9454_v34  ;;  %v4029_v29 = vadd.f32 %v5252_v14, %v2961_v3  ;;  %v5253_v40 = vpop.f32.mrb[88].mxu1  ;;  %v9468_v34 = vld [vmem:[#allocation74_spill] sm:$0xff] }
 0xc44   : > { %v5254_v41 = vpop.f32.mrb[89].mxu1 }
 0xc45   : > { %v3986_v50 = vmul.f32 %v3970_v4, %v3970_v4  ;;  %v5255_v26 = vadd.f32 %v5254_v41, %v5253_v40  ;;  %5501 = vmatmul.mubr.f32.gmra.mrb[114].mxu0 %v4029_v29  ;;  %v2967_v4 = vadd.f32 %v9468_v34, %v9424_v49  ;;  %v9469_v41 = vld [vmem:[#allocation51_spill] sm:$0xff]  ;;  %v9482_v34 = vld [vmem:[#allocation80_spill] sm:$0xff] }
 0xc47   : > { %v4001_v61 = vadd.f32 %v4000_v15, %v3986_v50  ;;  %v3971_v13 = vsub.f32 %v5255_v26, %v9457_v31  ;;  %v4030_v30 = vadd.f32 %v5255_v26, %v2962_v9  ;;  %v5256_v20 = vpop.f32.mrb[90].mxu1  ;;  %v9471_v31 = vld [vmem:[#allocation75_spill] sm:$0xff] }
 0xc48   : > { %v5257_v22 = vpop.f32.mrb[91].mxu1 }
 0xc49   : > { %v3987_v16 = vmul.f32 %v3971_v13, %v3971_v13  ;;  %v5258_v42 = vadd.f32 %v5257_v22, %v5256_v20  ;;  %5503 = vmatprep.mubr.f32.mxu0 %v4030_v30  ;;  %v9472_v22 = vld [vmem:[#allocation53_spill] sm:$0xff] }
 0xc4b   : > { %v4002_v7 = vadd.f32 %v4001_v61, %v3987_v16  ;;  %v3972_v19 = vsub.f32 %v5258_v42, %v9459_v11  ;;  %v4031_v8 = vadd.f32 %v5258_v42, %v2963_v38  ;;  %v5259_v32 = vpop.f32.mrb[92].mxu1  ;;  %v9470_v61 = vld [vmem:[#allocation52_spill] sm:$0xff] }
 0xc4c   : > { %v5260_v25 = vpop.f32.mrb[93].mxu1  ;;  %v2968_v13 = vadd.f32 %v9471_v31, %v9470_v61  ;;  %v4317_v31 = vld [vmem:[%s9152_s10 + $0x58] sm:$0xff] }
 0xc4d   : > { %v3988_v35 = vmul.f32 %v3972_v19, %v3972_v19  ;;  %v5261_v60 = vadd.f32 %v5260_v25, %v5259_v32  ;;  %5504 = vmatmul.mubr.f32.gmra.mrb[116].mxu0 %v4031_v8  ;;  %v9474_v32 = vld [vmem:[#allocation55_spill] sm:$0xff] }
 0xc4f   : > { %v4003_v46 = vadd.f32 %v4002_v7, %v3988_v35  ;;  %v3973_v27 = vsub.f32 %v5261_v60, %v9462_v10  ;;  %v4032_v48 = vadd.f32 %v5261_v60, %v2964_v28  ;;  %v5262_v55 = vpop.f32.mrb[94].mxu1  ;;  %v9473_v7 = vld [vmem:[#allocation76_spill] sm:$0xff] }
 0xc50   : > { %v5263_v2 = vpop.f32.mrb[95].mxu1  ;;  %v2969_v11 = vadd.f32 %v9473_v7, %v9428_v59  ;;  %v9475_v60 = vld [vmem:[#allocation56_spill] sm:$0xff] }
 0xc51   : > { %v3989_v44 = vmul.f32 %v3973_v27, %v3973_v27  ;;  %v5264_v57 = vadd.f32 %v5263_v2, %v5262_v55  ;;  %5506 = vmatprep.mubr.f32.mxu0 %v4032_v48  ;;  %v9477_v55 = vld [vmem:[#allocation57_spill] sm:$0xff] }
 0xc53   : > { %v4004_v36 = vadd.f32 %v4003_v46, %v3989_v44  ;;  %v3974_v12 = vsub.f32 %v5264_v57, %v9464_v62  ;;  %v4033_v5 = vadd.f32 %v5264_v57, %v2965_v51  ;;  %v5265_v53 = vpop.f32.mrb[96].mxu1  ;;  %v9476_v46 = vld [vmem:[#allocation77_spill] sm:$0xff]  ;;  %v9478_v57 = vld [vmem:[#allocation78_spill] sm:$0xff] }
 0xc54   : > { %v5266_v58 = vpop.f32.mrb[97].mxu1  ;;  %v2970_v10 = vadd.f32 %v9476_v46, %v9475_v60 }
 0xc55   : > { %v3990_v45 = vmul.f32 %v3974_v12, %v3974_v12  ;;  %v5267_v37 = vadd.f32 %v5266_v58, %v5265_v53  ;;  %5507 = vmatmul.mubr.f32.gmra.mrb[118].mxu0 %v4033_v5  ;;  %v9479_v5 = vld [vmem:[#allocation59_spill] sm:$0xff] }
 0xc57   : > { %v4005_v63 = vadd.f32 %v4004_v36, %v3990_v45  ;;  %v3975_v33 = vsub.f32 %v5267_v37, %v9467_v23  ;;  %v4034_v3 = vadd.f32 %v5267_v37, %v2966_v21  ;;  %v5268_v14 = vpop.f32.mrb[98].mxu1  ;;  %v2971_v36 = vadd.f32 %v9478_v57, %v9432_v54  ;;  %v9480_v21 = vld [vmem:[#allocation79_spill] sm:$0xff] }
 0xc58   : > { %v5269_v43 = vpop.f32.mrb[99].mxu1  ;;  %v2972_v37 = vadd.f32 %v9480_v21, %v9434_v6 }
 0xc59   : > { %v3991_v15 = vmul.f32 %v3975_v33, %v3975_v33  ;;  %v5270_v29 = vadd.f32 %v5269_v43, %v5268_v14  ;;  %5509 = vmatprep.mubr.f32.mxu0 %v4034_v3  ;;  %v9481_v33 = vld [vmem:[#allocation61_spill] sm:$0xff] }
 0xc5b   : > { %v4006_v40 = vadd.f32 %v4005_v63, %v3991_v15  ;;  %v3976_v50 = vsub.f32 %v5270_v29, %v9469_v41  ;;  %v4035_v47 = vadd.f32 %v5270_v29, %v2967_v4  ;;  %v5271_v1 = vpop.f32.mrb[100].mxu1  ;;  %v2973_v4 = vadd.f32 %v9482_v34, %v9436_v17  ;;  %v9483_v41 = vld [vmem:[#allocation63_spill] sm:$0xff] }
 0xc5c   : > { %v5272_v9 = vpop.f32.mrb[101].mxu1  ;;  %v4316_v17 = vld [vmem:[%s9152_s10 + $0x50] sm:$0xff] }
 0xc5d   : > { %v3992_v26 = vmul.f32 %v3976_v50, %v3976_v50  ;;  %v5273_v30 = vadd.f32 %v5272_v9, %v5271_v1  ;;  %5510 = vmatmul.mubr.f32.gmra.mrb[120].mxu0 %v4035_v47  ;;  %v4314_v9 = vld [vmem:[%s9152_s10 + $0x40] sm:$0xff] }
 0xc5f   : > { %v4007_v20 = vadd.f32 %v4006_v40, %v3992_v26  ;;  %v3977_v16 = vsub.f32 %v5273_v30, %v9472_v22  ;;  %v4036_v52 = vadd.f32 %v5273_v30, %v2968_v13  ;;  %v5274_v38 = vpop.f32.mrb[102].mxu1  ;;  %v4315_v26 = vld [vmem:[%s9152_s10 + $0x48] sm:$0xff]  ;;  %v5885_v13 = vpack.c.bf16 %v4317_v31, %v4316_v17  ;;  %v4318_v30 = vld [vmem:[%s9152_s10 + $0x60] sm:$0xff] }
 0xc60   : > { %v5275_v49 = vpop.f32.mrb[103].mxu1  ;;  %v5881_v61 = vpack.c.bf16 %v4315_v26, %v4314_v9 }
 0xc61   : > { %v3993_v42 = vmul.f32 %v3977_v16, %v3977_v16  ;;  %v5276_v19 = vadd.f32 %v5275_v49, %v5274_v38  ;;  %5512 = vmatprep.mubr.f32.mxu0 %v4036_v52  ;;  %v4320_v16 = vld [vmem:[%s9152_s10 + $0x70] sm:$0xff]  ;;  %v4321_v52 = vld [vmem:[%s9152_s10 + $0x78] sm:$0xff] }
 0xc62   : > { %5882 = vmatprep.subr.bf16.mxu1 %v5881_v61  ;;  %v5893_v38 = vpack.c.bf16 %v4321_v52, %v4320_v16 }
 0xc63   : > { %v4008_v8 = vadd.f32 %v4007_v20, %v3993_v42  ;;  %v3978_v25 = vsub.f32 %v5276_v19, %v9474_v32  ;;  %v4037_v35 = vadd.f32 %v5276_v19, %v2969_v11  ;;  %v5277_v56 = vpop.f32.mrb[104].mxu1  ;;  %5884 = vmatpush3.bf16.msra.mxu1 %v5881_v61  ;;  %v4319_v20 = vld [vmem:[%s9152_s10 + $0x68] sm:$0xff] }
 0xc64   : > { %v5278_v0 = vpop.f32.mrb[105].mxu1  ;;  %5886 = vmatprep.subr.bf16.mxu1 %v5885_v13  ;;  %v5889_v22 = vpack.c.bf16 %v4319_v20, %v4318_v30 }
 0xc65   : > { %v3994_v28 = vmul.f32 %v3978_v25, %v3978_v25  ;;  %v5279_v27 = vadd.f32 %v5278_v0, %v5277_v56  ;;  %5513 = vmatmul.mubr.f32.gmra.mrb[122].mxu0 %v4037_v35 }
 0xc67   : > { %v4009_v48 = vadd.f32 %v4008_v8, %v3994_v28  ;;  %v3979_v2 = vsub.f32 %v5279_v27, %v9477_v55  ;;  %v4038_v44 = vadd.f32 %v5279_v27, %v2970_v10  ;;  %v5280_v39 = vpop.f32.mrb[106].mxu1  ;;  %5888 = vmatpush3.bf16.msra.mxu1 %v5885_v13  ;;  %v9022_v8 = vld [vmem:[%s9151_s9] ss:$0 sm:$0xff] }
 0xc68   : > { %v5281_v59 = vpop.f32.mrb[107].mxu1  ;;  %5890 = vmatprep.subr.bf16.mxu1 %v5889_v22 }
 0xc69   : > { %v3995_v51 = vmul.f32 %v3979_v2, %v3979_v2  ;;  %v5282_v62 = vadd.f32 %v5281_v59, %v5280_v39  ;;  %5515 = vmatprep.mubr.f32.mxu0 %v4038_v44 }
 0xc6b   : > { %v4010_v12 = vadd.f32 %v4009_v48, %v3995_v51  ;;  %v3980_v53 = vsub.f32 %v5282_v62, %v9479_v5  ;;  %v4039_v58 = vadd.f32 %v5282_v62, %v2971_v36  ;;  %v5283_v45 = vpop.f32.mrb[108].mxu1  ;;  %5892 = vmatpush3.bf16.msra.mxu1 %v5889_v22 }
 0xc6c   : > { %v5284_v18 = vpop.f32.mrb[109].mxu1  ;;  %5894 = vmatprep.subr.bf16.mxu1 %v5893_v38 }
 0xc6d   : > { %v3996_v24 = vmul.f32 %v3980_v53, %v3980_v53  ;;  %v5285_v63 = vadd.f32 %v5284_v18, %v5283_v45  ;;  %5516 = vmatmul.mubr.f32.gmra.mrb[124].mxu0 %v4039_v58 }
 0xc6f   : > { %v4011_v23 = vadd.f32 %v4010_v12, %v3996_v24  ;;  %v3981_v3 = vsub.f32 %v5285_v63, %v9481_v33  ;;  %v4040_v14 = vadd.f32 %v5285_v63, %v2972_v37  ;;  %v5286_v43 = vpop.f32.mrb[110].mxu1  ;;  %5896 = vmatpush3.bf16.msra.mxu1 %v5893_v38 }
 0xc70   : > { %v5287_v54 = vpop.f32.mrb[111].mxu1 }
 0xc71   : > { %v3997_v15 = vmul.f32 %v3981_v3, %v3981_v3  ;;  %v5288_v29 = vadd.f32 %v5287_v54, %v5286_v43  ;;  %5518 = vmatprep.mubr.f32.mxu0 %v4040_v14 }
 0xc73   : > { %v4012_v40 = vadd.f32 %v4011_v23, %v3997_v15  ;;  %v3982_v50 = vsub.f32 %v5288_v29, %v9483_v41  ;;  %v4041_v47 = vadd.f32 %v5288_v29, %v2973_v4 }
 0xc75   : > { %v3998_v1 = vmul.f32 %v3982_v50, %v3982_v50  ;;  %5519 = vmatmul.mubr.f32.gmra.mrb[126].mxu0 %v4041_v47  ;;  %v2940_v50 = vstv %s2939_s27  ;;  %s9049_s27 = scalar_lea.hbm %s9155_s13, %s4981_s24 }
 0xc77   : > { %v4013_v6 = vadd.f32 %v4012_v40, %v3998_v1  ;;  %v1826_v1 = vstv %s1825_s28  ;;  %s4530_s28 = sshll.u32 %s7284_s21, 4  ;;  %s4531_s28 = int_to_ptr.vmem [resolvable:$true] %s4530_s28 }
 0xc78   : > { %v2941_v9 = vadd.f32 %v2940_v50, %v1826_v1 }
 0xc79   : > { %4014 = vadd.xlane.f32.xlu0 %v4013_v6 }
 0xd06   : > { %v4015_v49 = vpop.xlane.xlu0 %4014 }
 0xd07   : > { %v4016_v42 = vrot.slane %v4015_v49, 4 }
 0xd09   : > { %v4017_v7 = vadd.f32 %v4016_v42, %v4015_v49 }
 0xd0b   : > { %v4018_v11 = vrot.slane %v4017_v7, 2 }
 0xd0d   : > { %v4019_v19 = vadd.f32 %v4018_v11, %v4017_v7 }
 0xd0f   : > { %v4020_v32 = vrot.slane %v4019_v19, 1 }
 0xd10   : > { %v5499_v25 = vpop.f32.mrb[112].mxu0 }
 0xd11   : > { %v4217_v35 = vadd.f32 %v5499_v25, %v9022_v8  ;;  %v4211_v56 = vpop.f32.mrb[113].mxu0  ;;  %v4021_v0 = vadd.f32 %v4020_v32, %v4019_v19 }
 0xd12   : > { %v4212_v28 = vadd.f32 %v9022_v8, %v4211_v56 }
 0xd13   : > { %5901 = vpush %v4021_v0  ;;  %v4291_v46 = vmax.f32 %v4217_v35, 0.0 }
 0xd14   : > { %v4290_v60 = vmax.f32 %v4212_v28, 0.0 }
 0xd16   : > { %5553 = vmatprep.mubr.f32.mxu1 %v4290_v60 }
 0xd17   : > { %5554 = vmatmul.mubr.f32.vlgmr.msra.gmra.mrb[112].mxu1 %v4291_v46 }
 0xd18   : > { %v5502_v10 = vpop.f32.mrb[114].mxu0 }
 0xd19   : > { %v4227_v27 = vadd.f32 %v5502_v10, %v9022_v8  ;;  %v4221_v48 = vpop.f32.mrb[115].mxu0 }
 0xd1a   : > { %v4222_v55 = vadd.f32 %v9022_v8, %v4221_v48 }
 0xd1b   : > { %v4293_v44 = vmax.f32 %v4227_v27, 0.0 }
 0xd1c   : > { %v4292_v2 = vmax.f32 %v4222_v55, 0.0 }
 0xd1e   : > { %5556 = vmatprep.mubr.f32.mxu1 %v4292_v2 }
 0xd1f   : > { %5557 = vmatmul.mubr.f32.gmra.mrb[114].mxu1 %v4293_v44 }
 0xd20   : > { %v5505_v39 = vpop.f32.mrb[116].mxu0 }
 0xd21   : > { %v4237_v59 = vadd.f32 %v5505_v39, %v9022_v8  ;;  %v4231_v51 = vpop.f32.mrb[117].mxu0 }
 0xd22   : > { %v4232_v57 = vadd.f32 %v9022_v8, %v4231_v51 }
 0xd23   : > { %v4295_v62 = vmax.f32 %v4237_v59, 0.0 }
 0xd24   : > { %v4294_v36 = vmax.f32 %v4232_v57, 0.0 }
 0xd26   : > { %5559 = vmatprep.mubr.f32.mxu1 %v4294_v36 }
 0xd27   : > { %5560 = vmatmul.mubr.f32.gmra.mrb[116].mxu1 %v4295_v62 }
 0xd28   : > { %v5508_v12 = vpop.f32.mrb[118].mxu0 }
 0xd29   : > { %v4247_v5 = vadd.f32 %v5508_v12, %v9022_v8  ;;  %v4241_v53 = vpop.f32.mrb[119].mxu0 }
 0xd2a   : > { %v4242_v58 = vadd.f32 %v9022_v8, %v4241_v53 }
 0xd2b   : > { %v4297_v18 = vmax.f32 %v4247_v5, 0.0 }
 0xd2c   : > { %v4296_v45 = vmax.f32 %v4242_v58, 0.0 }
 0xd2e   : > { %5562 = vmatprep.mubr.f32.mxu1 %v4296_v45 }
 0xd2f   : > { %5563 = vmatmul.mubr.f32.gmra.mrb[118].mxu1 %v4297_v18 }
 0xd30   : > { %v5511_v24 = vpop.f32.mrb[120].mxu0 }
 0xd31   : > { %v4257_v21 = vadd.f32 %v5511_v24, %v9022_v8  ;;  %v4251_v37 = vpop.f32.mrb[121].mxu0 }
 0xd32   : > { %v4252_v63 = vadd.f32 %v9022_v8, %v4251_v37 }
 0xd33   : > { %v4299_v33 = vmax.f32 %v4257_v21, 0.0 }
 0xd34   : > { %v4298_v23 = vmax.f32 %v4252_v63, 0.0 }
 0xd36   : > { %5565 = vmatprep.mubr.f32.mxu1 %v4298_v23 }
 0xd37   : > { %5566 = vmatmul.mubr.f32.gmra.mrb[120].mxu1 %v4299_v33 }
 0xd38   : > { %v5514_v3 = vpop.f32.mrb[122].mxu0 }
 0xd39   : > { %v4267_v14 = vadd.f32 %v5514_v3, %v9022_v8  ;;  %v4261_v43 = vpop.f32.mrb[123].mxu0 }
 0xd3a   : > { %v4262_v54 = vadd.f32 %v9022_v8, %v4261_v43 }
 0xd3b   : > { %v4301_v34 = vmax.f32 %v4267_v14, 0.0 }
 0xd3c   : > { %v4300_v15 = vmax.f32 %v4262_v54, 0.0 }
 0xd3e   : > { %5568 = vmatprep.mubr.f32.mxu1 %v4300_v15 }
 0xd3f   : > { %5569 = vmatmul.mubr.f32.gmra.mrb[122].mxu1 %v4301_v34 }
 0xd40   : > { %v5517_v4 = vpop.f32.mrb[124].mxu0 }
 0xd41   : > { %v4277_v29 = vadd.f32 %v5517_v4, %v9022_v8  ;;  %v4271_v40 = vpop.f32.mrb[125].mxu0 }
 0xd42   : > { %v4272_v41 = vadd.f32 %v9022_v8, %v4271_v40 }
 0xd43   : > { %v4303_v6 = vmax.f32 %v4277_v29, 0.0 }
 0xd44   : > { %v4302_v47 = vmax.f32 %v4272_v41, 0.0  ;;  %s5902_s29 = spop %5901 }
 0xd45   : > { %s4023_s15 = smul.f32 2.0, %s5902_s29  ;;  %s5951_s29 = scalar_lea.vmem %s4531_s28, 64 }
 0xd46   : > { %5571 = vmatprep.mubr.f32.mxu1 %v4302_v47  ;;  %p5952_p12 = scmp.ne.s32.totalorder %s4531_s28, %s5951_s29 }
 0xd47   : > { %v4024_v26 = vstv %s4023_s15  ;;  %5572 = vmatmul.mubr.f32.gmra.mrb[124].mxu1 %v4303_v6  ;;  %s6049_s15 = smov [#allocation4]  }
 0xd48   : > { %v4025_v61 = vadd.f32 %v4024_v26, %v2941_v9  ;;  %v5520_v17 = vpop.f32.mrb[126].mxu0  ;;  %p5953_p13 = pnand %p5952_p12, %p6166_p5  ;;  %s5955_s18 = sshll.u32 %s6049_s15, 4  ;;  %s5956_s18 = int_to_ptr.vmem [resolvable:$false] %s5955_s18 }
 0xd49   : > { %v4287_v31 = vadd.f32 %v5520_v17, %v9022_v8  ;;  %v4281_v13 = vpop.f32.mrb[127].mxu0  ;;  %s5957_s19 = scalar_lea.vmem %s5956_s18, 128  ;;  %p5958_p1 = scmp.lt.s32.totalorder %s4531_s28, %s5956_s18 }
 0xd4a   : > { %v4490_v30 = vmul.f32 3.0517578e-05, %v4025_v61  ;;  %v4282_v20 = vadd.f32 %v9022_v8, %v4281_v13  ;;  %p5954_p0 = pneg %p5953_p13  ;;  %p5959_p2 = scmp.lt.s32.totalorder %s5957_s19, %s5951_s29 }
 0xd4b   : > { %v4305_v16 = vmax.f32 %v4287_v31, 0.0 }
 0xd4c   : > { %4491 = vst [vmem:[%s487_s20] sm:$0x1] %v4490_v30  ;;  %v4304_v22 = vmax.f32 %v4282_v20, 0.0  ;;  %p5960_p3 = por %p5959_p2, %p5958_p1 }
 0xd4e   : > { %5574 = vmatprep.mubr.f32.mxu1 %v4304_v22  ;;  %p5961_p4 = pnand %p5960_p3, %p5954_p0 }
 0xd4f   : > { %5575 = vmatmul.mubr.f32.gmra.mrb[126].mxu1 %v4305_v16 }
 0xd50   : > { %5964 = shalt.err (!%p5961_p4)
}
 0xd51   : > { %s5965_s21 = scalar_lea.hbm %s9049_s27, 64  ;;  %s5969_s25 = scalar_lea.hbm %s9155_s13, 128 }
 0xd52   : > { %p5966_p7 = scmp.ne.s32.totalorder %s9049_s27, %s5965_s21  ;;  %p5970_p10 = scmp.lt.u32.totalorder %s9049_s27, %s9155_s13 }
 0xd53   : > { %p5971_p11 = scmp.lt.u32.totalorder %s5969_s25, %s5965_s21  ;;  %p5973_p13 = scmp.lt.u32.totalorder %s5965_s21, %s9049_s27 }
 0xd54   : > { %p5967_p8 = pnand %p5966_p7, %p6166_p5 }
 0xd55   : > { %p5972_p12 = por %p5971_p11, %p5970_p10 }
 0xd56   : > { %p5968_p9 = pneg %p5967_p8 }
 0xd57   : > { %p5974_p0 = por %p5973_p13, %p5972_p12 }
 0xd59   : > { %p5975_p1 = pnand %p5974_p0, %p5968_p9 }
 0xd5b   : > { %5978 = shalt.err (!%p5975_p1)
}
 0xd5c   : > { %5904 = dma.vmem_to_hbm [thread:$0]  (%p6166_p5), %s4531_s28, 64, %s9049_s27, %s4498_s22   ;;  %v4976_v52 = vld [vmem:[%s9153_s11] ss:$0 sm:$0xff] }
 0xd5d   : > { %s4647_s29 = sshll.u32 %s7259_s26, 7  ;;  %s4984_s27 = sshll.u32 %s6149_s17, 11 }
 0xd5e   : > { %s9074_s20 = scalar_lea.vmem [#allocation2], %s4647_s29  ;;  %s9095_s24 = scalar_lea.hbm %s9154_s12, %s4984_s27 }
 0xd5f   : > { %s4514_s28 = sshll.u32 %s9074_s20, 4  ;;  %s4493_s25 = scalar_lea.sflag [#allocation3], %s7259_s26  ;;  %s9097_s28 = int_to_ptr.vmem [resolvable:$true] %s4514_s28 }
 0xd60   : > { %s5979_s16 = scalar_lea.vmem %s9097_s28, 2048  ;;  %s6050_s17 = smov [#allocation2]  }
 0xd61   : > { %p5980_p2 = scmp.ne.s32.totalorder %s9097_s28, %s5979_s16  ;;  %s5983_s15 = sshll.u32 %s6050_s17, 4  ;;  %s5984_s15 = int_to_ptr.vmem [resolvable:$false] %s5983_s15 }
 0xd62   : > { %s5985_s29 = scalar_lea.vmem %s5984_s15, 4096  ;;  %p5986_p7 = scmp.lt.s32.totalorder %s9097_s28, %s5984_s15 }
 0xd63   : > { %p5981_p3 = pnand %p5980_p2, %p6166_p5  ;;  %p5987_p8 = scmp.lt.s32.totalorder %s5985_s29, %s5979_s16 }
 0xd65   : > { %p5982_p4 = pneg %p5981_p3  ;;  %p5988_p9 = por %p5987_p8, %p5986_p7 }
 0xd67   : > { %p5989_p10 = pnand %p5988_p9, %p5982_p4 }
 0xdea   : > { %v5555_v38 = vpop.f32.mrb[112].mxu1 }
 0xdeb   : > { %v4401_v49 = vadd.f32 %v5555_v38, %v4976_v52  ;;  %v4395_v42 = vpop.f32.mrb[113].mxu1 }
 0xdec   : > { %v4396_v7 = vadd.f32 %v4976_v52, %v4395_v42 }
 0xded   : > { %4475 = vst [vmem:[%s9074_s20 + $0x8] sm:$0xff] %v4401_v49 }
 0xdee   : > { %4474 = vst [vmem:[%s9074_s20] sm:$0xff] %v4396_v7 }
 0xdf2   : > { %v5558_v11 = vpop.f32.mrb[114].mxu1 }
 0xdf3   : > { %v4411_v19 = vadd.f32 %v5558_v11, %v4976_v52  ;;  %v4405_v8 = vpop.f32.mrb[115].mxu1 }
 0xdf4   : > { %v4406_v32 = vadd.f32 %v4976_v52, %v4405_v8 }
 0xdf5   : > { %4477 = vst [vmem:[%s9074_s20 + $0x18] sm:$0xff] %v4411_v19 }
 0xdf6   : > { %4476 = vst [vmem:[%s9074_s20 + $0x10] sm:$0xff] %v4406_v32 }
 0xdfa   : > { %v5561_v25 = vpop.f32.mrb[116].mxu1 }
 0xdfb   : > { %v4421_v35 = vadd.f32 %v5561_v25, %v4976_v52  ;;  %v4415_v56 = vpop.f32.mrb[117].mxu1 }
 0xdfc   : > { %v4416_v0 = vadd.f32 %v4976_v52, %v4415_v56 }
 0xdfd   : > { %4479 = vst [vmem:[%s9074_s20 + $0x28] sm:$0xff] %v4421_v35 }
 0xdfe   : > { %4478 = vst [vmem:[%s9074_s20 + $0x20] sm:$0xff] %v4416_v0 }
 0xe02   : > { %v5564_v28 = vpop.f32.mrb[118].mxu1 }
 0xe03   : > { %v4431_v60 = vadd.f32 %v5564_v28, %v4976_v52  ;;  %v4425_v46 = vpop.f32.mrb[119].mxu1 }
 0xe04   : > { %v4426_v10 = vadd.f32 %v4976_v52, %v4425_v46 }
 0xe05   : > { %4481 = vst [vmem:[%s9074_s20 + $0x38] sm:$0xff] %v4431_v60 }
 0xe06   : > { %4480 = vst [vmem:[%s9074_s20 + $0x30] sm:$0xff] %v4426_v10 }
 0xe0a   : > { %v5567_v27 = vpop.f32.mrb[120].mxu1 }
 0xe0b   : > { %v4441_v48 = vadd.f32 %v5567_v27, %v4976_v52  ;;  %v4435_v55 = vpop.f32.mrb[121].mxu1 }
 0xe0c   : > { %v4436_v2 = vadd.f32 %v4976_v52, %v4435_v55 }
 0xe0d   : > { %4483 = vst [vmem:[%s9074_s20 + $0x48] sm:$0xff] %v4441_v48 }
 0xe0e   : > { %4482 = vst [vmem:[%s9074_s20 + $0x40] sm:$0xff] %v4436_v2 }
 0xe12   : > { %v5570_v44 = vpop.f32.mrb[122].mxu1 }
 0xe13   : > { %v4451_v39 = vadd.f32 %v5570_v44, %v4976_v52  ;;  %v4445_v59 = vpop.f32.mrb[123].mxu1 }
 0xe14   : > { %v4446_v51 = vadd.f32 %v4976_v52, %v4445_v59 }
 0xe15   : > { %4485 = vst [vmem:[%s9074_s20 + $0x58] sm:$0xff] %v4451_v39 }
 0xe16   : > { %4484 = vst [vmem:[%s9074_s20 + $0x50] sm:$0xff] %v4446_v51 }
 0xe1a   : > { %v5573_v57 = vpop.f32.mrb[124].mxu1 }
 0xe1b   : > { %v4461_v36 = vadd.f32 %v5573_v57, %v4976_v52  ;;  %v4455_v62 = vpop.f32.mrb[125].mxu1 }
 0xe1c   : > { %v4456_v12 = vadd.f32 %v4976_v52, %v4455_v62 }
 0xe1d   : > { %4487 = vst [vmem:[%s9074_s20 + $0x68] sm:$0xff] %v4461_v36 }
 0xe1e   : > { %4486 = vst [vmem:[%s9074_s20 + $0x60] sm:$0xff] %v4456_v12 }
 0xe22   : > { %v5576_v5 = vpop.f32.mrb[126].mxu1 }
 0xe23   : > { %v4471_v53 = vadd.f32 %v5576_v5, %v4976_v52  ;;  %v4465_v58 = vpop.f32.mrb[127].mxu1 }
 0xe24   : > { %v4466_v45 = vadd.f32 %v4976_v52, %v4465_v58 }
 0xe25   : > { %4489 = vst [vmem:[%s9074_s20 + $0x78] sm:$0xff] %v4471_v53 }
 0xe26   : > { %4488 = vst [vmem:[%s9074_s20 + $0x70] sm:$0xff] %v4466_v45 }
 0xe27   : > { %5992 = shalt.err (!%p5989_p10)
}
 0xe28   : > { %s5993_s18 = scalar_lea.hbm %s9095_s24, 2048  ;;  %s5997_s27 = scalar_lea.hbm %s9154_s12, 4096 }
 0xe29   : > { %p5994_p11 = scmp.ne.s32.totalorder %s9095_s24, %s5993_s18  ;;  %p5998_p0 = scmp.lt.u32.totalorder %s9095_s24, %s9154_s12 }
 0xe2a   : > { %p5999_p1 = scmp.lt.u32.totalorder %s5997_s27, %s5993_s18  ;;  %p6001_p3 = scmp.lt.u32.totalorder %s5993_s18, %s9095_s24 }
 0xe2b   : > { %p5995_p12 = pnand %p5994_p11, %p6166_p5 }
 0xe2c   : > { %p6000_p2 = por %p5999_p1, %p5998_p0 }
 0xe2d   : > { %p5996_p13 = pneg %p5995_p12 }
 0xe2e   : > { %p6002_p4 = por %p6001_p3, %p6000_p2 }
 0xe30   : > { %p6003_p7 = pnand %p6002_p4, %p5996_p13 }
 0xe32   : > { %6006 = shalt.err (!%p6003_p7)
}
 0xe33   : > { %s6051_s16 = smov 128   ;;  %s6052_s17 = smov 8  }
 0xe34   : > { %5903 = dma.vmem_to_hbm [thread:$0]  (%p6166_p5), %s9097_s28, 2048, %s9095_s24, %s4493_s25, %s6051_s16, %s6051_s16, %s6052_s17  }
 0xe35 PF: > { %s9484_s15 = sld [smem:[#allocation10_spill]]  ;;  %s9485_s29 = sld [smem:[#allocation8_spill]] }
 0xe3b   : > { %p5914_p8 = scmp.ge.s32.totalorder %s9484_s15, 2  ;;  %s4545_s20 = sand.u32 1, %s9485_s29  }
 0xe3c   : > { %s4546_s18 = scalar_lea.sflag [#allocation3], %s4545_s20 }
 0xe3d   : > { %p5908_p9 = pnand %p5914_p8, %p6170_p6 }
 0xe3f   : > { %6024 = dma.done.wait (!%p5908_p9), %s4546_s18, 2048  }
 0xe40   : > { %6026 = vsyncadd (!%p5908_p9), %s4546_s18, 4294965248  ;;  %s4555_s27 = scalar_lea.sflag [#allocation5], %s4545_s20 }
 0xe41   : > { %6028 = dma.done.wait (!%p5908_p9), %s4555_s27, 64  }
 0xe42   : > { %6030 = vsyncadd (!%p5908_p9), %s4555_s27, 4294967232  ;;  %s9487_s16 = sld [smem:[#allocation11_spill]]  ;;  %s9488_s22 = sld [smem:[#allocation9_spill]] }
 0xe43   : > { %s9489_s15 = sld [smem:[#allocation12_spill]]  ;;  %s9490_s29 = smov %s6037_s30 }
 0xe48   : > { %p28_p5 = scmp.ge.s32.totalorder %s9487_s16, 4   ;;  %s9491_s30 = smov %s9488_s22 }
 0xe4a   :  { %30 = sbr.rel (!%p28_p5) target bundleno = 5 (0x5), region = 138 }
 0xe51   :  { %4566 = vsyncpa [#allocation3], 1 }
 0xe52   :  { %4568 = vsyncpa [#allocation3 + $0x1], 1 }
 0xe53   :  { %4569 = vsyncpa [#allocation5], 1 }
 0xe54   :  { %4571 = vsyncpa [#allocation5 + $0x1], 1 }

</bundles_post_ra>
